<compile_context>
chip_gen: v7x
topology: tpu7x:2x2x1
jax: 0.10.0
libtpu: 0.0.40
codegen_flags: <defaults>
</compile_context>

<pallas_src>
import jax
import jax.numpy as jnp
from jax.experimental import pallas as pl
from jax.experimental.pallas import tpu as pltpu

INPUT = 14
HIDDEN = 64
NUM_LAYERS = 5
FC1 = 32
FC2 = 16
FC1_PAD = 128   # lane-dense fc1 output
OUT_PAD = 128   # lane-dense fc2 output
GATE_PERM = (0, 1, 3, 2)  # PyTorch (i,f,g,o) -> kernel (i,f,o,g): sigmoid gates first, tanh last


def _build_kernel(T, B_pad):
    """Kernel closure with static T / padded batch."""

    def kernel(x_ref, wih_ref, whh_ref, b_ref, fc1w_ref, fc1b_ref,
               fc2w_ref, fc2b_ref, out_ref, seq_ref, gx_ref):
        # Lane mask hoisted out of all loops (JAX does not CSE broadcast_in_dim).
        sig_mask = jax.lax.broadcasted_iota(
            jnp.int32, (B_pad, 4 * HIDDEN), 1) < 3 * HIDDEN

        h = jnp.zeros((B_pad, HIDDEN), jnp.float32)
        for l in range(NUM_LAYERS):  # static unroll over layers
            w_ih = wih_ref[l]        # (64, 256) bf16
            w_hh = whh_ref[l]        # (64, 256) bf16
            bias = b_ref[l]          # (1, 256)  f32  (= b_ih + b_hh, gate-reordered)

            # ---- hoisted input projection: all T steps in one matmul --------------
            src = x_ref if l == 0 else seq_ref           # (T*B_pad, 64) f32
            gx_ref[...] = (jnp.dot(src[...].astype(jnp.bfloat16), w_ih,
                                   preferred_element_type=jnp.float32) + bias)

            # ---- serial recurrence, fully unrolled; h/c stay in vregs -------------
            h = jnp.zeros((B_pad, HIDDEN), jnp.float32)
            c = jnp.zeros((B_pad, HIDDEN), jnp.float32)
            write_seq = l < NUM_LAYERS - 1
            for t in range(T):
                r0 = t * B_pad  # static, sublane-tile-aligned row offset
                gates = gx_ref[r0:r0 + B_pad, :] + jnp.dot(
                    h.astype(jnp.bfloat16), w_hh,
                    preferred_element_type=jnp.float32)          # (B_pad, 256) f32
                # full-block activations + lane select; gate layout i | f | o | g
                acts = jnp.where(sig_mask, jax.nn.sigmoid(gates), jnp.tanh(gates))
                i_g = acts[:, 0 * HIDDEN:1 * HIDDEN]
                f_g = acts[:, 1 * HIDDEN:2 * HIDDEN]
                o_g = acts[:, 2 * HIDDEN:3 * HIDDEN]
                g_g = acts[:, 3 * HIDDEN:4 * HIDDEN]
                c = f_g * c + i_g * g_g
                h = o_g * jnp.tanh(c)
                if write_seq:                      # last layer only needs final h
                    seq_ref[r0:r0 + B_pad, :] = h
            # TODO(synk): nn.LSTM inter-layer dropout (p=0.2) is train-only; eval = identity.

        # h == lstm_out[:, -1, :]
        y = jnp.dot(h.astype(jnp.bfloat16), fc1w_ref[...],
                    preferred_element_type=jnp.float32) + fc1b_ref[...]
        y = jnp.maximum(y, 0.0)
        # TODO(synk): nn.Dropout(0.1) is train-only; eval = identity.
        out_ref[...] = (jnp.dot(y.astype(jnp.bfloat16), fc2w_ref[...],
                                preferred_element_type=jnp.float32) + fc2b_ref[...])

    return kernel


@jax.jit
def lstm_signal_forward(x, wih, whh, b, fc1w, fc1b, fc2w, fc2b):
    B, T, F = x.shape
    B_pad = max(8, ((B + 7) // 8) * 8)   # sublane-tile-aligned batch
    # pad features 14 -> 64 (zero rows of packed w_ih_l0 make this exact), pad batch,
    # go time-major, and flatten so each time step is an aligned 8-row block.
    xp = jnp.zeros((T, B_pad, HIDDEN), jnp.float32)
    xp = xp.at[:, :B, :F].set(jnp.transpose(x, (1, 0, 2)).astype(jnp.float32))
    xp = xp.reshape(T * B_pad, HIDDEN)

    # TODO(synk): if B ever grows beyond toy scale, add a batch grid axis with
    # dimension_semantics=("parallel",) so v7x's second TensorCore is used, and re-budget
    # the (T*B_pad)-sized VMEM scratches against v7x's 64 MiB (chunk T if needed).
    vmem = pl.BlockSpec(memory_space=pltpu.MemorySpace.VMEM)
    out = pl.pallas_call(
        _build_kernel(T, B_pad),
        out_shape=jax.ShapeDtypeStruct((B_pad, OUT_PAD), jnp.float32),
        in_specs=[vmem] * 8,
        out_specs=vmem,
        scratch_shapes=[
            pltpu.VMEM((T * B_pad, HIDDEN), jnp.float32),      # per-layer output sequence
            pltpu.VMEM((T * B_pad, 4 * HIDDEN), jnp.float32),  # hoisted input-gate pre-gemm
        ],
    )(xp, wih, whh, b, fc1w, fc1b, fc2w, fc2b)
    return out[:B, :FC2]


# ----------------------------- params / packing --------------------------------------


def make_torch_params(key):
    """Deterministic synthetic params with PyTorch shapes / init ranges."""
    keys = jax.random.split(key, 4 * NUM_LAYERS + 4)
    k_lstm = 1.0 / (HIDDEN ** 0.5)
    idx = 0
    layers = []
    for l in range(NUM_LAYERS):
        in_dim = INPUT if l == 0 else HIDDEN
        w_ih = jax.random.uniform(keys[idx], (4 * HIDDEN, in_dim), jnp.float32, -k_lstm, k_lstm); idx += 1
        w_hh = jax.random.uniform(keys[idx], (4 * HIDDEN, HIDDEN), jnp.float32, -k_lstm, k_lstm); idx += 1
        b_ih = jax.random.uniform(keys[idx], (4 * HIDDEN,), jnp.float32, -k_lstm, k_lstm); idx += 1
        b_hh = jax.random.uniform(keys[idx], (4 * HIDDEN,), jnp.float32, -k_lstm, k_lstm); idx += 1
        layers.append((w_ih, w_hh, b_ih, b_hh))
    k1 = 1.0 / (HIDDEN ** 0.5)
    fc1_w = jax.random.uniform(keys[idx], (FC1, HIDDEN), jnp.float32, -k1, k1); idx += 1
    fc1_b = jax.random.uniform(keys[idx], (FC1,), jnp.float32, -k1, k1); idx += 1
    k2 = 1.0 / (FC1 ** 0.5)
    fc2_w = jax.random.uniform(keys[idx], (FC2, FC1), jnp.float32, -k2, k2); idx += 1
    fc2_b = jax.random.uniform(keys[idx], (FC2,), jnp.float32, -k2, k2); idx += 1
    return layers, (fc1_w, fc1_b, fc2_w, fc2_b)


def _reorder_gate_cols(w):
    """Columns grouped per gate (i,f,g,o) -> (i,f,o,g)."""
    return jnp.concatenate([w[:, g * HIDDEN:(g + 1) * HIDDEN] for g in GATE_PERM], axis=1)


def pack_params(lstm_layers, fc):
    """PyTorch layout -> kernel layout: transpose, zero-pad, reorder gates, bf16 weights."""
    wih_l, whh_l, b_l = [], [], []
    for (w_ih, w_hh, b_ih, b_hh) in lstm_layers:
        in_dim = w_ih.shape[1]
        w_ih_t = jnp.zeros((HIDDEN, 4 * HIDDEN), jnp.float32).at[:in_dim, :].set(w_ih.T)
        wih_l.append(_reorder_gate_cols(w_ih_t).astype(jnp.bfloat16))
        whh_l.append(_reorder_gate_cols(w_hh.T).astype(jnp.bfloat16))
        b_l.append(_reorder_gate_cols((b_ih + b_hh)[None, :]))
    fc1_w, fc1_b, fc2_w, fc2_b = fc
    fc1w = jnp.zeros((HIDDEN, FC1_PAD), jnp.float32).at[:, :FC1].set(fc1_w.T).astype(jnp.bfloat16)
    fc1b = jnp.zeros((1, FC1_PAD), jnp.float32).at[:, :FC1].set(fc1_b[None, :])
    fc2w = jnp.zeros((FC1_PAD, OUT_PAD), jnp.float32).at[:FC1, :FC2].set(fc2_w.T).astype(jnp.bfloat16)
    fc2b = jnp.zeros((1, OUT_PAD), jnp.float32).at[:, :FC2].set(fc2_b[None, :])
    return (jnp.stack(wih_l), jnp.stack(whh_l), jnp.stack(b_l), fc1w, fc1b, fc2w, fc2b)


# ----------------------------- pure-JAX reference ------------------------------------


def reference(x, wih, whh, b, fc1w, fc1b, fc2w, fc2b):
    """Mirrors the PyTorch eval forward on the packed (bf16-weight) params."""
    B, T, F = x.shape
    seq = jnp.zeros((T, B, HIDDEN), jnp.float32).at[:, :, :F].set(
        jnp.transpose(x, (1, 0, 2)).astype(jnp.float32))
    h = jnp.zeros((B, HIDDEN), jnp.float32)
    for l in range(NUM_LAYERS):
        h = jnp.zeros((B, HIDDEN), jnp.float32)
        c = jnp.zeros((B, HIDDEN), jnp.float32)
        outs = []
        for t in range(T):
            gates = (jnp.dot(seq[t].astype(jnp.bfloat16), wih[l], preferred_element_type=jnp.float32)
                     + jnp.dot(h.astype(jnp.bfloat16), whh[l], preferred_element_type=jnp.float32)
                     + b[l])
            i_g = jax.nn.sigmoid(gates[:, 0 * HIDDEN:1 * HIDDEN])
            f_g = jax.nn.sigmoid(gates[:, 1 * HIDDEN:2 * HIDDEN])
            o_g = jax.nn.sigmoid(gates[:, 2 * HIDDEN:3 * HIDDEN])
            g_g = jnp.tanh(gates[:, 3 * HIDDEN:4 * HIDDEN])
            c = f_g * c + i_g * g_g
            h = o_g * jnp.tanh(c)
            outs.append(h)
        seq = jnp.stack(outs, axis=0)
    y = jnp.maximum(jnp.dot(h.astype(jnp.bfloat16), fc1w, preferred_element_type=jnp.float32) + fc1b, 0.0)
    out = jnp.dot(y.astype(jnp.bfloat16), fc2w, preferred_element_type=jnp.float32) + fc2b
    return out[:, :FC2]


if __name__ == "__main__":
    key = jax.random.PRNGKey(0)
    pkey, xkey = jax.random.split(key)
    torch_lstm, torch_fc = make_torch_params(pkey)
    params = pack_params(torch_lstm, torch_fc)

    B, T = 2, 8
    x = jax.random.normal(xkey, (B, T, INPUT), jnp.float32)  # batch_first like PyTorch

    out = lstm_signal_forward(x, *params)
    out = jax.block_until_ready(out)
    assert out.shape == (B, FC2), out.shape

    ref = reference(x, *params)
    assert jnp.allclose(out, ref, atol=2e-3, rtol=2e-3), (out, ref)

    print("KERNEL_OK")
</pallas_src>

<mosaic_0001>
module attributes {stable_mosaic.version = 11 : i64} {
  func.func @kernel(%arg0: memref<64x64xf32, #tpu.memory_space<vmem>>, %arg1: memref<5x64x256xbf16, #tpu.memory_space<vmem>>, %arg2: memref<5x64x256xbf16, #tpu.memory_space<vmem>>, %arg3: memref<5x1x256xf32, #tpu.memory_space<vmem>>, %arg4: memref<64x128xbf16, #tpu.memory_space<vmem>>, %arg5: memref<1x128xf32, #tpu.memory_space<vmem>>, %arg6: memref<128x128xbf16, #tpu.memory_space<vmem>>, %arg7: memref<1x128xf32, #tpu.memory_space<vmem>>, %arg8: memref<8x128xf32, #tpu.memory_space<vmem>>, %arg9: memref<64x64xf32, #tpu.memory_space<vmem>>, %arg10: memref<64x256xf32, #tpu.memory_space<vmem>>) attributes {dimension_semantics = [], scalar_prefetch = 0 : i64, scratch_operands = 2 : i64, tpu.core_type = #tpu.core_type<tc>} {
    %0 = tpu.iota {dimensions = array<i32: 1>} : vector<8x256xi32>
    %c192_i32 = arith.constant 192 : i32
    %1 = vector.broadcast %c192_i32 : i32 to vector<8x256xi32>
    %2 = arith.cmpi slt, %0, %1 : vector<8x256xi32>
    %c0 = arith.constant 0 : index
    %c0_0 = arith.constant 0 : index
    %c0_1 = arith.constant 0 : index
    %3 = vector.load %arg1[%c0, %c0_0, %c0_1] : memref<5x64x256xbf16, #tpu.memory_space<vmem>>, vector<1x64x256xbf16>
    %4 = vector.shape_cast %3 : vector<1x64x256xbf16> to vector<64x256xbf16>
    %c0_2 = arith.constant 0 : index
    %c0_3 = arith.constant 0 : index
    %c0_4 = arith.constant 0 : index
    %5 = vector.load %arg2[%c0_2, %c0_3, %c0_4] : memref<5x64x256xbf16, #tpu.memory_space<vmem>>, vector<1x64x256xbf16>
    %6 = vector.shape_cast %5 : vector<1x64x256xbf16> to vector<64x256xbf16>
    %c0_5 = arith.constant 0 : index
    %c0_6 = arith.constant 0 : index
    %c0_7 = arith.constant 0 : index
    %7 = vector.load %arg3[%c0_5, %c0_6, %c0_7] : memref<5x1x256xf32, #tpu.memory_space<vmem>>, vector<1x1x256xf32>
    %8 = vector.shape_cast %7 : vector<1x1x256xf32> to vector<1x256xf32>
    %c0_8 = arith.constant 0 : index
    %c0_9 = arith.constant 0 : index
    %9 = vector.load %arg0[%c0_8, %c0_9] : memref<64x64xf32, #tpu.memory_space<vmem>>, vector<64x64xf32>
    %10 = arith.truncf %9 : vector<64x64xf32> to vector<64x64xbf16>
    %cst = arith.constant dense<0.000000e+00> : vector<64x256xf32>
    %11 = tpu.matmul %10, %4, %cst {dimension_numbers = #tpu.dot_dimension_numbers<[1], [0], [0], [1], [0, 0, 1, 1], [], []>} : vector<64x64xbf16>, vector<64x256xbf16>, vector<64x256xf32> -> vector<64x256xf32>
    %12 = vector.broadcast %8 : vector<1x256xf32> to vector<64x256xf32>
    %13 = arith.addf %11, %12 : vector<64x256xf32>
    %c0_10 = arith.constant 0 : index
    %c0_11 = arith.constant 0 : index
    %14 = vector.load %arg10[%c0_10, %c0_11] : memref<64x256xf32, #tpu.memory_space<vmem>>, vector<64x256xf32>
    tpu.vector_store %arg10[%c0_10, %c0_11], %13 {strides = array<i32>} : memref<64x256xf32, #tpu.memory_space<vmem>>, vector<64x256xf32>,
    %cst_12 = arith.constant 0.000000e+00 : f32
    %15 = vector.broadcast %cst_12 : f32 to vector<8x64xf32>
    %cst_13 = arith.constant 0.000000e+00 : f32
    %16 = vector.broadcast %cst_13 : f32 to vector<8x64xf32>
    %c0_14 = arith.constant 0 : index
    %c0_15 = arith.constant 0 : index
    %17 = vector.load %arg10[%c0_14, %c0_15] : memref<64x256xf32, #tpu.memory_space<vmem>>, vector<8x256xf32>
    %18 = arith.truncf %15 : vector<8x64xf32> to vector<8x64xbf16>
    %cst_16 = arith.constant dense<0.000000e+00> : vector<8x256xf32>
    %19 = tpu.matmul %18, %6, %cst_16 {dimension_numbers = #tpu.dot_dimension_numbers<[1], [0], [0], [1], [0, 0, 1, 1], [], []>} : vector<8x64xbf16>, vector<64x256xbf16>, vector<8x256xf32> -> vector<8x256xf32>
    %20 = arith.addf %17, %19 : vector<8x256xf32>
    %21 = arith.negf %20 : vector<8x256xf32>
    %22 = math.exp %21 : vector<8x256xf32>
    %cst_17 = arith.constant 1.000000e+00 : f32
    %23 = vector.broadcast %cst_17 : f32 to vector<8x256xf32>
    %24 = arith.addf %23, %22 : vector<8x256xf32>
    %25 = arith.divf %23, %24 : vector<8x256xf32>
    %26 = math.tanh %20 : vector<8x256xf32>
    %27 = arith.select %2, %25, %26 : vector<8x256xi1>, vector<8x256xf32>
    %28 = vector.extract_strided_slice %27 {offsets = [0, 0], sizes = [8, 64], strides = [1, 1]} : vector<8x256xf32> to vector<8x64xf32>
    %29 = vector.extract_strided_slice %27 {offsets = [0, 64], sizes = [8, 64], strides = [1, 1]} : vector<8x256xf32> to vector<8x64xf32>
    %30 = vector.extract_strided_slice %27 {offsets = [0, 128], sizes = [8, 64], strides = [1, 1]} : vector<8x256xf32> to vector<8x64xf32>
    %31 = vector.extract_strided_slice %27 {offsets = [0, 192], sizes = [8, 64], strides = [1, 1]} : vector<8x256xf32> to vector<8x64xf32>
    %32 = arith.mulf %29, %16 : vector<8x64xf32>
    %33 = arith.mulf %28, %31 : vector<8x64xf32>
    %34 = arith.addf %32, %33 : vector<8x64xf32>
    %35 = math.tanh %34 : vector<8x64xf32>
    %36 = arith.mulf %30, %35 : vector<8x64xf32>
    %c0_18 = arith.constant 0 : index
    %c0_19 = arith.constant 0 : index
    %37 = vector.load %arg9[%c0_18, %c0_19] : memref<64x64xf32, #tpu.memory_space<vmem>>, vector<8x64xf32>
    tpu.vector_store %arg9[%c0_18, %c0_19], %36 {strides = array<i32>} : memref<64x64xf32, #tpu.memory_space<vmem>>, vector<8x64xf32>,
    %c8 = arith.constant 8 : index
    %c0_20 = arith.constant 0 : index
    %38 = vector.load %arg10[%c8, %c0_20] : memref<64x256xf32, #tpu.memory_space<vmem>>, vector<8x256xf32>
    %39 = arith.truncf %36 : vector<8x64xf32> to vector<8x64xbf16>
    %cst_21 = arith.constant dense<0.000000e+00> : vector<8x256xf32>
    %40 = tpu.matmul %39, %6, %cst_21 {dimension_numbers = #tpu.dot_dimension_numbers<[1], [0], [0], [1], [0, 0, 1, 1], [], []>} : vector<8x64xbf16>, vector<64x256xbf16>, vector<8x256xf32> -> vector<8x256xf32>
    %41 = arith.addf %38, %40 : vector<8x256xf32>
    %42 = arith.negf %41 : vector<8x256xf32>
    %43 = math.exp %42 : vector<8x256xf32>
    %cst_22 = arith.constant 1.000000e+00 : f32
    %44 = vector.broadcast %cst_22 : f32 to vector<8x256xf32>
    %45 = arith.addf %44, %43 : vector<8x256xf32>
    %46 = arith.divf %44, %45 : vector<8x256xf32>
    %47 = math.tanh %41 : vector<8x256xf32>
    %48 = arith.select %2, %46, %47 : vector<8x256xi1>, vector<8x256xf32>
    %49 = vector.extract_strided_slice %48 {offsets = [0, 0], sizes = [8, 64], strides = [1, 1]} : vector<8x256xf32> to vector<8x64xf32>
    %50 = vector.extract_strided_slice %48 {offsets = [0, 64], sizes = [8, 64], strides = [1, 1]} : vector<8x256xf32> to vector<8x64xf32>
    %51 = vector.extract_strided_slice %48 {offsets = [0, 128], sizes = [8, 64], strides = [1, 1]} : vector<8x256xf32> to vector<8x64xf32>
    %52 = vector.extract_strided_slice %48 {offsets = [0, 192], sizes = [8, 64], strides = [1, 1]} : vector<8x256xf32> to vector<8x64xf32>
    %53 = arith.mulf %50, %34 : vector<8x64xf32>
    %54 = arith.mulf %49, %52 : vector<8x64xf32>
    %55 = arith.addf %53, %54 : vector<8x64xf32>
    %56 = math.tanh %55 : vector<8x64xf32>
    %57 = arith.mulf %51, %56 : vector<8x64xf32>
    %c8_23 = arith.constant 8 : index
    %c0_24 = arith.constant 0 : index
    %58 = vector.load %arg9[%c8_23, %c0_24] : memref<64x64xf32, #tpu.memory_space<vmem>>, vector<8x64xf32>
    tpu.vector_store %arg9[%c8_23, %c0_24], %57 {strides = array<i32>} : memref<64x64xf32, #tpu.memory_space<vmem>>, vector<8x64xf32>,
    %c16 = arith.constant 16 : index
    %c0_25 = arith.constant 0 : index
    %59 = vector.load %arg10[%c16, %c0_25] : memref<64x256xf32, #tpu.memory_space<vmem>>, vector<8x256xf32>
    %60 = arith.truncf %57 : vector<8x64xf32> to vector<8x64xbf16>
    %cst_26 = arith.constant dense<0.000000e+00> : vector<8x256xf32>
    %61 = tpu.matmul %60, %6, %cst_26 {dimension_numbers = #tpu.dot_dimension_numbers<[1], [0], [0], [1], [0, 0, 1, 1], [], []>} : vector<8x64xbf16>, vector<64x256xbf16>, vector<8x256xf32> -> vector<8x256xf32>
    %62 = arith.addf %59, %61 : vector<8x256xf32>
    %63 = arith.negf %62 : vector<8x256xf32>
    %64 = math.exp %63 : vector<8x256xf32>
    %cst_27 = arith.constant 1.000000e+00 : f32
    %65 = vector.broadcast %cst_27 : f32 to vector<8x256xf32>
    %66 = arith.addf %65, %64 : vector<8x256xf32>
    %67 = arith.divf %65, %66 : vector<8x256xf32>
    %68 = math.tanh %62 : vector<8x256xf32>
    %69 = arith.select %2, %67, %68 : vector<8x256xi1>, vector<8x256xf32>
    %70 = vector.extract_strided_slice %69 {offsets = [0, 0], sizes = [8, 64], strides = [1, 1]} : vector<8x256xf32> to vector<8x64xf32>
    %71 = vector.extract_strided_slice %69 {offsets = [0, 64], sizes = [8, 64], strides = [1, 1]} : vector<8x256xf32> to vector<8x64xf32>
    %72 = vector.extract_strided_slice %69 {offsets = [0, 128], sizes = [8, 64], strides = [1, 1]} : vector<8x256xf32> to vector<8x64xf32>
    %73 = vector.extract_strided_slice %69 {offsets = [0, 192], sizes = [8, 64], strides = [1, 1]} : vector<8x256xf32> to vector<8x64xf32>
    %74 = arith.mulf %71, %55 : vector<8x64xf32>
    %75 = arith.mulf %70, %73 : vector<8x64xf32>
    %76 = arith.addf %74, %75 : vector<8x64xf32>
    %77 = math.tanh %76 : vector<8x64xf32>
    %78 = arith.mulf %72, %77 : vector<8x64xf32>
    %c16_28 = arith.constant 16 : index
    %c0_29 = arith.constant 0 : index
    %79 = vector.load %arg9[%c16_28, %c0_29] : memref<64x64xf32, #tpu.memory_space<vmem>>, vector<8x64xf32>
    tpu.vector_store %arg9[%c16_28, %c0_29], %78 {strides = array<i32>} : memref<64x64xf32, #tpu.memory_space<vmem>>, vector<8x64xf32>,
    %c24 = arith.constant 24 : index
    %c0_30 = arith.constant 0 : index
    %80 = vector.load %arg10[%c24, %c0_30] : memref<64x256xf32, #tpu.memory_space<vmem>>, vector<8x256xf32>
    %81 = arith.truncf %78 : vector<8x64xf32> to vector<8x64xbf16>
    %cst_31 = arith.constant dense<0.000000e+00> : vector<8x256xf32>
    %82 = tpu.matmul %81, %6, %cst_31 {dimension_numbers = #tpu.dot_dimension_numbers<[1], [0], [0], [1], [0, 0, 1, 1], [], []>} : vector<8x64xbf16>, vector<64x256xbf16>, vector<8x256xf32> -> vector<8x256xf32>
    %83 = arith.addf %80, %82 : vector<8x256xf32>
    %84 = arith.negf %83 : vector<8x256xf32>
    %85 = math.exp %84 : vector<8x256xf32>
    %cst_32 = arith.constant 1.000000e+00 : f32
    %86 = vector.broadcast %cst_32 : f32 to vector<8x256xf32>
    %87 = arith.addf %86, %85 : vector<8x256xf32>
    %88 = arith.divf %86, %87 : vector<8x256xf32>
    %89 = math.tanh %83 : vector<8x256xf32>
    %90 = arith.select %2, %88, %89 : vector<8x256xi1>, vector<8x256xf32>
    %91 = vector.extract_strided_slice %90 {offsets = [0, 0], sizes = [8, 64], strides = [1, 1]} : vector<8x256xf32> to vector<8x64xf32>
    %92 = vector.extract_strided_slice %90 {offsets = [0, 64], sizes = [8, 64], strides = [1, 1]} : vector<8x256xf32> to vector<8x64xf32>
    %93 = vector.extract_strided_slice %90 {offsets = [0, 128], sizes = [8, 64], strides = [1, 1]} : vector<8x256xf32> to vector<8x64xf32>
    %94 = vector.extract_strided_slice %90 {offsets = [0, 192], sizes = [8, 64], strides = [1, 1]} : vector<8x256xf32> to vector<8x64xf32>
    %95 = arith.mulf %92, %76 : vector<8x64xf32>
    %96 = arith.mulf %91, %94 : vector<8x64xf32>
    %97 = arith.addf %95, %96 : vector<8x64xf32>
    %98 = math.tanh %97 : vector<8x64xf32>
    %99 = arith.mulf %93, %98 : vector<8x64xf32>
    %c24_33 = arith.constant 24 : index
    %c0_34 = arith.constant 0 : index
    %100 = vector.load %arg9[%c24_33, %c0_34] : memref<64x64xf32, #tpu.memory_space<vmem>>, vector<8x64xf32>
    tpu.vector_store %arg9[%c24_33, %c0_34], %99 {strides = array<i32>} : memref<64x64xf32, #tpu.memory_space<vmem>>, vector<8x64xf32>,
    %c32 = arith.constant 32 : index
    %c0_35 = arith.constant 0 : index
    %101 = vector.load %arg10[%c32, %c0_35] : memref<64x256xf32, #tpu.memory_space<vmem>>, vector<8x256xf32>
    %102 = arith.truncf %99 : vector<8x64xf32> to vector<8x64xbf16>
    %cst_36 = arith.constant dense<0.000000e+00> : vector<8x256xf32>
    %103 = tpu.matmul %102, %6, %cst_36 {dimension_numbers = #tpu.dot_dimension_numbers<[1], [0], [0], [1], [0, 0, 1, 1], [], []>} : vector<8x64xbf16>, vector<64x256xbf16>, vector<8x256xf32> -> vector<8x256xf32>
    %104 = arith.addf %101, %103 : vector<8x256xf32>
    %105 = arith.negf %104 : vector<8x256xf32>
    %106 = math.exp %105 : vector<8x256xf32>
    %cst_37 = arith.constant 1.000000e+00 : f32
    %107 = vector.broadcast %cst_37 : f32 to vector<8x256xf32>
    %108 = arith.addf %107, %106 : vector<8x256xf32>
    %109 = arith.divf %107, %108 : vector<8x256xf32>
    %110 = math.tanh %104 : vector<8x256xf32>
    %111 = arith.select %2, %109, %110 : vector<8x256xi1>, vector<8x256xf32>
    %112 = vector.extract_strided_slice %111 {offsets = [0, 0], sizes = [8, 64], strides = [1, 1]} : vector<8x256xf32> to vector<8x64xf32>
    %113 = vector.extract_strided_slice %111 {offsets = [0, 64], sizes = [8, 64], strides = [1, 1]} : vector<8x256xf32> to vector<8x64xf32>
    %114 = vector.extract_strided_slice %111 {offsets = [0, 128], sizes = [8, 64], strides = [1, 1]} : vector<8x256xf32> to vector<8x64xf32>
    %115 = vector.extract_strided_slice %111 {offsets = [0, 192], sizes = [8, 64], strides = [1, 1]} : vector<8x256xf32> to vector<8x64xf32>
    %116 = arith.mulf %113, %97 : vector<8x64xf32>
    %117 = arith.mulf %112, %115 : vector<8x64xf32>
    %118 = arith.addf %116, %117 : vector<8x64xf32>
    %119 = math.tanh %118 : vector<8x64xf32>
    %120 = arith.mulf %114, %119 : vector<8x64xf32>
    %c32_38 = arith.constant 32 : index
    %c0_39 = arith.constant 0 : index
    %121 = vector.load %arg9[%c32_38, %c0_39] : memref<64x64xf32, #tpu.memory_space<vmem>>, vector<8x64xf32>
    tpu.vector_store %arg9[%c32_38, %c0_39], %120 {strides = array<i32>} : memref<64x64xf32, #tpu.memory_space<vmem>>, vector<8x64xf32>,
    %c40 = arith.constant 40 : index
    %c0_40 = arith.constant 0 : index
    %122 = vector.load %arg10[%c40, %c0_40] : memref<64x256xf32, #tpu.memory_space<vmem>>, vector<8x256xf32>
    %123 = arith.truncf %120 : vector<8x64xf32> to vector<8x64xbf16>
    %cst_41 = arith.constant dense<0.000000e+00> : vector<8x256xf32>
    %124 = tpu.matmul %123, %6, %cst_41 {dimension_numbers = #tpu.dot_dimension_numbers<[1], [0], [0], [1], [0, 0, 1, 1], [], []>} : vector<8x64xbf16>, vector<64x256xbf16>, vector<8x256xf32> -> vector<8x256xf32>
    %125 = arith.addf %122, %124 : vector<8x256xf32>
    %126 = arith.negf %125 : vector<8x256xf32>
    %127 = math.exp %126 : vector<8x256xf32>
    %cst_42 = arith.constant 1.000000e+00 : f32
    %128 = vector.broadcast %cst_42 : f32 to vector<8x256xf32>
    %129 = arith.addf %128, %127 : vector<8x256xf32>
    %130 = arith.divf %128, %129 : vector<8x256xf32>
    %131 = math.tanh %125 : vector<8x256xf32>
    %132 = arith.select %2, %130, %131 : vector<8x256xi1>, vector<8x256xf32>
    %133 = vector.extract_strided_slice %132 {offsets = [0, 0], sizes = [8, 64], strides = [1, 1]} : vector<8x256xf32> to vector<8x64xf32>
    %134 = vector.extract_strided_slice %132 {offsets = [0, 64], sizes = [8, 64], strides = [1, 1]} : vector<8x256xf32> to vector<8x64xf32>
    %135 = vector.extract_strided_slice %132 {offsets = [0, 128], sizes = [8, 64], strides = [1, 1]} : vector<8x256xf32> to vector<8x64xf32>
    %136 = vector.extract_strided_slice %132 {offsets = [0, 192], sizes = [8, 64], strides = [1, 1]} : vector<8x256xf32> to vector<8x64xf32>
    %137 = arith.mulf %134, %118 : vector<8x64xf32>
    %138 = arith.mulf %133, %136 : vector<8x64xf32>
    %139 = arith.addf %137, %138 : vector<8x64xf32>
    %140 = math.tanh %139 : vector<8x64xf32>
    %141 = arith.mulf %135, %140 : vector<8x64xf32>
    %c40_43 = arith.constant 40 : index
    %c0_44 = arith.constant 0 : index
    %142 = vector.load %arg9[%c40_43, %c0_44] : memref<64x64xf32, #tpu.memory_space<vmem>>, vector<8x64xf32>
    tpu.vector_store %arg9[%c40_43, %c0_44], %141 {strides = array<i32>} : memref<64x64xf32, #tpu.memory_space<vmem>>, vector<8x64xf32>,
    %c48 = arith.constant 48 : index
    %c0_45 = arith.constant 0 : index
    %143 = vector.load %arg10[%c48, %c0_45] : memref<64x256xf32, #tpu.memory_space<vmem>>, vector<8x256xf32>
    %144 = arith.truncf %141 : vector<8x64xf32> to vector<8x64xbf16>
    %cst_46 = arith.constant dense<0.000000e+00> : vector<8x256xf32>
    %145 = tpu.matmul %144, %6, %cst_46 {dimension_numbers = #tpu.dot_dimension_numbers<[1], [0], [0], [1], [0, 0, 1, 1], [], []>} : vector<8x64xbf16>, vector<64x256xbf16>, vector<8x256xf32> -> vector<8x256xf32>
    %146 = arith.addf %143, %145 : vector<8x256xf32>
    %147 = arith.negf %146 : vector<8x256xf32>
    %148 = math.exp %147 : vector<8x256xf32>
    %cst_47 = arith.constant 1.000000e+00 : f32
    %149 = vector.broadcast %cst_47 : f32 to vector<8x256xf32>
    %150 = arith.addf %149, %148 : vector<8x256xf32>
    %151 = arith.divf %149, %150 : vector<8x256xf32>
    %152 = math.tanh %146 : vector<8x256xf32>
    %153 = arith.select %2, %151, %152 : vector<8x256xi1>, vector<8x256xf32>
    %154 = vector.extract_strided_slice %153 {offsets = [0, 0], sizes = [8, 64], strides = [1, 1]} : vector<8x256xf32> to vector<8x64xf32>
    %155 = vector.extract_strided_slice %153 {offsets = [0, 64], sizes = [8, 64], strides = [1, 1]} : vector<8x256xf32> to vector<8x64xf32>
    %156 = vector.extract_strided_slice %153 {offsets = [0, 128], sizes = [8, 64], strides = [1, 1]} : vector<8x256xf32> to vector<8x64xf32>
    %157 = vector.extract_strided_slice %153 {offsets = [0, 192], sizes = [8, 64], strides = [1, 1]} : vector<8x256xf32> to vector<8x64xf32>
    %158 = arith.mulf %155, %139 : vector<8x64xf32>
    %159 = arith.mulf %154, %157 : vector<8x64xf32>
    %160 = arith.addf %158, %159 : vector<8x64xf32>
    %161 = math.tanh %160 : vector<8x64xf32>
    %162 = arith.mulf %156, %161 : vector<8x64xf32>
    %c48_48 = arith.constant 48 : index
    %c0_49 = arith.constant 0 : index
    %163 = vector.load %arg9[%c48_48, %c0_49] : memref<64x64xf32, #tpu.memory_space<vmem>>, vector<8x64xf32>
    tpu.vector_store %arg9[%c48_48, %c0_49], %162 {strides = array<i32>} : memref<64x64xf32, #tpu.memory_space<vmem>>, vector<8x64xf32>,
    %c56 = arith.constant 56 : index
    %c0_50 = arith.constant 0 : index
    %164 = vector.load %arg10[%c56, %c0_50] : memref<64x256xf32, #tpu.memory_space<vmem>>, vector<8x256xf32>
    %165 = arith.truncf %162 : vector<8x64xf32> to vector<8x64xbf16>
    %cst_51 = arith.constant dense<0.000000e+00> : vector<8x256xf32>
    %166 = tpu.matmul %165, %6, %cst_51 {dimension_numbers = #tpu.dot_dimension_numbers<[1], [0], [0], [1], [0, 0, 1, 1], [], []>} : vector<8x64xbf16>, vector<64x256xbf16>, vector<8x256xf32> -> vector<8x256xf32>
    %167 = arith.addf %164, %166 : vector<8x256xf32>
    %168 = arith.negf %167 : vector<8x256xf32>
    %169 = math.exp %168 : vector<8x256xf32>
    %cst_52 = arith.constant 1.000000e+00 : f32
    %170 = vector.broadcast %cst_52 : f32 to vector<8x256xf32>
    %171 = arith.addf %170, %169 : vector<8x256xf32>
    %172 = arith.divf %170, %171 : vector<8x256xf32>
    %173 = math.tanh %167 : vector<8x256xf32>
    %174 = arith.select %2, %172, %173 : vector<8x256xi1>, vector<8x256xf32>
    %175 = vector.extract_strided_slice %174 {offsets = [0, 0], sizes = [8, 64], strides = [1, 1]} : vector<8x256xf32> to vector<8x64xf32>
    %176 = vector.extract_strided_slice %174 {offsets = [0, 64], sizes = [8, 64], strides = [1, 1]} : vector<8x256xf32> to vector<8x64xf32>
    %177 = vector.extract_strided_slice %174 {offsets = [0, 128], sizes = [8, 64], strides = [1, 1]} : vector<8x256xf32> to vector<8x64xf32>
    %178 = vector.extract_strided_slice %174 {offsets = [0, 192], sizes = [8, 64], strides = [1, 1]} : vector<8x256xf32> to vector<8x64xf32>
    %179 = arith.mulf %176, %160 : vector<8x64xf32>
    %180 = arith.mulf %175, %178 : vector<8x64xf32>
    %181 = arith.addf %179, %180 : vector<8x64xf32>
    %182 = math.tanh %181 : vector<8x64xf32>
    %183 = arith.mulf %177, %182 : vector<8x64xf32>
    %c56_53 = arith.constant 56 : index
    %c0_54 = arith.constant 0 : index
    %184 = vector.load %arg9[%c56_53, %c0_54] : memref<64x64xf32, #tpu.memory_space<vmem>>, vector<8x64xf32>
    tpu.vector_store %arg9[%c56_53, %c0_54], %183 {strides = array<i32>} : memref<64x64xf32, #tpu.memory_space<vmem>>, vector<8x64xf32>,
    %c1 = arith.constant 1 : index
    %c0_55 = arith.constant 0 : index
    %c0_56 = arith.constant 0 : index
    %185 = vector.load %arg1[%c1, %c0_55, %c0_56] : memref<5x64x256xbf16, #tpu.memory_space<vmem>>, vector<1x64x256xbf16>
    %186 = vector.shape_cast %185 : vector<1x64x256xbf16> to vector<64x256xbf16>
    %c1_57 = arith.constant 1 : index
    %c0_58 = arith.constant 0 : index
    %c0_59 = arith.constant 0 : index
    %187 = vector.load %arg2[%c1_57, %c0_58, %c0_59] : memref<5x64x256xbf16, #tpu.memory_space<vmem>>, vector<1x64x256xbf16>
    %188 = vector.shape_cast %187 : vector<1x64x256xbf16> to vector<64x256xbf16>
    %c1_60 = arith.constant 1 : index
    %c0_61 = arith.constant 0 : index
    %c0_62 = arith.constant 0 : index
    %189 = vector.load %arg3[%c1_60, %c0_61, %c0_62] : memref<5x1x256xf32, #tpu.memory_space<vmem>>, vector<1x1x256xf32>
    %190 = vector.shape_cast %189 : vector<1x1x256xf32> to vector<1x256xf32>
    %c0_63 = arith.constant 0 : index
    %c0_64 = arith.constant 0 : index
    %191 = vector.load %arg9[%c0_63, %c0_64] : memref<64x64xf32, #tpu.memory_space<vmem>>, vector<64x64xf32>
    %192 = arith.truncf %191 : vector<64x64xf32> to vector<64x64xbf16>
    %cst_65 = arith.constant dense<0.000000e+00> : vector<64x256xf32>
    %193 = tpu.matmul %192, %186, %cst_65 {dimension_numbers = #tpu.dot_dimension_numbers<[1], [0], [0], [1], [0, 0, 1, 1], [], []>} : vector<64x64xbf16>, vector<64x256xbf16>, vector<64x256xf32> -> vector<64x256xf32>
    %194 = vector.broadcast %190 : vector<1x256xf32> to vector<64x256xf32>
    %195 = arith.addf %193, %194 : vector<64x256xf32>
    %c0_66 = arith.constant 0 : index
    %c0_67 = arith.constant 0 : index
    %196 = vector.load %arg10[%c0_66, %c0_67] : memref<64x256xf32, #tpu.memory_space<vmem>>, vector<64x256xf32>
    tpu.vector_store %arg10[%c0_66, %c0_67], %195 {strides = array<i32>} : memref<64x256xf32, #tpu.memory_space<vmem>>, vector<64x256xf32>,
    %cst_68 = arith.constant 0.000000e+00 : f32
    %197 = vector.broadcast %cst_68 : f32 to vector<8x64xf32>
    %cst_69 = arith.constant 0.000000e+00 : f32
    %198 = vector.broadcast %cst_69 : f32 to vector<8x64xf32>
    %c0_70 = arith.constant 0 : index
    %c0_71 = arith.constant 0 : index
    %199 = vector.load %arg10[%c0_70, %c0_71] : memref<64x256xf32, #tpu.memory_space<vmem>>, vector<8x256xf32>
    %200 = arith.truncf %197 : vector<8x64xf32> to vector<8x64xbf16>
    %cst_72 = arith.constant dense<0.000000e+00> : vector<8x256xf32>
    %201 = tpu.matmul %200, %188, %cst_72 {dimension_numbers = #tpu.dot_dimension_numbers<[1], [0], [0], [1], [0, 0, 1, 1], [], []>} : vector<8x64xbf16>, vector<64x256xbf16>, vector<8x256xf32> -> vector<8x256xf32>
    %202 = arith.addf %199, %201 : vector<8x256xf32>
    %203 = arith.negf %202 : vector<8x256xf32>
    %204 = math.exp %203 : vector<8x256xf32>
    %cst_73 = arith.constant 1.000000e+00 : f32
    %205 = vector.broadcast %cst_73 : f32 to vector<8x256xf32>
    %206 = arith.addf %205, %204 : vector<8x256xf32>
    %207 = arith.divf %205, %206 : vector<8x256xf32>
    %208 = math.tanh %202 : vector<8x256xf32>
    %209 = arith.select %2, %207, %208 : vector<8x256xi1>, vector<8x256xf32>
    %210 = vector.extract_strided_slice %209 {offsets = [0, 0], sizes = [8, 64], strides = [1, 1]} : vector<8x256xf32> to vector<8x64xf32>
    %211 = vector.extract_strided_slice %209 {offsets = [0, 64], sizes = [8, 64], strides = [1, 1]} : vector<8x256xf32> to vector<8x64xf32>
    %212 = vector.extract_strided_slice %209 {offsets = [0, 128], sizes = [8, 64], strides = [1, 1]} : vector<8x256xf32> to vector<8x64xf32>
    %213 = vector.extract_strided_slice %209 {offsets = [0, 192], sizes = [8, 64], strides = [1, 1]} : vector<8x256xf32> to vector<8x64xf32>
    %214 = arith.mulf %211, %198 : vector<8x64xf32>
    %215 = arith.mulf %210, %213 : vector<8x64xf32>
    %216 = arith.addf %214, %215 : vector<8x64xf32>
    %217 = math.tanh %216 : vector<8x64xf32>
    %218 = arith.mulf %212, %217 : vector<8x64xf32>
    %c0_74 = arith.constant 0 : index
    %c0_75 = arith.constant 0 : index
    %219 = vector.load %arg9[%c0_74, %c0_75] : memref<64x64xf32, #tpu.memory_space<vmem>>, vector<8x64xf32>
    tpu.vector_store %arg9[%c0_74, %c0_75], %218 {strides = array<i32>} : memref<64x64xf32, #tpu.memory_space<vmem>>, vector<8x64xf32>,
    %c8_76 = arith.constant 8 : index
    %c0_77 = arith.constant 0 : index
    %220 = vector.load %arg10[%c8_76, %c0_77] : memref<64x256xf32, #tpu.memory_space<vmem>>, vector<8x256xf32>
    %221 = arith.truncf %218 : vector<8x64xf32> to vector<8x64xbf16>
    %cst_78 = arith.constant dense<0.000000e+00> : vector<8x256xf32>
    %222 = tpu.matmul %221, %188, %cst_78 {dimension_numbers = #tpu.dot_dimension_numbers<[1], [0], [0], [1], [0, 0, 1, 1], [], []>} : vector<8x64xbf16>, vector<64x256xbf16>, vector<8x256xf32> -> vector<8x256xf32>
    %223 = arith.addf %220, %222 : vector<8x256xf32>
    %224 = arith.negf %223 : vector<8x256xf32>
    %225 = math.exp %224 : vector<8x256xf32>
    %cst_79 = arith.constant 1.000000e+00 : f32
    %226 = vector.broadcast %cst_79 : f32 to vector<8x256xf32>
    %227 = arith.addf %226, %225 : vector<8x256xf32>
    %228 = arith.divf %226, %227 : vector<8x256xf32>
    %229 = math.tanh %223 : vector<8x256xf32>
    %230 = arith.select %2, %228, %229 : vector<8x256xi1>, vector<8x256xf32>
    %231 = vector.extract_strided_slice %230 {offsets = [0, 0], sizes = [8, 64], strides = [1, 1]} : vector<8x256xf32> to vector<8x64xf32>
    %232 = vector.extract_strided_slice %230 {offsets = [0, 64], sizes = [8, 64], strides = [1, 1]} : vector<8x256xf32> to vector<8x64xf32>
    %233 = vector.extract_strided_slice %230 {offsets = [0, 128], sizes = [8, 64], strides = [1, 1]} : vector<8x256xf32> to vector<8x64xf32>
    %234 = vector.extract_strided_slice %230 {offsets = [0, 192], sizes = [8, 64], strides = [1, 1]} : vector<8x256xf32> to vector<8x64xf32>
    %235 = arith.mulf %232, %216 : vector<8x64xf32>
    %236 = arith.mulf %231, %234 : vector<8x64xf32>
    %237 = arith.addf %235, %236 : vector<8x64xf32>
    %238 = math.tanh %237 : vector<8x64xf32>
    %239 = arith.mulf %233, %238 : vector<8x64xf32>
    %c8_80 = arith.constant 8 : index
    %c0_81 = arith.constant 0 : index
    %240 = vector.load %arg9[%c8_80, %c0_81] : memref<64x64xf32, #tpu.memory_space<vmem>>, vector<8x64xf32>
    tpu.vector_store %arg9[%c8_80, %c0_81], %239 {strides = array<i32>} : memref<64x64xf32, #tpu.memory_space<vmem>>, vector<8x64xf32>,
    %c16_82 = arith.constant 16 : index
    %c0_83 = arith.constant 0 : index
    %241 = vector.load %arg10[%c16_82, %c0_83] : memref<64x256xf32, #tpu.memory_space<vmem>>, vector<8x256xf32>
    %242 = arith.truncf %239 : vector<8x64xf32> to vector<8x64xbf16>
    %cst_84 = arith.constant dense<0.000000e+00> : vector<8x256xf32>
    %243 = tpu.matmul %242, %188, %cst_84 {dimension_numbers = #tpu.dot_dimension_numbers<[1], [0], [0], [1], [0, 0, 1, 1], [], []>} : vector<8x64xbf16>, vector<64x256xbf16>, vector<8x256xf32> -> vector<8x256xf32>
    %244 = arith.addf %241, %243 : vector<8x256xf32>
    %245 = arith.negf %244 : vector<8x256xf32>
    %246 = math.exp %245 : vector<8x256xf32>
    %cst_85 = arith.constant 1.000000e+00 : f32
    %247 = vector.broadcast %cst_85 : f32 to vector<8x256xf32>
    %248 = arith.addf %247, %246 : vector<8x256xf32>
    %249 = arith.divf %247, %248 : vector<8x256xf32>
    %250 = math.tanh %244 : vector<8x256xf32>
    %251 = arith.select %2, %249, %250 : vector<8x256xi1>, vector<8x256xf32>
    %252 = vector.extract_strided_slice %251 {offsets = [0, 0], sizes = [8, 64], strides = [1, 1]} : vector<8x256xf32> to vector<8x64xf32>
    %253 = vector.extract_strided_slice %251 {offsets = [0, 64], sizes = [8, 64], strides = [1, 1]} : vector<8x256xf32> to vector<8x64xf32>
    %254 = vector.extract_strided_slice %251 {offsets = [0, 128], sizes = [8, 64], strides = [1, 1]} : vector<8x256xf32> to vector<8x64xf32>
    %255 = vector.extract_strided_slice %251 {offsets = [0, 192], sizes = [8, 64], strides = [1, 1]} : vector<8x256xf32> to vector<8x64xf32>
    %256 = arith.mulf %253, %237 : vector<8x64xf32>
    %257 = arith.mulf %252, %255 : vector<8x64xf32>
    %258 = arith.addf %256, %257 : vector<8x64xf32>
    %259 = math.tanh %258 : vector<8x64xf32>
    %260 = arith.mulf %254, %259 : vector<8x64xf32>
    %c16_86 = arith.constant 16 : index
    %c0_87 = arith.constant 0 : index
    %261 = vector.load %arg9[%c16_86, %c0_87] : memref<64x64xf32, #tpu.memory_space<vmem>>, vector<8x64xf32>
    tpu.vector_store %arg9[%c16_86, %c0_87], %260 {strides = array<i32>} : memref<64x64xf32, #tpu.memory_space<vmem>>, vector<8x64xf32>,
    %c24_88 = arith.constant 24 : index
    %c0_89 = arith.constant 0 : index
    %262 = vector.load %arg10[%c24_88, %c0_89] : memref<64x256xf32, #tpu.memory_space<vmem>>, vector<8x256xf32>
    %263 = arith.truncf %260 : vector<8x64xf32> to vector<8x64xbf16>
    %cst_90 = arith.constant dense<0.000000e+00> : vector<8x256xf32>
    %264 = tpu.matmul %263, %188, %cst_90 {dimension_numbers = #tpu.dot_dimension_numbers<[1], [0], [0], [1], [0, 0, 1, 1], [], []>} : vector<8x64xbf16>, vector<64x256xbf16>, vector<8x256xf32> -> vector<8x256xf32>
    %265 = arith.addf %262, %264 : vector<8x256xf32>
    %266 = arith.negf %265 : vector<8x256xf32>
    %267 = math.exp %266 : vector<8x256xf32>
    %cst_91 = arith.constant 1.000000e+00 : f32
    %268 = vector.broadcast %cst_91 : f32 to vector<8x256xf32>
    %269 = arith.addf %268, %267 : vector<8x256xf32>
    %270 = arith.divf %268, %269 : vector<8x256xf32>
    %271 = math.tanh %265 : vector<8x256xf32>
    %272 = arith.select %2, %270, %271 : vector<8x256xi1>, vector<8x256xf32>
    %273 = vector.extract_strided_slice %272 {offsets = [0, 0], sizes = [8, 64], strides = [1, 1]} : vector<8x256xf32> to vector<8x64xf32>
    %274 = vector.extract_strided_slice %272 {offsets = [0, 64], sizes = [8, 64], strides = [1, 1]} : vector<8x256xf32> to vector<8x64xf32>
    %275 = vector.extract_strided_slice %272 {offsets = [0, 128], sizes = [8, 64], strides = [1, 1]} : vector<8x256xf32> to vector<8x64xf32>
    %276 = vector.extract_strided_slice %272 {offsets = [0, 192], sizes = [8, 64], strides = [1, 1]} : vector<8x256xf32> to vector<8x64xf32>
    %277 = arith.mulf %274, %258 : vector<8x64xf32>
    %278 = arith.mulf %273, %276 : vector<8x64xf32>
    %279 = arith.addf %277, %278 : vector<8x64xf32>
    %280 = math.tanh %279 : vector<8x64xf32>
    %281 = arith.mulf %275, %280 : vector<8x64xf32>
    %c24_92 = arith.constant 24 : index
    %c0_93 = arith.constant 0 : index
    %282 = vector.load %arg9[%c24_92, %c0_93] : memref<64x64xf32, #tpu.memory_space<vmem>>, vector<8x64xf32>
    tpu.vector_store %arg9[%c24_92, %c0_93], %281 {strides = array<i32>} : memref<64x64xf32, #tpu.memory_space<vmem>>, vector<8x64xf32>,
    %c32_94 = arith.constant 32 : index
    %c0_95 = arith.constant 0 : index
    %283 = vector.load %arg10[%c32_94, %c0_95] : memref<64x256xf32, #tpu.memory_space<vmem>>, vector<8x256xf32>
    %284 = arith.truncf %281 : vector<8x64xf32> to vector<8x64xbf16>
    %cst_96 = arith.constant dense<0.000000e+00> : vector<8x256xf32>
    %285 = tpu.matmul %284, %188, %cst_96 {dimension_numbers = #tpu.dot_dimension_numbers<[1], [0], [0], [1], [0, 0, 1, 1], [], []>} : vector<8x64xbf16>, vector<64x256xbf16>, vector<8x256xf32> -> vector<8x256xf32>
    %286 = arith.addf %283, %285 : vector<8x256xf32>
    %287 = arith.negf %286 : vector<8x256xf32>
    %288 = math.exp %287 : vector<8x256xf32>
    %cst_97 = arith.constant 1.000000e+00 : f32
    %289 = vector.broadcast %cst_97 : f32 to vector<8x256xf32>
    %290 = arith.addf %289, %288 : vector<8x256xf32>
    %291 = arith.divf %289, %290 : vector<8x256xf32>
    %292 = math.tanh %286 : vector<8x256xf32>
    %293 = arith.select %2, %291, %292 : vector<8x256xi1>, vector<8x256xf32>
    %294 = vector.extract_strided_slice %293 {offsets = [0, 0], sizes = [8, 64], strides = [1, 1]} : vector<8x256xf32> to vector<8x64xf32>
    %295 = vector.extract_strided_slice %293 {offsets = [0, 64], sizes = [8, 64], strides = [1, 1]} : vector<8x256xf32> to vector<8x64xf32>
    %296 = vector.extract_strided_slice %293 {offsets = [0, 128], sizes = [8, 64], strides = [1, 1]} : vector<8x256xf32> to vector<8x64xf32>
    %297 = vector.extract_strided_slice %293 {offsets = [0, 192], sizes = [8, 64], strides = [1, 1]} : vector<8x256xf32> to vector<8x64xf32>
    %298 = arith.mulf %295, %279 : vector<8x64xf32>
    %299 = arith.mulf %294, %297 : vector<8x64xf32>
    %300 = arith.addf %298, %299 : vector<8x64xf32>
    %301 = math.tanh %300 : vector<8x64xf32>
    %302 = arith.mulf %296, %301 : vector<8x64xf32>
    %c32_98 = arith.constant 32 : index
    %c0_99 = arith.constant 0 : index
    %303 = vector.load %arg9[%c32_98, %c0_99] : memref<64x64xf32, #tpu.memory_space<vmem>>, vector<8x64xf32>
    tpu.vector_store %arg9[%c32_98, %c0_99], %302 {strides = array<i32>} : memref<64x64xf32, #tpu.memory_space<vmem>>, vector<8x64xf32>,
    %c40_100 = arith.constant 40 : index
    %c0_101 = arith.constant 0 : index
    %304 = vector.load %arg10[%c40_100, %c0_101] : memref<64x256xf32, #tpu.memory_space<vmem>>, vector<8x256xf32>
    %305 = arith.truncf %302 : vector<8x64xf32> to vector<8x64xbf16>
    %cst_102 = arith.constant dense<0.000000e+00> : vector<8x256xf32>
    %306 = tpu.matmul %305, %188, %cst_102 {dimension_numbers = #tpu.dot_dimension_numbers<[1], [0], [0], [1], [0, 0, 1, 1], [], []>} : vector<8x64xbf16>, vector<64x256xbf16>, vector<8x256xf32> -> vector<8x256xf32>
    %307 = arith.addf %304, %306 : vector<8x256xf32>
    %308 = arith.negf %307 : vector<8x256xf32>
    %309 = math.exp %308 : vector<8x256xf32>
    %cst_103 = arith.constant 1.000000e+00 : f32
    %310 = vector.broadcast %cst_103 : f32 to vector<8x256xf32>
    %311 = arith.addf %310, %309 : vector<8x256xf32>
    %312 = arith.divf %310, %311 : vector<8x256xf32>
    %313 = math.tanh %307 : vector<8x256xf32>
    %314 = arith.select %2, %312, %313 : vector<8x256xi1>, vector<8x256xf32>
    %315 = vector.extract_strided_slice %314 {offsets = [0, 0], sizes = [8, 64], strides = [1, 1]} : vector<8x256xf32> to vector<8x64xf32>
    %316 = vector.extract_strided_slice %314 {offsets = [0, 64], sizes = [8, 64], strides = [1, 1]} : vector<8x256xf32> to vector<8x64xf32>
    %317 = vector.extract_strided_slice %314 {offsets = [0, 128], sizes = [8, 64], strides = [1, 1]} : vector<8x256xf32> to vector<8x64xf32>
    %318 = vector.extract_strided_slice %314 {offsets = [0, 192], sizes = [8, 64], strides = [1, 1]} : vector<8x256xf32> to vector<8x64xf32>
    %319 = arith.mulf %316, %300 : vector<8x64xf32>
    %320 = arith.mulf %315, %318 : vector<8x64xf32>
    %321 = arith.addf %319, %320 : vector<8x64xf32>
    %322 = math.tanh %321 : vector<8x64xf32>
    %323 = arith.mulf %317, %322 : vector<8x64xf32>
    %c40_104 = arith.constant 40 : index
    %c0_105 = arith.constant 0 : index
    %324 = vector.load %arg9[%c40_104, %c0_105] : memref<64x64xf32, #tpu.memory_space<vmem>>, vector<8x64xf32>
    tpu.vector_store %arg9[%c40_104, %c0_105], %323 {strides = array<i32>} : memref<64x64xf32, #tpu.memory_space<vmem>>, vector<8x64xf32>,
    %c48_106 = arith.constant 48 : index
    %c0_107 = arith.constant 0 : index
    %325 = vector.load %arg10[%c48_106, %c0_107] : memref<64x256xf32, #tpu.memory_space<vmem>>, vector<8x256xf32>
    %326 = arith.truncf %323 : vector<8x64xf32> to vector<8x64xbf16>
    %cst_108 = arith.constant dense<0.000000e+00> : vector<8x256xf32>
    %327 = tpu.matmul %326, %188, %cst_108 {dimension_numbers = #tpu.dot_dimension_numbers<[1], [0], [0], [1], [0, 0, 1, 1], [], []>} : vector<8x64xbf16>, vector<64x256xbf16>, vector<8x256xf32> -> vector<8x256xf32>
    %328 = arith.addf %325, %327 : vector<8x256xf32>
    %329 = arith.negf %328 : vector<8x256xf32>
    %330 = math.exp %329 : vector<8x256xf32>
    %cst_109 = arith.constant 1.000000e+00 : f32
    %331 = vector.broadcast %cst_109 : f32 to vector<8x256xf32>
    %332 = arith.addf %331, %330 : vector<8x256xf32>
    %333 = arith.divf %331, %332 : vector<8x256xf32>
    %334 = math.tanh %328 : vector<8x256xf32>
    %335 = arith.select %2, %333, %334 : vector<8x256xi1>, vector<8x256xf32>
    %336 = vector.extract_strided_slice %335 {offsets = [0, 0], sizes = [8, 64], strides = [1, 1]} : vector<8x256xf32> to vector<8x64xf32>
    %337 = vector.extract_strided_slice %335 {offsets = [0, 64], sizes = [8, 64], strides = [1, 1]} : vector<8x256xf32> to vector<8x64xf32>
    %338 = vector.extract_strided_slice %335 {offsets = [0, 128], sizes = [8, 64], strides = [1, 1]} : vector<8x256xf32> to vector<8x64xf32>
    %339 = vector.extract_strided_slice %335 {offsets = [0, 192], sizes = [8, 64], strides = [1, 1]} : vector<8x256xf32> to vector<8x64xf32>
    %340 = arith.mulf %337, %321 : vector<8x64xf32>
    %341 = arith.mulf %336, %339 : vector<8x64xf32>
    %342 = arith.addf %340, %341 : vector<8x64xf32>
    %343 = math.tanh %342 : vector<8x64xf32>
    %344 = arith.mulf %338, %343 : vector<8x64xf32>
    %c48_110 = arith.constant 48 : index
    %c0_111 = arith.constant 0 : index
    %345 = vector.load %arg9[%c48_110, %c0_111] : memref<64x64xf32, #tpu.memory_space<vmem>>, vector<8x64xf32>
    tpu.vector_store %arg9[%c48_110, %c0_111], %344 {strides = array<i32>} : memref<64x64xf32, #tpu.memory_space<vmem>>, vector<8x64xf32>,
    %c56_112 = arith.constant 56 : index
    %c0_113 = arith.constant 0 : index
    %346 = vector.load %arg10[%c56_112, %c0_113] : memref<64x256xf32, #tpu.memory_space<vmem>>, vector<8x256xf32>
    %347 = arith.truncf %344 : vector<8x64xf32> to vector<8x64xbf16>
    %cst_114 = arith.constant dense<0.000000e+00> : vector<8x256xf32>
    %348 = tpu.matmul %347, %188, %cst_114 {dimension_numbers = #tpu.dot_dimension_numbers<[1], [0], [0], [1], [0, 0, 1, 1], [], []>} : vector<8x64xbf16>, vector<64x256xbf16>, vector<8x256xf32> -> vector<8x256xf32>
    %349 = arith.addf %346, %348 : vector<8x256xf32>
    %350 = arith.negf %349 : vector<8x256xf32>
    %351 = math.exp %350 : vector<8x256xf32>
    %cst_115 = arith.constant 1.000000e+00 : f32
    %352 = vector.broadcast %cst_115 : f32 to vector<8x256xf32>
    %353 = arith.addf %352, %351 : vector<8x256xf32>
    %354 = arith.divf %352, %353 : vector<8x256xf32>
    %355 = math.tanh %349 : vector<8x256xf32>
    %356 = arith.select %2, %354, %355 : vector<8x256xi1>, vector<8x256xf32>
    %357 = vector.extract_strided_slice %356 {offsets = [0, 0], sizes = [8, 64], strides = [1, 1]} : vector<8x256xf32> to vector<8x64xf32>
    %358 = vector.extract_strided_slice %356 {offsets = [0, 64], sizes = [8, 64], strides = [1, 1]} : vector<8x256xf32> to vector<8x64xf32>
    %359 = vector.extract_strided_slice %356 {offsets = [0, 128], sizes = [8, 64], strides = [1, 1]} : vector<8x256xf32> to vector<8x64xf32>
    %360 = vector.extract_strided_slice %356 {offsets = [0, 192], sizes = [8, 64], strides = [1, 1]} : vector<8x256xf32> to vector<8x64xf32>
    %361 = arith.mulf %358, %342 : vector<8x64xf32>
    %362 = arith.mulf %357, %360 : vector<8x64xf32>
    %363 = arith.addf %361, %362 : vector<8x64xf32>
    %364 = math.tanh %363 : vector<8x64xf32>
    %365 = arith.mulf %359, %364 : vector<8x64xf32>
    %c56_116 = arith.constant 56 : index
    %c0_117 = arith.constant 0 : index
    %366 = vector.load %arg9[%c56_116, %c0_117] : memref<64x64xf32, #tpu.memory_space<vmem>>, vector<8x64xf32>
    tpu.vector_store %arg9[%c56_116, %c0_117], %365 {strides = array<i32>} : memref<64x64xf32, #tpu.memory_space<vmem>>, vector<8x64xf32>,
    %c2 = arith.constant 2 : index
    %c0_118 = arith.constant 0 : index
    %c0_119 = arith.constant 0 : index
    %367 = vector.load %arg1[%c2, %c0_118, %c0_119] : memref<5x64x256xbf16, #tpu.memory_space<vmem>>, vector<1x64x256xbf16>
    %368 = vector.shape_cast %367 : vector<1x64x256xbf16> to vector<64x256xbf16>
    %c2_120 = arith.constant 2 : index
    %c0_121 = arith.constant 0 : index
    %c0_122 = arith.constant 0 : index
    %369 = vector.load %arg2[%c2_120, %c0_121, %c0_122] : memref<5x64x256xbf16, #tpu.memory_space<vmem>>, vector<1x64x256xbf16>
    %370 = vector.shape_cast %369 : vector<1x64x256xbf16> to vector<64x256xbf16>
    %c2_123 = arith.constant 2 : index
    %c0_124 = arith.constant 0 : index
    %c0_125 = arith.constant 0 : index
    %371 = vector.load %arg3[%c2_123, %c0_124, %c0_125] : memref<5x1x256xf32, #tpu.memory_space<vmem>>, vector<1x1x256xf32>
    %372 = vector.shape_cast %371 : vector<1x1x256xf32> to vector<1x256xf32>
    %c0_126 = arith.constant 0 : index
    %c0_127 = arith.constant 0 : index
    %373 = vector.load %arg9[%c0_126, %c0_127] : memref<64x64xf32, #tpu.memory_space<vmem>>, vector<64x64xf32>
    %374 = arith.truncf %373 : vector<64x64xf32> to vector<64x64xbf16>
    %cst_128 = arith.constant dense<0.000000e+00> : vector<64x256xf32>
    %375 = tpu.matmul %374, %368, %cst_128 {dimension_numbers = #tpu.dot_dimension_numbers<[1], [0], [0], [1], [0, 0, 1, 1], [], []>} : vector<64x64xbf16>, vector<64x256xbf16>, vector<64x256xf32> -> vector<64x256xf32>
    %376 = vector.broadcast %372 : vector<1x256xf32> to vector<64x256xf32>
    %377 = arith.addf %375, %376 : vector<64x256xf32>
    %c0_129 = arith.constant 0 : index
    %c0_130 = arith.constant 0 : index
    %378 = vector.load %arg10[%c0_129, %c0_130] : memref<64x256xf32, #tpu.memory_space<vmem>>, vector<64x256xf32>
    tpu.vector_store %arg10[%c0_129, %c0_130], %377 {strides = array<i32>} : memref<64x256xf32, #tpu.memory_space<vmem>>, vector<64x256xf32>,
    %cst_131 = arith.constant 0.000000e+00 : f32
    %379 = vector.broadcast %cst_131 : f32 to vector<8x64xf32>
    %cst_132 = arith.constant 0.000000e+00 : f32
    %380 = vector.broadcast %cst_132 : f32 to vector<8x64xf32>
    %c0_133 = arith.constant 0 : index
    %c0_134 = arith.constant 0 : index
    %381 = vector.load %arg10[%c0_133, %c0_134] : memref<64x256xf32, #tpu.memory_space<vmem>>, vector<8x256xf32>
    %382 = arith.truncf %379 : vector<8x64xf32> to vector<8x64xbf16>
    %cst_135 = arith.constant dense<0.000000e+00> : vector<8x256xf32>
    %383 = tpu.matmul %382, %370, %cst_135 {dimension_numbers = #tpu.dot_dimension_numbers<[1], [0], [0], [1], [0, 0, 1, 1], [], []>} : vector<8x64xbf16>, vector<64x256xbf16>, vector<8x256xf32> -> vector<8x256xf32>
    %384 = arith.addf %381, %383 : vector<8x256xf32>
    %385 = arith.negf %384 : vector<8x256xf32>
    %386 = math.exp %385 : vector<8x256xf32>
    %cst_136 = arith.constant 1.000000e+00 : f32
    %387 = vector.broadcast %cst_136 : f32 to vector<8x256xf32>
    %388 = arith.addf %387, %386 : vector<8x256xf32>
    %389 = arith.divf %387, %388 : vector<8x256xf32>
    %390 = math.tanh %384 : vector<8x256xf32>
    %391 = arith.select %2, %389, %390 : vector<8x256xi1>, vector<8x256xf32>
    %392 = vector.extract_strided_slice %391 {offsets = [0, 0], sizes = [8, 64], strides = [1, 1]} : vector<8x256xf32> to vector<8x64xf32>
    %393 = vector.extract_strided_slice %391 {offsets = [0, 64], sizes = [8, 64], strides = [1, 1]} : vector<8x256xf32> to vector<8x64xf32>
    %394 = vector.extract_strided_slice %391 {offsets = [0, 128], sizes = [8, 64], strides = [1, 1]} : vector<8x256xf32> to vector<8x64xf32>
    %395 = vector.extract_strided_slice %391 {offsets = [0, 192], sizes = [8, 64], strides = [1, 1]} : vector<8x256xf32> to vector<8x64xf32>
    %396 = arith.mulf %393, %380 : vector<8x64xf32>
    %397 = arith.mulf %392, %395 : vector<8x64xf32>
    %398 = arith.addf %396, %397 : vector<8x64xf32>
    %399 = math.tanh %398 : vector<8x64xf32>
    %400 = arith.mulf %394, %399 : vector<8x64xf32>
    %c0_137 = arith.constant 0 : index
    %c0_138 = arith.constant 0 : index
    %401 = vector.load %arg9[%c0_137, %c0_138] : memref<64x64xf32, #tpu.memory_space<vmem>>, vector<8x64xf32>
    tpu.vector_store %arg9[%c0_137, %c0_138], %400 {strides = array<i32>} : memref<64x64xf32, #tpu.memory_space<vmem>>, vector<8x64xf32>,
    %c8_139 = arith.constant 8 : index
    %c0_140 = arith.constant 0 : index
    %402 = vector.load %arg10[%c8_139, %c0_140] : memref<64x256xf32, #tpu.memory_space<vmem>>, vector<8x256xf32>
    %403 = arith.truncf %400 : vector<8x64xf32> to vector<8x64xbf16>
    %cst_141 = arith.constant dense<0.000000e+00> : vector<8x256xf32>
    %404 = tpu.matmul %403, %370, %cst_141 {dimension_numbers = #tpu.dot_dimension_numbers<[1], [0], [0], [1], [0, 0, 1, 1], [], []>} : vector<8x64xbf16>, vector<64x256xbf16>, vector<8x256xf32> -> vector<8x256xf32>
    %405 = arith.addf %402, %404 : vector<8x256xf32>
    %406 = arith.negf %405 : vector<8x256xf32>
    %407 = math.exp %406 : vector<8x256xf32>
    %cst_142 = arith.constant 1.000000e+00 : f32
    %408 = vector.broadcast %cst_142 : f32 to vector<8x256xf32>
    %409 = arith.addf %408, %407 : vector<8x256xf32>
    %410 = arith.divf %408, %409 : vector<8x256xf32>
    %411 = math.tanh %405 : vector<8x256xf32>
    %412 = arith.select %2, %410, %411 : vector<8x256xi1>, vector<8x256xf32>
    %413 = vector.extract_strided_slice %412 {offsets = [0, 0], sizes = [8, 64], strides = [1, 1]} : vector<8x256xf32> to vector<8x64xf32>
    %414 = vector.extract_strided_slice %412 {offsets = [0, 64], sizes = [8, 64], strides = [1, 1]} : vector<8x256xf32> to vector<8x64xf32>
    %415 = vector.extract_strided_slice %412 {offsets = [0, 128], sizes = [8, 64], strides = [1, 1]} : vector<8x256xf32> to vector<8x64xf32>
    %416 = vector.extract_strided_slice %412 {offsets = [0, 192], sizes = [8, 64], strides = [1, 1]} : vector<8x256xf32> to vector<8x64xf32>
    %417 = arith.mulf %414, %398 : vector<8x64xf32>
    %418 = arith.mulf %413, %416 : vector<8x64xf32>
    %419 = arith.addf %417, %418 : vector<8x64xf32>
    %420 = math.tanh %419 : vector<8x64xf32>
    %421 = arith.mulf %415, %420 : vector<8x64xf32>
    %c8_143 = arith.constant 8 : index
    %c0_144 = arith.constant 0 : index
    %422 = vector.load %arg9[%c8_143, %c0_144] : memref<64x64xf32, #tpu.memory_space<vmem>>, vector<8x64xf32>
    tpu.vector_store %arg9[%c8_143, %c0_144], %421 {strides = array<i32>} : memref<64x64xf32, #tpu.memory_space<vmem>>, vector<8x64xf32>,
    %c16_145 = arith.constant 16 : index
    %c0_146 = arith.constant 0 : index
    %423 = vector.load %arg10[%c16_145, %c0_146] : memref<64x256xf32, #tpu.memory_space<vmem>>, vector<8x256xf32>
    %424 = arith.truncf %421 : vector<8x64xf32> to vector<8x64xbf16>
    %cst_147 = arith.constant dense<0.000000e+00> : vector<8x256xf32>
    %425 = tpu.matmul %424, %370, %cst_147 {dimension_numbers = #tpu.dot_dimension_numbers<[1], [0], [0], [1], [0, 0, 1, 1], [], []>} : vector<8x64xbf16>, vector<64x256xbf16>, vector<8x256xf32> -> vector<8x256xf32>
    %426 = arith.addf %423, %425 : vector<8x256xf32>
    %427 = arith.negf %426 : vector<8x256xf32>
    %428 = math.exp %427 : vector<8x256xf32>
    %cst_148 = arith.constant 1.000000e+00 : f32
    %429 = vector.broadcast %cst_148 : f32 to vector<8x256xf32>
    %430 = arith.addf %429, %428 : vector<8x256xf32>
    %431 = arith.divf %429, %430 : vector<8x256xf32>
    %432 = math.tanh %426 : vector<8x256xf32>
    %433 = arith.select %2, %431, %432 : vector<8x256xi1>, vector<8x256xf32>
    %434 = vector.extract_strided_slice %433 {offsets = [0, 0], sizes = [8, 64], strides = [1, 1]} : vector<8x256xf32> to vector<8x64xf32>
    %435 = vector.extract_strided_slice %433 {offsets = [0, 64], sizes = [8, 64], strides = [1, 1]} : vector<8x256xf32> to vector<8x64xf32>
    %436 = vector.extract_strided_slice %433 {offsets = [0, 128], sizes = [8, 64], strides = [1, 1]} : vector<8x256xf32> to vector<8x64xf32>
    %437 = vector.extract_strided_slice %433 {offsets = [0, 192], sizes = [8, 64], strides = [1, 1]} : vector<8x256xf32> to vector<8x64xf32>
    %438 = arith.mulf %435, %419 : vector<8x64xf32>
    %439 = arith.mulf %434, %437 : vector<8x64xf32>
    %440 = arith.addf %438, %439 : vector<8x64xf32>
    %441 = math.tanh %440 : vector<8x64xf32>
    %442 = arith.mulf %436, %441 : vector<8x64xf32>
    %c16_149 = arith.constant 16 : index
    %c0_150 = arith.constant 0 : index
    %443 = vector.load %arg9[%c16_149, %c0_150] : memref<64x64xf32, #tpu.memory_space<vmem>>, vector<8x64xf32>
    tpu.vector_store %arg9[%c16_149, %c0_150], %442 {strides = array<i32>} : memref<64x64xf32, #tpu.memory_space<vmem>>, vector<8x64xf32>,
    %c24_151 = arith.constant 24 : index
    %c0_152 = arith.constant 0 : index
    %444 = vector.load %arg10[%c24_151, %c0_152] : memref<64x256xf32, #tpu.memory_space<vmem>>, vector<8x256xf32>
    %445 = arith.truncf %442 : vector<8x64xf32> to vector<8x64xbf16>
    %cst_153 = arith.constant dense<0.000000e+00> : vector<8x256xf32>
    %446 = tpu.matmul %445, %370, %cst_153 {dimension_numbers = #tpu.dot_dimension_numbers<[1], [0], [0], [1], [0, 0, 1, 1], [], []>} : vector<8x64xbf16>, vector<64x256xbf16>, vector<8x256xf32> -> vector<8x256xf32>
    %447 = arith.addf %444, %446 : vector<8x256xf32>
    %448 = arith.negf %447 : vector<8x256xf32>
    %449 = math.exp %448 : vector<8x256xf32>
    %cst_154 = arith.constant 1.000000e+00 : f32
    %450 = vector.broadcast %cst_154 : f32 to vector<8x256xf32>
    %451 = arith.addf %450, %449 : vector<8x256xf32>
    %452 = arith.divf %450, %451 : vector<8x256xf32>
    %453 = math.tanh %447 : vector<8x256xf32>
    %454 = arith.select %2, %452, %453 : vector<8x256xi1>, vector<8x256xf32>
    %455 = vector.extract_strided_slice %454 {offsets = [0, 0], sizes = [8, 64], strides = [1, 1]} : vector<8x256xf32> to vector<8x64xf32>
    %456 = vector.extract_strided_slice %454 {offsets = [0, 64], sizes = [8, 64], strides = [1, 1]} : vector<8x256xf32> to vector<8x64xf32>
    %457 = vector.extract_strided_slice %454 {offsets = [0, 128], sizes = [8, 64], strides = [1, 1]} : vector<8x256xf32> to vector<8x64xf32>
    %458 = vector.extract_strided_slice %454 {offsets = [0, 192], sizes = [8, 64], strides = [1, 1]} : vector<8x256xf32> to vector<8x64xf32>
    %459 = arith.mulf %456, %440 : vector<8x64xf32>
    %460 = arith.mulf %455, %458 : vector<8x64xf32>
    %461 = arith.addf %459, %460 : vector<8x64xf32>
    %462 = math.tanh %461 : vector<8x64xf32>
    %463 = arith.mulf %457, %462 : vector<8x64xf32>
    %c24_155 = arith.constant 24 : index
    %c0_156 = arith.constant 0 : index
    %464 = vector.load %arg9[%c24_155, %c0_156] : memref<64x64xf32, #tpu.memory_space<vmem>>, vector<8x64xf32>
    tpu.vector_store %arg9[%c24_155, %c0_156], %463 {strides = array<i32>} : memref<64x64xf32, #tpu.memory_space<vmem>>, vector<8x64xf32>,
    %c32_157 = arith.constant 32 : index
    %c0_158 = arith.constant 0 : index
    %465 = vector.load %arg10[%c32_157, %c0_158] : memref<64x256xf32, #tpu.memory_space<vmem>>, vector<8x256xf32>
    %466 = arith.truncf %463 : vector<8x64xf32> to vector<8x64xbf16>
    %cst_159 = arith.constant dense<0.000000e+00> : vector<8x256xf32>
    %467 = tpu.matmul %466, %370, %cst_159 {dimension_numbers = #tpu.dot_dimension_numbers<[1], [0], [0], [1], [0, 0, 1, 1], [], []>} : vector<8x64xbf16>, vector<64x256xbf16>, vector<8x256xf32> -> vector<8x256xf32>
    %468 = arith.addf %465, %467 : vector<8x256xf32>
    %469 = arith.negf %468 : vector<8x256xf32>
    %470 = math.exp %469 : vector<8x256xf32>
    %cst_160 = arith.constant 1.000000e+00 : f32
    %471 = vector.broadcast %cst_160 : f32 to vector<8x256xf32>
    %472 = arith.addf %471, %470 : vector<8x256xf32>
    %473 = arith.divf %471, %472 : vector<8x256xf32>
    %474 = math.tanh %468 : vector<8x256xf32>
    %475 = arith.select %2, %473, %474 : vector<8x256xi1>, vector<8x256xf32>
    %476 = vector.extract_strided_slice %475 {offsets = [0, 0], sizes = [8, 64], strides = [1, 1]} : vector<8x256xf32> to vector<8x64xf32>
    %477 = vector.extract_strided_slice %475 {offsets = [0, 64], sizes = [8, 64], strides = [1, 1]} : vector<8x256xf32> to vector<8x64xf32>
    %478 = vector.extract_strided_slice %475 {offsets = [0, 128], sizes = [8, 64], strides = [1, 1]} : vector<8x256xf32> to vector<8x64xf32>
    %479 = vector.extract_strided_slice %475 {offsets = [0, 192], sizes = [8, 64], strides = [1, 1]} : vector<8x256xf32> to vector<8x64xf32>
    %480 = arith.mulf %477, %461 : vector<8x64xf32>
    %481 = arith.mulf %476, %479 : vector<8x64xf32>
    %482 = arith.addf %480, %481 : vector<8x64xf32>
    %483 = math.tanh %482 : vector<8x64xf32>
    %484 = arith.mulf %478, %483 : vector<8x64xf32>
    %c32_161 = arith.constant 32 : index
    %c0_162 = arith.constant 0 : index
    %485 = vector.load %arg9[%c32_161, %c0_162] : memref<64x64xf32, #tpu.memory_space<vmem>>, vector<8x64xf32>
    tpu.vector_store %arg9[%c32_161, %c0_162], %484 {strides = array<i32>} : memref<64x64xf32, #tpu.memory_space<vmem>>, vector<8x64xf32>,
    %c40_163 = arith.constant 40 : index
    %c0_164 = arith.constant 0 : index
    %486 = vector.load %arg10[%c40_163, %c0_164] : memref<64x256xf32, #tpu.memory_space<vmem>>, vector<8x256xf32>
    %487 = arith.truncf %484 : vector<8x64xf32> to vector<8x64xbf16>
    %cst_165 = arith.constant dense<0.000000e+00> : vector<8x256xf32>
    %488 = tpu.matmul %487, %370, %cst_165 {dimension_numbers = #tpu.dot_dimension_numbers<[1], [0], [0], [1], [0, 0, 1, 1], [], []>} : vector<8x64xbf16>, vector<64x256xbf16>, vector<8x256xf32> -> vector<8x256xf32>
    %489 = arith.addf %486, %488 : vector<8x256xf32>
    %490 = arith.negf %489 : vector<8x256xf32>
    %491 = math.exp %490 : vector<8x256xf32>
    %cst_166 = arith.constant 1.000000e+00 : f32
    %492 = vector.broadcast %cst_166 : f32 to vector<8x256xf32>
    %493 = arith.addf %492, %491 : vector<8x256xf32>
    %494 = arith.divf %492, %493 : vector<8x256xf32>
    %495 = math.tanh %489 : vector<8x256xf32>
    %496 = arith.select %2, %494, %495 : vector<8x256xi1>, vector<8x256xf32>
    %497 = vector.extract_strided_slice %496 {offsets = [0, 0], sizes = [8, 64], strides = [1, 1]} : vector<8x256xf32> to vector<8x64xf32>
    %498 = vector.extract_strided_slice %496 {offsets = [0, 64], sizes = [8, 64], strides = [1, 1]} : vector<8x256xf32> to vector<8x64xf32>
    %499 = vector.extract_strided_slice %496 {offsets = [0, 128], sizes = [8, 64], strides = [1, 1]} : vector<8x256xf32> to vector<8x64xf32>
    %500 = vector.extract_strided_slice %496 {offsets = [0, 192], sizes = [8, 64], strides = [1, 1]} : vector<8x256xf32> to vector<8x64xf32>
    %501 = arith.mulf %498, %482 : vector<8x64xf32>
    %502 = arith.mulf %497, %500 : vector<8x64xf32>
    %503 = arith.addf %501, %502 : vector<8x64xf32>
    %504 = math.tanh %503 : vector<8x64xf32>
    %505 = arith.mulf %499, %504 : vector<8x64xf32>
    %c40_167 = arith.constant 40 : index
    %c0_168 = arith.constant 0 : index
    %506 = vector.load %arg9[%c40_167, %c0_168] : memref<64x64xf32, #tpu.memory_space<vmem>>, vector<8x64xf32>
    tpu.vector_store %arg9[%c40_167, %c0_168], %505 {strides = array<i32>} : memref<64x64xf32, #tpu.memory_space<vmem>>, vector<8x64xf32>,
    %c48_169 = arith.constant 48 : index
    %c0_170 = arith.constant 0 : index
    %507 = vector.load %arg10[%c48_169, %c0_170] : memref<64x256xf32, #tpu.memory_space<vmem>>, vector<8x256xf32>
    %508 = arith.truncf %505 : vector<8x64xf32> to vector<8x64xbf16>
    %cst_171 = arith.constant dense<0.000000e+00> : vector<8x256xf32>
    %509 = tpu.matmul %508, %370, %cst_171 {dimension_numbers = #tpu.dot_dimension_numbers<[1], [0], [0], [1], [0, 0, 1, 1], [], []>} : vector<8x64xbf16>, vector<64x256xbf16>, vector<8x256xf32> -> vector<8x256xf32>
    %510 = arith.addf %507, %509 : vector<8x256xf32>
    %511 = arith.negf %510 : vector<8x256xf32>
    %512 = math.exp %511 : vector<8x256xf32>
    %cst_172 = arith.constant 1.000000e+00 : f32
    %513 = vector.broadcast %cst_172 : f32 to vector<8x256xf32>
    %514 = arith.addf %513, %512 : vector<8x256xf32>
    %515 = arith.divf %513, %514 : vector<8x256xf32>
    %516 = math.tanh %510 : vector<8x256xf32>
    %517 = arith.select %2, %515, %516 : vector<8x256xi1>, vector<8x256xf32>
    %518 = vector.extract_strided_slice %517 {offsets = [0, 0], sizes = [8, 64], strides = [1, 1]} : vector<8x256xf32> to vector<8x64xf32>
    %519 = vector.extract_strided_slice %517 {offsets = [0, 64], sizes = [8, 64], strides = [1, 1]} : vector<8x256xf32> to vector<8x64xf32>
    %520 = vector.extract_strided_slice %517 {offsets = [0, 128], sizes = [8, 64], strides = [1, 1]} : vector<8x256xf32> to vector<8x64xf32>
    %521 = vector.extract_strided_slice %517 {offsets = [0, 192], sizes = [8, 64], strides = [1, 1]} : vector<8x256xf32> to vector<8x64xf32>
    %522 = arith.mulf %519, %503 : vector<8x64xf32>
    %523 = arith.mulf %518, %521 : vector<8x64xf32>
    %524 = arith.addf %522, %523 : vector<8x64xf32>
    %525 = math.tanh %524 : vector<8x64xf32>
    %526 = arith.mulf %520, %525 : vector<8x64xf32>
    %c48_173 = arith.constant 48 : index
    %c0_174 = arith.constant 0 : index
    %527 = vector.load %arg9[%c48_173, %c0_174] : memref<64x64xf32, #tpu.memory_space<vmem>>, vector<8x64xf32>
    tpu.vector_store %arg9[%c48_173, %c0_174], %526 {strides = array<i32>} : memref<64x64xf32, #tpu.memory_space<vmem>>, vector<8x64xf32>,
    %c56_175 = arith.constant 56 : index
    %c0_176 = arith.constant 0 : index
    %528 = vector.load %arg10[%c56_175, %c0_176] : memref<64x256xf32, #tpu.memory_space<vmem>>, vector<8x256xf32>
    %529 = arith.truncf %526 : vector<8x64xf32> to vector<8x64xbf16>
    %cst_177 = arith.constant dense<0.000000e+00> : vector<8x256xf32>
    %530 = tpu.matmul %529, %370, %cst_177 {dimension_numbers = #tpu.dot_dimension_numbers<[1], [0], [0], [1], [0, 0, 1, 1], [], []>} : vector<8x64xbf16>, vector<64x256xbf16>, vector<8x256xf32> -> vector<8x256xf32>
    %531 = arith.addf %528, %530 : vector<8x256xf32>
    %532 = arith.negf %531 : vector<8x256xf32>
    %533 = math.exp %532 : vector<8x256xf32>
    %cst_178 = arith.constant 1.000000e+00 : f32
    %534 = vector.broadcast %cst_178 : f32 to vector<8x256xf32>
    %535 = arith.addf %534, %533 : vector<8x256xf32>
    %536 = arith.divf %534, %535 : vector<8x256xf32>
    %537 = math.tanh %531 : vector<8x256xf32>
    %538 = arith.select %2, %536, %537 : vector<8x256xi1>, vector<8x256xf32>
    %539 = vector.extract_strided_slice %538 {offsets = [0, 0], sizes = [8, 64], strides = [1, 1]} : vector<8x256xf32> to vector<8x64xf32>
    %540 = vector.extract_strided_slice %538 {offsets = [0, 64], sizes = [8, 64], strides = [1, 1]} : vector<8x256xf32> to vector<8x64xf32>
    %541 = vector.extract_strided_slice %538 {offsets = [0, 128], sizes = [8, 64], strides = [1, 1]} : vector<8x256xf32> to vector<8x64xf32>
    %542 = vector.extract_strided_slice %538 {offsets = [0, 192], sizes = [8, 64], strides = [1, 1]} : vector<8x256xf32> to vector<8x64xf32>
    %543 = arith.mulf %540, %524 : vector<8x64xf32>
    %544 = arith.mulf %539, %542 : vector<8x64xf32>
    %545 = arith.addf %543, %544 : vector<8x64xf32>
    %546 = math.tanh %545 : vector<8x64xf32>
    %547 = arith.mulf %541, %546 : vector<8x64xf32>
    %c56_179 = arith.constant 56 : index
    %c0_180 = arith.constant 0 : index
    %548 = vector.load %arg9[%c56_179, %c0_180] : memref<64x64xf32, #tpu.memory_space<vmem>>, vector<8x64xf32>
    tpu.vector_store %arg9[%c56_179, %c0_180], %547 {strides = array<i32>} : memref<64x64xf32, #tpu.memory_space<vmem>>, vector<8x64xf32>,
    %c3 = arith.constant 3 : index
    %c0_181 = arith.constant 0 : index
    %c0_182 = arith.constant 0 : index
    %549 = vector.load %arg1[%c3, %c0_181, %c0_182] : memref<5x64x256xbf16, #tpu.memory_space<vmem>>, vector<1x64x256xbf16>
    %550 = vector.shape_cast %549 : vector<1x64x256xbf16> to vector<64x256xbf16>
    %c3_183 = arith.constant 3 : index
    %c0_184 = arith.constant 0 : index
    %c0_185 = arith.constant 0 : index
    %551 = vector.load %arg2[%c3_183, %c0_184, %c0_185] : memref<5x64x256xbf16, #tpu.memory_space<vmem>>, vector<1x64x256xbf16>
    %552 = vector.shape_cast %551 : vector<1x64x256xbf16> to vector<64x256xbf16>
    %c3_186 = arith.constant 3 : index
    %c0_187 = arith.constant 0 : index
    %c0_188 = arith.constant 0 : index
    %553 = vector.load %arg3[%c3_186, %c0_187, %c0_188] : memref<5x1x256xf32, #tpu.memory_space<vmem>>, vector<1x1x256xf32>
    %554 = vector.shape_cast %553 : vector<1x1x256xf32> to vector<1x256xf32>
    %c0_189 = arith.constant 0 : index
    %c0_190 = arith.constant 0 : index
    %555 = vector.load %arg9[%c0_189, %c0_190] : memref<64x64xf32, #tpu.memory_space<vmem>>, vector<64x64xf32>
    %556 = arith.truncf %555 : vector<64x64xf32> to vector<64x64xbf16>
    %cst_191 = arith.constant dense<0.000000e+00> : vector<64x256xf32>
    %557 = tpu.matmul %556, %550, %cst_191 {dimension_numbers = #tpu.dot_dimension_numbers<[1], [0], [0], [1], [0, 0, 1, 1], [], []>} : vector<64x64xbf16>, vector<64x256xbf16>, vector<64x256xf32> -> vector<64x256xf32>
    %558 = vector.broadcast %554 : vector<1x256xf32> to vector<64x256xf32>
    %559 = arith.addf %557, %558 : vector<64x256xf32>
    %c0_192 = arith.constant 0 : index
    %c0_193 = arith.constant 0 : index
    %560 = vector.load %arg10[%c0_192, %c0_193] : memref<64x256xf32, #tpu.memory_space<vmem>>, vector<64x256xf32>
    tpu.vector_store %arg10[%c0_192, %c0_193], %559 {strides = array<i32>} : memref<64x256xf32, #tpu.memory_space<vmem>>, vector<64x256xf32>,
    %cst_194 = arith.constant 0.000000e+00 : f32
    %561 = vector.broadcast %cst_194 : f32 to vector<8x64xf32>
    %cst_195 = arith.constant 0.000000e+00 : f32
    %562 = vector.broadcast %cst_195 : f32 to vector<8x64xf32>
    %c0_196 = arith.constant 0 : index
    %c0_197 = arith.constant 0 : index
    %563 = vector.load %arg10[%c0_196, %c0_197] : memref<64x256xf32, #tpu.memory_space<vmem>>, vector<8x256xf32>
    %564 = arith.truncf %561 : vector<8x64xf32> to vector<8x64xbf16>
    %cst_198 = arith.constant dense<0.000000e+00> : vector<8x256xf32>
    %565 = tpu.matmul %564, %552, %cst_198 {dimension_numbers = #tpu.dot_dimension_numbers<[1], [0], [0], [1], [0, 0, 1, 1], [], []>} : vector<8x64xbf16>, vector<64x256xbf16>, vector<8x256xf32> -> vector<8x256xf32>
    %566 = arith.addf %563, %565 : vector<8x256xf32>
    %567 = arith.negf %566 : vector<8x256xf32>
    %568 = math.exp %567 : vector<8x256xf32>
    %cst_199 = arith.constant 1.000000e+00 : f32
    %569 = vector.broadcast %cst_199 : f32 to vector<8x256xf32>
    %570 = arith.addf %569, %568 : vector<8x256xf32>
    %571 = arith.divf %569, %570 : vector<8x256xf32>
    %572 = math.tanh %566 : vector<8x256xf32>
    %573 = arith.select %2, %571, %572 : vector<8x256xi1>, vector<8x256xf32>
    %574 = vector.extract_strided_slice %573 {offsets = [0, 0], sizes = [8, 64], strides = [1, 1]} : vector<8x256xf32> to vector<8x64xf32>
    %575 = vector.extract_strided_slice %573 {offsets = [0, 64], sizes = [8, 64], strides = [1, 1]} : vector<8x256xf32> to vector<8x64xf32>
    %576 = vector.extract_strided_slice %573 {offsets = [0, 128], sizes = [8, 64], strides = [1, 1]} : vector<8x256xf32> to vector<8x64xf32>
    %577 = vector.extract_strided_slice %573 {offsets = [0, 192], sizes = [8, 64], strides = [1, 1]} : vector<8x256xf32> to vector<8x64xf32>
    %578 = arith.mulf %575, %562 : vector<8x64xf32>
    %579 = arith.mulf %574, %577 : vector<8x64xf32>
    %580 = arith.addf %578, %579 : vector<8x64xf32>
    %581 = math.tanh %580 : vector<8x64xf32>
    %582 = arith.mulf %576, %581 : vector<8x64xf32>
    %c0_200 = arith.constant 0 : index
    %c0_201 = arith.constant 0 : index
    %583 = vector.load %arg9[%c0_200, %c0_201] : memref<64x64xf32, #tpu.memory_space<vmem>>, vector<8x64xf32>
    tpu.vector_store %arg9[%c0_200, %c0_201], %582 {strides = array<i32>} : memref<64x64xf32, #tpu.memory_space<vmem>>, vector<8x64xf32>,
    %c8_202 = arith.constant 8 : index
    %c0_203 = arith.constant 0 : index
    %584 = vector.load %arg10[%c8_202, %c0_203] : memref<64x256xf32, #tpu.memory_space<vmem>>, vector<8x256xf32>
    %585 = arith.truncf %582 : vector<8x64xf32> to vector<8x64xbf16>
    %cst_204 = arith.constant dense<0.000000e+00> : vector<8x256xf32>
    %586 = tpu.matmul %585, %552, %cst_204 {dimension_numbers = #tpu.dot_dimension_numbers<[1], [0], [0], [1], [0, 0, 1, 1], [], []>} : vector<8x64xbf16>, vector<64x256xbf16>, vector<8x256xf32> -> vector<8x256xf32>
    %587 = arith.addf %584, %586 : vector<8x256xf32>
    %588 = arith.negf %587 : vector<8x256xf32>
    %589 = math.exp %588 : vector<8x256xf32>
    %cst_205 = arith.constant 1.000000e+00 : f32
    %590 = vector.broadcast %cst_205 : f32 to vector<8x256xf32>
    %591 = arith.addf %590, %589 : vector<8x256xf32>
    %592 = arith.divf %590, %591 : vector<8x256xf32>
    %593 = math.tanh %587 : vector<8x256xf32>
    %594 = arith.select %2, %592, %593 : vector<8x256xi1>, vector<8x256xf32>
    %595 = vector.extract_strided_slice %594 {offsets = [0, 0], sizes = [8, 64], strides = [1, 1]} : vector<8x256xf32> to vector<8x64xf32>
    %596 = vector.extract_strided_slice %594 {offsets = [0, 64], sizes = [8, 64], strides = [1, 1]} : vector<8x256xf32> to vector<8x64xf32>
    %597 = vector.extract_strided_slice %594 {offsets = [0, 128], sizes = [8, 64], strides = [1, 1]} : vector<8x256xf32> to vector<8x64xf32>
    %598 = vector.extract_strided_slice %594 {offsets = [0, 192], sizes = [8, 64], strides = [1, 1]} : vector<8x256xf32> to vector<8x64xf32>
    %599 = arith.mulf %596, %580 : vector<8x64xf32>
    %600 = arith.mulf %595, %598 : vector<8x64xf32>
    %601 = arith.addf %599, %600 : vector<8x64xf32>
    %602 = math.tanh %601 : vector<8x64xf32>
    %603 = arith.mulf %597, %602 : vector<8x64xf32>
    %c8_206 = arith.constant 8 : index
    %c0_207 = arith.constant 0 : index
    %604 = vector.load %arg9[%c8_206, %c0_207] : memref<64x64xf32, #tpu.memory_space<vmem>>, vector<8x64xf32>
    tpu.vector_store %arg9[%c8_206, %c0_207], %603 {strides = array<i32>} : memref<64x64xf32, #tpu.memory_space<vmem>>, vector<8x64xf32>,
    %c16_208 = arith.constant 16 : index
    %c0_209 = arith.constant 0 : index
    %605 = vector.load %arg10[%c16_208, %c0_209] : memref<64x256xf32, #tpu.memory_space<vmem>>, vector<8x256xf32>
    %606 = arith.truncf %603 : vector<8x64xf32> to vector<8x64xbf16>
    %cst_210 = arith.constant dense<0.000000e+00> : vector<8x256xf32>
    %607 = tpu.matmul %606, %552, %cst_210 {dimension_numbers = #tpu.dot_dimension_numbers<[1], [0], [0], [1], [0, 0, 1, 1], [], []>} : vector<8x64xbf16>, vector<64x256xbf16>, vector<8x256xf32> -> vector<8x256xf32>
    %608 = arith.addf %605, %607 : vector<8x256xf32>
    %609 = arith.negf %608 : vector<8x256xf32>
    %610 = math.exp %609 : vector<8x256xf32>
    %cst_211 = arith.constant 1.000000e+00 : f32
    %611 = vector.broadcast %cst_211 : f32 to vector<8x256xf32>
    %612 = arith.addf %611, %610 : vector<8x256xf32>
    %613 = arith.divf %611, %612 : vector<8x256xf32>
    %614 = math.tanh %608 : vector<8x256xf32>
    %615 = arith.select %2, %613, %614 : vector<8x256xi1>, vector<8x256xf32>
    %616 = vector.extract_strided_slice %615 {offsets = [0, 0], sizes = [8, 64], strides = [1, 1]} : vector<8x256xf32> to vector<8x64xf32>
    %617 = vector.extract_strided_slice %615 {offsets = [0, 64], sizes = [8, 64], strides = [1, 1]} : vector<8x256xf32> to vector<8x64xf32>
    %618 = vector.extract_strided_slice %615 {offsets = [0, 128], sizes = [8, 64], strides = [1, 1]} : vector<8x256xf32> to vector<8x64xf32>
    %619 = vector.extract_strided_slice %615 {offsets = [0, 192], sizes = [8, 64], strides = [1, 1]} : vector<8x256xf32> to vector<8x64xf32>
    %620 = arith.mulf %617, %601 : vector<8x64xf32>
    %621 = arith.mulf %616, %619 : vector<8x64xf32>
    %622 = arith.addf %620, %621 : vector<8x64xf32>
    %623 = math.tanh %622 : vector<8x64xf32>
    %624 = arith.mulf %618, %623 : vector<8x64xf32>
    %c16_212 = arith.constant 16 : index
    %c0_213 = arith.constant 0 : index
    %625 = vector.load %arg9[%c16_212, %c0_213] : memref<64x64xf32, #tpu.memory_space<vmem>>, vector<8x64xf32>
    tpu.vector_store %arg9[%c16_212, %c0_213], %624 {strides = array<i32>} : memref<64x64xf32, #tpu.memory_space<vmem>>, vector<8x64xf32>,
    %c24_214 = arith.constant 24 : index
    %c0_215 = arith.constant 0 : index
    %626 = vector.load %arg10[%c24_214, %c0_215] : memref<64x256xf32, #tpu.memory_space<vmem>>, vector<8x256xf32>
    %627 = arith.truncf %624 : vector<8x64xf32> to vector<8x64xbf16>
    %cst_216 = arith.constant dense<0.000000e+00> : vector<8x256xf32>
    %628 = tpu.matmul %627, %552, %cst_216 {dimension_numbers = #tpu.dot_dimension_numbers<[1], [0], [0], [1], [0, 0, 1, 1], [], []>} : vector<8x64xbf16>, vector<64x256xbf16>, vector<8x256xf32> -> vector<8x256xf32>
    %629 = arith.addf %626, %628 : vector<8x256xf32>
    %630 = arith.negf %629 : vector<8x256xf32>
    %631 = math.exp %630 : vector<8x256xf32>
    %cst_217 = arith.constant 1.000000e+00 : f32
    %632 = vector.broadcast %cst_217 : f32 to vector<8x256xf32>
    %633 = arith.addf %632, %631 : vector<8x256xf32>
    %634 = arith.divf %632, %633 : vector<8x256xf32>
    %635 = math.tanh %629 : vector<8x256xf32>
    %636 = arith.select %2, %634, %635 : vector<8x256xi1>, vector<8x256xf32>
    %637 = vector.extract_strided_slice %636 {offsets = [0, 0], sizes = [8, 64], strides = [1, 1]} : vector<8x256xf32> to vector<8x64xf32>
    %638 = vector.extract_strided_slice %636 {offsets = [0, 64], sizes = [8, 64], strides = [1, 1]} : vector<8x256xf32> to vector<8x64xf32>
    %639 = vector.extract_strided_slice %636 {offsets = [0, 128], sizes = [8, 64], strides = [1, 1]} : vector<8x256xf32> to vector<8x64xf32>
    %640 = vector.extract_strided_slice %636 {offsets = [0, 192], sizes = [8, 64], strides = [1, 1]} : vector<8x256xf32> to vector<8x64xf32>
    %641 = arith.mulf %638, %622 : vector<8x64xf32>
    %642 = arith.mulf %637, %640 : vector<8x64xf32>
    %643 = arith.addf %641, %642 : vector<8x64xf32>
    %644 = math.tanh %643 : vector<8x64xf32>
    %645 = arith.mulf %639, %644 : vector<8x64xf32>
    %c24_218 = arith.constant 24 : index
    %c0_219 = arith.constant 0 : index
    %646 = vector.load %arg9[%c24_218, %c0_219] : memref<64x64xf32, #tpu.memory_space<vmem>>, vector<8x64xf32>
    tpu.vector_store %arg9[%c24_218, %c0_219], %645 {strides = array<i32>} : memref<64x64xf32, #tpu.memory_space<vmem>>, vector<8x64xf32>,
    %c32_220 = arith.constant 32 : index
    %c0_221 = arith.constant 0 : index
    %647 = vector.load %arg10[%c32_220, %c0_221] : memref<64x256xf32, #tpu.memory_space<vmem>>, vector<8x256xf32>
    %648 = arith.truncf %645 : vector<8x64xf32> to vector<8x64xbf16>
    %cst_222 = arith.constant dense<0.000000e+00> : vector<8x256xf32>
    %649 = tpu.matmul %648, %552, %cst_222 {dimension_numbers = #tpu.dot_dimension_numbers<[1], [0], [0], [1], [0, 0, 1, 1], [], []>} : vector<8x64xbf16>, vector<64x256xbf16>, vector<8x256xf32> -> vector<8x256xf32>
    %650 = arith.addf %647, %649 : vector<8x256xf32>
    %651 = arith.negf %650 : vector<8x256xf32>
    %652 = math.exp %651 : vector<8x256xf32>
    %cst_223 = arith.constant 1.000000e+00 : f32
    %653 = vector.broadcast %cst_223 : f32 to vector<8x256xf32>
    %654 = arith.addf %653, %652 : vector<8x256xf32>
    %655 = arith.divf %653, %654 : vector<8x256xf32>
    %656 = math.tanh %650 : vector<8x256xf32>
    %657 = arith.select %2, %655, %656 : vector<8x256xi1>, vector<8x256xf32>
    %658 = vector.extract_strided_slice %657 {offsets = [0, 0], sizes = [8, 64], strides = [1, 1]} : vector<8x256xf32> to vector<8x64xf32>
    %659 = vector.extract_strided_slice %657 {offsets = [0, 64], sizes = [8, 64], strides = [1, 1]} : vector<8x256xf32> to vector<8x64xf32>
    %660 = vector.extract_strided_slice %657 {offsets = [0, 128], sizes = [8, 64], strides = [1, 1]} : vector<8x256xf32> to vector<8x64xf32>
    %661 = vector.extract_strided_slice %657 {offsets = [0, 192], sizes = [8, 64], strides = [1, 1]} : vector<8x256xf32> to vector<8x64xf32>
    %662 = arith.mulf %659, %643 : vector<8x64xf32>
    %663 = arith.mulf %658, %661 : vector<8x64xf32>
    %664 = arith.addf %662, %663 : vector<8x64xf32>
    %665 = math.tanh %664 : vector<8x64xf32>
    %666 = arith.mulf %660, %665 : vector<8x64xf32>
    %c32_224 = arith.constant 32 : index
    %c0_225 = arith.constant 0 : index
    %667 = vector.load %arg9[%c32_224, %c0_225] : memref<64x64xf32, #tpu.memory_space<vmem>>, vector<8x64xf32>
    tpu.vector_store %arg9[%c32_224, %c0_225], %666 {strides = array<i32>} : memref<64x64xf32, #tpu.memory_space<vmem>>, vector<8x64xf32>,
    %c40_226 = arith.constant 40 : index
    %c0_227 = arith.constant 0 : index
    %668 = vector.load %arg10[%c40_226, %c0_227] : memref<64x256xf32, #tpu.memory_space<vmem>>, vector<8x256xf32>
    %669 = arith.truncf %666 : vector<8x64xf32> to vector<8x64xbf16>
    %cst_228 = arith.constant dense<0.000000e+00> : vector<8x256xf32>
    %670 = tpu.matmul %669, %552, %cst_228 {dimension_numbers = #tpu.dot_dimension_numbers<[1], [0], [0], [1], [0, 0, 1, 1], [], []>} : vector<8x64xbf16>, vector<64x256xbf16>, vector<8x256xf32> -> vector<8x256xf32>
    %671 = arith.addf %668, %670 : vector<8x256xf32>
    %672 = arith.negf %671 : vector<8x256xf32>
    %673 = math.exp %672 : vector<8x256xf32>
    %cst_229 = arith.constant 1.000000e+00 : f32
    %674 = vector.broadcast %cst_229 : f32 to vector<8x256xf32>
    %675 = arith.addf %674, %673 : vector<8x256xf32>
    %676 = arith.divf %674, %675 : vector<8x256xf32>
    %677 = math.tanh %671 : vector<8x256xf32>
    %678 = arith.select %2, %676, %677 : vector<8x256xi1>, vector<8x256xf32>
    %679 = vector.extract_strided_slice %678 {offsets = [0, 0], sizes = [8, 64], strides = [1, 1]} : vector<8x256xf32> to vector<8x64xf32>
    %680 = vector.extract_strided_slice %678 {offsets = [0, 64], sizes = [8, 64], strides = [1, 1]} : vector<8x256xf32> to vector<8x64xf32>
    %681 = vector.extract_strided_slice %678 {offsets = [0, 128], sizes = [8, 64], strides = [1, 1]} : vector<8x256xf32> to vector<8x64xf32>
    %682 = vector.extract_strided_slice %678 {offsets = [0, 192], sizes = [8, 64], strides = [1, 1]} : vector<8x256xf32> to vector<8x64xf32>
    %683 = arith.mulf %680, %664 : vector<8x64xf32>
    %684 = arith.mulf %679, %682 : vector<8x64xf32>
    %685 = arith.addf %683, %684 : vector<8x64xf32>
    %686 = math.tanh %685 : vector<8x64xf32>
    %687 = arith.mulf %681, %686 : vector<8x64xf32>
    %c40_230 = arith.constant 40 : index
    %c0_231 = arith.constant 0 : index
    %688 = vector.load %arg9[%c40_230, %c0_231] : memref<64x64xf32, #tpu.memory_space<vmem>>, vector<8x64xf32>
    tpu.vector_store %arg9[%c40_230, %c0_231], %687 {strides = array<i32>} : memref<64x64xf32, #tpu.memory_space<vmem>>, vector<8x64xf32>,
    %c48_232 = arith.constant 48 : index
    %c0_233 = arith.constant 0 : index
    %689 = vector.load %arg10[%c48_232, %c0_233] : memref<64x256xf32, #tpu.memory_space<vmem>>, vector<8x256xf32>
    %690 = arith.truncf %687 : vector<8x64xf32> to vector<8x64xbf16>
    %cst_234 = arith.constant dense<0.000000e+00> : vector<8x256xf32>
    %691 = tpu.matmul %690, %552, %cst_234 {dimension_numbers = #tpu.dot_dimension_numbers<[1], [0], [0], [1], [0, 0, 1, 1], [], []>} : vector<8x64xbf16>, vector<64x256xbf16>, vector<8x256xf32> -> vector<8x256xf32>
    %692 = arith.addf %689, %691 : vector<8x256xf32>
    %693 = arith.negf %692 : vector<8x256xf32>
    %694 = math.exp %693 : vector<8x256xf32>
    %cst_235 = arith.constant 1.000000e+00 : f32
    %695 = vector.broadcast %cst_235 : f32 to vector<8x256xf32>
    %696 = arith.addf %695, %694 : vector<8x256xf32>
    %697 = arith.divf %695, %696 : vector<8x256xf32>
    %698 = math.tanh %692 : vector<8x256xf32>
    %699 = arith.select %2, %697, %698 : vector<8x256xi1>, vector<8x256xf32>
    %700 = vector.extract_strided_slice %699 {offsets = [0, 0], sizes = [8, 64], strides = [1, 1]} : vector<8x256xf32> to vector<8x64xf32>
    %701 = vector.extract_strided_slice %699 {offsets = [0, 64], sizes = [8, 64], strides = [1, 1]} : vector<8x256xf32> to vector<8x64xf32>
    %702 = vector.extract_strided_slice %699 {offsets = [0, 128], sizes = [8, 64], strides = [1, 1]} : vector<8x256xf32> to vector<8x64xf32>
    %703 = vector.extract_strided_slice %699 {offsets = [0, 192], sizes = [8, 64], strides = [1, 1]} : vector<8x256xf32> to vector<8x64xf32>
    %704 = arith.mulf %701, %685 : vector<8x64xf32>
    %705 = arith.mulf %700, %703 : vector<8x64xf32>
    %706 = arith.addf %704, %705 : vector<8x64xf32>
    %707 = math.tanh %706 : vector<8x64xf32>
    %708 = arith.mulf %702, %707 : vector<8x64xf32>
    %c48_236 = arith.constant 48 : index
    %c0_237 = arith.constant 0 : index
    %709 = vector.load %arg9[%c48_236, %c0_237] : memref<64x64xf32, #tpu.memory_space<vmem>>, vector<8x64xf32>
    tpu.vector_store %arg9[%c48_236, %c0_237], %708 {strides = array<i32>} : memref<64x64xf32, #tpu.memory_space<vmem>>, vector<8x64xf32>,
    %c56_238 = arith.constant 56 : index
    %c0_239 = arith.constant 0 : index
    %710 = vector.load %arg10[%c56_238, %c0_239] : memref<64x256xf32, #tpu.memory_space<vmem>>, vector<8x256xf32>
    %711 = arith.truncf %708 : vector<8x64xf32> to vector<8x64xbf16>
    %cst_240 = arith.constant dense<0.000000e+00> : vector<8x256xf32>
    %712 = tpu.matmul %711, %552, %cst_240 {dimension_numbers = #tpu.dot_dimension_numbers<[1], [0], [0], [1], [0, 0, 1, 1], [], []>} : vector<8x64xbf16>, vector<64x256xbf16>, vector<8x256xf32> -> vector<8x256xf32>
    %713 = arith.addf %710, %712 : vector<8x256xf32>
    %714 = arith.negf %713 : vector<8x256xf32>
    %715 = math.exp %714 : vector<8x256xf32>
    %cst_241 = arith.constant 1.000000e+00 : f32
    %716 = vector.broadcast %cst_241 : f32 to vector<8x256xf32>
    %717 = arith.addf %716, %715 : vector<8x256xf32>
    %718 = arith.divf %716, %717 : vector<8x256xf32>
    %719 = math.tanh %713 : vector<8x256xf32>
    %720 = arith.select %2, %718, %719 : vector<8x256xi1>, vector<8x256xf32>
    %721 = vector.extract_strided_slice %720 {offsets = [0, 0], sizes = [8, 64], strides = [1, 1]} : vector<8x256xf32> to vector<8x64xf32>
    %722 = vector.extract_strided_slice %720 {offsets = [0, 64], sizes = [8, 64], strides = [1, 1]} : vector<8x256xf32> to vector<8x64xf32>
    %723 = vector.extract_strided_slice %720 {offsets = [0, 128], sizes = [8, 64], strides = [1, 1]} : vector<8x256xf32> to vector<8x64xf32>
    %724 = vector.extract_strided_slice %720 {offsets = [0, 192], sizes = [8, 64], strides = [1, 1]} : vector<8x256xf32> to vector<8x64xf32>
    %725 = arith.mulf %722, %706 : vector<8x64xf32>
    %726 = arith.mulf %721, %724 : vector<8x64xf32>
    %727 = arith.addf %725, %726 : vector<8x64xf32>
    %728 = math.tanh %727 : vector<8x64xf32>
    %729 = arith.mulf %723, %728 : vector<8x64xf32>
    %c56_242 = arith.constant 56 : index
    %c0_243 = arith.constant 0 : index
    %730 = vector.load %arg9[%c56_242, %c0_243] : memref<64x64xf32, #tpu.memory_space<vmem>>, vector<8x64xf32>
    tpu.vector_store %arg9[%c56_242, %c0_243], %729 {strides = array<i32>} : memref<64x64xf32, #tpu.memory_space<vmem>>, vector<8x64xf32>,
    %c4 = arith.constant 4 : index
    %c0_244 = arith.constant 0 : index
    %c0_245 = arith.constant 0 : index
    %731 = vector.load %arg1[%c4, %c0_244, %c0_245] : memref<5x64x256xbf16, #tpu.memory_space<vmem>>, vector<1x64x256xbf16>
    %732 = vector.shape_cast %731 : vector<1x64x256xbf16> to vector<64x256xbf16>
    %c4_246 = arith.constant 4 : index
    %c0_247 = arith.constant 0 : index
    %c0_248 = arith.constant 0 : index
    %733 = vector.load %arg2[%c4_246, %c0_247, %c0_248] : memref<5x64x256xbf16, #tpu.memory_space<vmem>>, vector<1x64x256xbf16>
    %734 = vector.shape_cast %733 : vector<1x64x256xbf16> to vector<64x256xbf16>
    %c4_249 = arith.constant 4 : index
    %c0_250 = arith.constant 0 : index
    %c0_251 = arith.constant 0 : index
    %735 = vector.load %arg3[%c4_249, %c0_250, %c0_251] : memref<5x1x256xf32, #tpu.memory_space<vmem>>, vector<1x1x256xf32>
    %736 = vector.shape_cast %735 : vector<1x1x256xf32> to vector<1x256xf32>
    %c0_252 = arith.constant 0 : index
    %c0_253 = arith.constant 0 : index
    %737 = vector.load %arg9[%c0_252, %c0_253] : memref<64x64xf32, #tpu.memory_space<vmem>>, vector<64x64xf32>
    %738 = arith.truncf %737 : vector<64x64xf32> to vector<64x64xbf16>
    %cst_254 = arith.constant dense<0.000000e+00> : vector<64x256xf32>
    %739 = tpu.matmul %738, %732, %cst_254 {dimension_numbers = #tpu.dot_dimension_numbers<[1], [0], [0], [1], [0, 0, 1, 1], [], []>} : vector<64x64xbf16>, vector<64x256xbf16>, vector<64x256xf32> -> vector<64x256xf32>
    %740 = vector.broadcast %736 : vector<1x256xf32> to vector<64x256xf32>
    %741 = arith.addf %739, %740 : vector<64x256xf32>
    %c0_255 = arith.constant 0 : index
    %c0_256 = arith.constant 0 : index
    %742 = vector.load %arg10[%c0_255, %c0_256] : memref<64x256xf32, #tpu.memory_space<vmem>>, vector<64x256xf32>
    tpu.vector_store %arg10[%c0_255, %c0_256], %741 {strides = array<i32>} : memref<64x256xf32, #tpu.memory_space<vmem>>, vector<64x256xf32>,
    %cst_257 = arith.constant 0.000000e+00 : f32
    %743 = vector.broadcast %cst_257 : f32 to vector<8x64xf32>
    %cst_258 = arith.constant 0.000000e+00 : f32
    %744 = vector.broadcast %cst_258 : f32 to vector<8x64xf32>
    %c0_259 = arith.constant 0 : index
    %c0_260 = arith.constant 0 : index
    %745 = vector.load %arg10[%c0_259, %c0_260] : memref<64x256xf32, #tpu.memory_space<vmem>>, vector<8x256xf32>
    %746 = arith.truncf %743 : vector<8x64xf32> to vector<8x64xbf16>
    %cst_261 = arith.constant dense<0.000000e+00> : vector<8x256xf32>
    %747 = tpu.matmul %746, %734, %cst_261 {dimension_numbers = #tpu.dot_dimension_numbers<[1], [0], [0], [1], [0, 0, 1, 1], [], []>} : vector<8x64xbf16>, vector<64x256xbf16>, vector<8x256xf32> -> vector<8x256xf32>
    %748 = arith.addf %745, %747 : vector<8x256xf32>
    %749 = arith.negf %748 : vector<8x256xf32>
    %750 = math.exp %749 : vector<8x256xf32>
    %cst_262 = arith.constant 1.000000e+00 : f32
    %751 = vector.broadcast %cst_262 : f32 to vector<8x256xf32>
    %752 = arith.addf %751, %750 : vector<8x256xf32>
    %753 = arith.divf %751, %752 : vector<8x256xf32>
    %754 = math.tanh %748 : vector<8x256xf32>
    %755 = arith.select %2, %753, %754 : vector<8x256xi1>, vector<8x256xf32>
    %756 = vector.extract_strided_slice %755 {offsets = [0, 0], sizes = [8, 64], strides = [1, 1]} : vector<8x256xf32> to vector<8x64xf32>
    %757 = vector.extract_strided_slice %755 {offsets = [0, 64], sizes = [8, 64], strides = [1, 1]} : vector<8x256xf32> to vector<8x64xf32>
    %758 = vector.extract_strided_slice %755 {offsets = [0, 128], sizes = [8, 64], strides = [1, 1]} : vector<8x256xf32> to vector<8x64xf32>
    %759 = vector.extract_strided_slice %755 {offsets = [0, 192], sizes = [8, 64], strides = [1, 1]} : vector<8x256xf32> to vector<8x64xf32>
    %760 = arith.mulf %757, %744 : vector<8x64xf32>
    %761 = arith.mulf %756, %759 : vector<8x64xf32>
    %762 = arith.addf %760, %761 : vector<8x64xf32>
    %763 = math.tanh %762 : vector<8x64xf32>
    %764 = arith.mulf %758, %763 : vector<8x64xf32>
    %c8_263 = arith.constant 8 : index
    %c0_264 = arith.constant 0 : index
    %765 = vector.load %arg10[%c8_263, %c0_264] : memref<64x256xf32, #tpu.memory_space<vmem>>, vector<8x256xf32>
    %766 = arith.truncf %764 : vector<8x64xf32> to vector<8x64xbf16>
    %cst_265 = arith.constant dense<0.000000e+00> : vector<8x256xf32>
    %767 = tpu.matmul %766, %734, %cst_265 {dimension_numbers = #tpu.dot_dimension_numbers<[1], [0], [0], [1], [0, 0, 1, 1], [], []>} : vector<8x64xbf16>, vector<64x256xbf16>, vector<8x256xf32> -> vector<8x256xf32>
    %768 = arith.addf %765, %767 : vector<8x256xf32>
    %769 = arith.negf %768 : vector<8x256xf32>
    %770 = math.exp %769 : vector<8x256xf32>
    %cst_266 = arith.constant 1.000000e+00 : f32
    %771 = vector.broadcast %cst_266 : f32 to vector<8x256xf32>
    %772 = arith.addf %771, %770 : vector<8x256xf32>
    %773 = arith.divf %771, %772 : vector<8x256xf32>
    %774 = math.tanh %768 : vector<8x256xf32>
    %775 = arith.select %2, %773, %774 : vector<8x256xi1>, vector<8x256xf32>
    %776 = vector.extract_strided_slice %775 {offsets = [0, 0], sizes = [8, 64], strides = [1, 1]} : vector<8x256xf32> to vector<8x64xf32>
    %777 = vector.extract_strided_slice %775 {offsets = [0, 64], sizes = [8, 64], strides = [1, 1]} : vector<8x256xf32> to vector<8x64xf32>
    %778 = vector.extract_strided_slice %775 {offsets = [0, 128], sizes = [8, 64], strides = [1, 1]} : vector<8x256xf32> to vector<8x64xf32>
    %779 = vector.extract_strided_slice %775 {offsets = [0, 192], sizes = [8, 64], strides = [1, 1]} : vector<8x256xf32> to vector<8x64xf32>
    %780 = arith.mulf %777, %762 : vector<8x64xf32>
    %781 = arith.mulf %776, %779 : vector<8x64xf32>
    %782 = arith.addf %780, %781 : vector<8x64xf32>
    %783 = math.tanh %782 : vector<8x64xf32>
    %784 = arith.mulf %778, %783 : vector<8x64xf32>
    %c16_267 = arith.constant 16 : index
    %c0_268 = arith.constant 0 : index
    %785 = vector.load %arg10[%c16_267, %c0_268] : memref<64x256xf32, #tpu.memory_space<vmem>>, vector<8x256xf32>
    %786 = arith.truncf %784 : vector<8x64xf32> to vector<8x64xbf16>
    %cst_269 = arith.constant dense<0.000000e+00> : vector<8x256xf32>
    %787 = tpu.matmul %786, %734, %cst_269 {dimension_numbers = #tpu.dot_dimension_numbers<[1], [0], [0], [1], [0, 0, 1, 1], [], []>} : vector<8x64xbf16>, vector<64x256xbf16>, vector<8x256xf32> -> vector<8x256xf32>
    %788 = arith.addf %785, %787 : vector<8x256xf32>
    %789 = arith.negf %788 : vector<8x256xf32>
    %790 = math.exp %789 : vector<8x256xf32>
    %cst_270 = arith.constant 1.000000e+00 : f32
    %791 = vector.broadcast %cst_270 : f32 to vector<8x256xf32>
    %792 = arith.addf %791, %790 : vector<8x256xf32>
    %793 = arith.divf %791, %792 : vector<8x256xf32>
    %794 = math.tanh %788 : vector<8x256xf32>
    %795 = arith.select %2, %793, %794 : vector<8x256xi1>, vector<8x256xf32>
    %796 = vector.extract_strided_slice %795 {offsets = [0, 0], sizes = [8, 64], strides = [1, 1]} : vector<8x256xf32> to vector<8x64xf32>
    %797 = vector.extract_strided_slice %795 {offsets = [0, 64], sizes = [8, 64], strides = [1, 1]} : vector<8x256xf32> to vector<8x64xf32>
    %798 = vector.extract_strided_slice %795 {offsets = [0, 128], sizes = [8, 64], strides = [1, 1]} : vector<8x256xf32> to vector<8x64xf32>
    %799 = vector.extract_strided_slice %795 {offsets = [0, 192], sizes = [8, 64], strides = [1, 1]} : vector<8x256xf32> to vector<8x64xf32>
    %800 = arith.mulf %797, %782 : vector<8x64xf32>
    %801 = arith.mulf %796, %799 : vector<8x64xf32>
    %802 = arith.addf %800, %801 : vector<8x64xf32>
    %803 = math.tanh %802 : vector<8x64xf32>
    %804 = arith.mulf %798, %803 : vector<8x64xf32>
    %c24_271 = arith.constant 24 : index
    %c0_272 = arith.constant 0 : index
    %805 = vector.load %arg10[%c24_271, %c0_272] : memref<64x256xf32, #tpu.memory_space<vmem>>, vector<8x256xf32>
    %806 = arith.truncf %804 : vector<8x64xf32> to vector<8x64xbf16>
    %cst_273 = arith.constant dense<0.000000e+00> : vector<8x256xf32>
    %807 = tpu.matmul %806, %734, %cst_273 {dimension_numbers = #tpu.dot_dimension_numbers<[1], [0], [0], [1], [0, 0, 1, 1], [], []>} : vector<8x64xbf16>, vector<64x256xbf16>, vector<8x256xf32> -> vector<8x256xf32>
    %808 = arith.addf %805, %807 : vector<8x256xf32>
    %809 = arith.negf %808 : vector<8x256xf32>
    %810 = math.exp %809 : vector<8x256xf32>
    %cst_274 = arith.constant 1.000000e+00 : f32
    %811 = vector.broadcast %cst_274 : f32 to vector<8x256xf32>
    %812 = arith.addf %811, %810 : vector<8x256xf32>
    %813 = arith.divf %811, %812 : vector<8x256xf32>
    %814 = math.tanh %808 : vector<8x256xf32>
    %815 = arith.select %2, %813, %814 : vector<8x256xi1>, vector<8x256xf32>
    %816 = vector.extract_strided_slice %815 {offsets = [0, 0], sizes = [8, 64], strides = [1, 1]} : vector<8x256xf32> to vector<8x64xf32>
    %817 = vector.extract_strided_slice %815 {offsets = [0, 64], sizes = [8, 64], strides = [1, 1]} : vector<8x256xf32> to vector<8x64xf32>
    %818 = vector.extract_strided_slice %815 {offsets = [0, 128], sizes = [8, 64], strides = [1, 1]} : vector<8x256xf32> to vector<8x64xf32>
    %819 = vector.extract_strided_slice %815 {offsets = [0, 192], sizes = [8, 64], strides = [1, 1]} : vector<8x256xf32> to vector<8x64xf32>
    %820 = arith.mulf %817, %802 : vector<8x64xf32>
    %821 = arith.mulf %816, %819 : vector<8x64xf32>
    %822 = arith.addf %820, %821 : vector<8x64xf32>
    %823 = math.tanh %822 : vector<8x64xf32>
    %824 = arith.mulf %818, %823 : vector<8x64xf32>
    %c32_275 = arith.constant 32 : index
    %c0_276 = arith.constant 0 : index
    %825 = vector.load %arg10[%c32_275, %c0_276] : memref<64x256xf32, #tpu.memory_space<vmem>>, vector<8x256xf32>
    %826 = arith.truncf %824 : vector<8x64xf32> to vector<8x64xbf16>
    %cst_277 = arith.constant dense<0.000000e+00> : vector<8x256xf32>
    %827 = tpu.matmul %826, %734, %cst_277 {dimension_numbers = #tpu.dot_dimension_numbers<[1], [0], [0], [1], [0, 0, 1, 1], [], []>} : vector<8x64xbf16>, vector<64x256xbf16>, vector<8x256xf32> -> vector<8x256xf32>
    %828 = arith.addf %825, %827 : vector<8x256xf32>
    %829 = arith.negf %828 : vector<8x256xf32>
    %830 = math.exp %829 : vector<8x256xf32>
    %cst_278 = arith.constant 1.000000e+00 : f32
    %831 = vector.broadcast %cst_278 : f32 to vector<8x256xf32>
    %832 = arith.addf %831, %830 : vector<8x256xf32>
    %833 = arith.divf %831, %832 : vector<8x256xf32>
    %834 = math.tanh %828 : vector<8x256xf32>
    %835 = arith.select %2, %833, %834 : vector<8x256xi1>, vector<8x256xf32>
    %836 = vector.extract_strided_slice %835 {offsets = [0, 0], sizes = [8, 64], strides = [1, 1]} : vector<8x256xf32> to vector<8x64xf32>
    %837 = vector.extract_strided_slice %835 {offsets = [0, 64], sizes = [8, 64], strides = [1, 1]} : vector<8x256xf32> to vector<8x64xf32>
    %838 = vector.extract_strided_slice %835 {offsets = [0, 128], sizes = [8, 64], strides = [1, 1]} : vector<8x256xf32> to vector<8x64xf32>
    %839 = vector.extract_strided_slice %835 {offsets = [0, 192], sizes = [8, 64], strides = [1, 1]} : vector<8x256xf32> to vector<8x64xf32>
    %840 = arith.mulf %837, %822 : vector<8x64xf32>
    %841 = arith.mulf %836, %839 : vector<8x64xf32>
    %842 = arith.addf %840, %841 : vector<8x64xf32>
    %843 = math.tanh %842 : vector<8x64xf32>
    %844 = arith.mulf %838, %843 : vector<8x64xf32>
    %c40_279 = arith.constant 40 : index
    %c0_280 = arith.constant 0 : index
    %845 = vector.load %arg10[%c40_279, %c0_280] : memref<64x256xf32, #tpu.memory_space<vmem>>, vector<8x256xf32>
    %846 = arith.truncf %844 : vector<8x64xf32> to vector<8x64xbf16>
    %cst_281 = arith.constant dense<0.000000e+00> : vector<8x256xf32>
    %847 = tpu.matmul %846, %734, %cst_281 {dimension_numbers = #tpu.dot_dimension_numbers<[1], [0], [0], [1], [0, 0, 1, 1], [], []>} : vector<8x64xbf16>, vector<64x256xbf16>, vector<8x256xf32> -> vector<8x256xf32>
    %848 = arith.addf %845, %847 : vector<8x256xf32>
    %849 = arith.negf %848 : vector<8x256xf32>
    %850 = math.exp %849 : vector<8x256xf32>
    %cst_282 = arith.constant 1.000000e+00 : f32
    %851 = vector.broadcast %cst_282 : f32 to vector<8x256xf32>
    %852 = arith.addf %851, %850 : vector<8x256xf32>
    %853 = arith.divf %851, %852 : vector<8x256xf32>
    %854 = math.tanh %848 : vector<8x256xf32>
    %855 = arith.select %2, %853, %854 : vector<8x256xi1>, vector<8x256xf32>
    %856 = vector.extract_strided_slice %855 {offsets = [0, 0], sizes = [8, 64], strides = [1, 1]} : vector<8x256xf32> to vector<8x64xf32>
    %857 = vector.extract_strided_slice %855 {offsets = [0, 64], sizes = [8, 64], strides = [1, 1]} : vector<8x256xf32> to vector<8x64xf32>
    %858 = vector.extract_strided_slice %855 {offsets = [0, 128], sizes = [8, 64], strides = [1, 1]} : vector<8x256xf32> to vector<8x64xf32>
    %859 = vector.extract_strided_slice %855 {offsets = [0, 192], sizes = [8, 64], strides = [1, 1]} : vector<8x256xf32> to vector<8x64xf32>
    %860 = arith.mulf %857, %842 : vector<8x64xf32>
    %861 = arith.mulf %856, %859 : vector<8x64xf32>
    %862 = arith.addf %860, %861 : vector<8x64xf32>
    %863 = math.tanh %862 : vector<8x64xf32>
    %864 = arith.mulf %858, %863 : vector<8x64xf32>
    %c48_283 = arith.constant 48 : index
    %c0_284 = arith.constant 0 : index
    %865 = vector.load %arg10[%c48_283, %c0_284] : memref<64x256xf32, #tpu.memory_space<vmem>>, vector<8x256xf32>
    %866 = arith.truncf %864 : vector<8x64xf32> to vector<8x64xbf16>
    %cst_285 = arith.constant dense<0.000000e+00> : vector<8x256xf32>
    %867 = tpu.matmul %866, %734, %cst_285 {dimension_numbers = #tpu.dot_dimension_numbers<[1], [0], [0], [1], [0, 0, 1, 1], [], []>} : vector<8x64xbf16>, vector<64x256xbf16>, vector<8x256xf32> -> vector<8x256xf32>
    %868 = arith.addf %865, %867 : vector<8x256xf32>
    %869 = arith.negf %868 : vector<8x256xf32>
    %870 = math.exp %869 : vector<8x256xf32>
    %cst_286 = arith.constant 1.000000e+00 : f32
    %871 = vector.broadcast %cst_286 : f32 to vector<8x256xf32>
    %872 = arith.addf %871, %870 : vector<8x256xf32>
    %873 = arith.divf %871, %872 : vector<8x256xf32>
    %874 = math.tanh %868 : vector<8x256xf32>
    %875 = arith.select %2, %873, %874 : vector<8x256xi1>, vector<8x256xf32>
    %876 = vector.extract_strided_slice %875 {offsets = [0, 0], sizes = [8, 64], strides = [1, 1]} : vector<8x256xf32> to vector<8x64xf32>
    %877 = vector.extract_strided_slice %875 {offsets = [0, 64], sizes = [8, 64], strides = [1, 1]} : vector<8x256xf32> to vector<8x64xf32>
    %878 = vector.extract_strided_slice %875 {offsets = [0, 128], sizes = [8, 64], strides = [1, 1]} : vector<8x256xf32> to vector<8x64xf32>
    %879 = vector.extract_strided_slice %875 {offsets = [0, 192], sizes = [8, 64], strides = [1, 1]} : vector<8x256xf32> to vector<8x64xf32>
    %880 = arith.mulf %877, %862 : vector<8x64xf32>
    %881 = arith.mulf %876, %879 : vector<8x64xf32>
    %882 = arith.addf %880, %881 : vector<8x64xf32>
    %883 = math.tanh %882 : vector<8x64xf32>
    %884 = arith.mulf %878, %883 : vector<8x64xf32>
    %c56_287 = arith.constant 56 : index
    %c0_288 = arith.constant 0 : index
    %885 = vector.load %arg10[%c56_287, %c0_288] : memref<64x256xf32, #tpu.memory_space<vmem>>, vector<8x256xf32>
    %886 = arith.truncf %884 : vector<8x64xf32> to vector<8x64xbf16>
    %cst_289 = arith.constant dense<0.000000e+00> : vector<8x256xf32>
    %887 = tpu.matmul %886, %734, %cst_289 {dimension_numbers = #tpu.dot_dimension_numbers<[1], [0], [0], [1], [0, 0, 1, 1], [], []>} : vector<8x64xbf16>, vector<64x256xbf16>, vector<8x256xf32> -> vector<8x256xf32>
    %888 = arith.addf %885, %887 : vector<8x256xf32>
    %889 = arith.negf %888 : vector<8x256xf32>
    %890 = math.exp %889 : vector<8x256xf32>
    %cst_290 = arith.constant 1.000000e+00 : f32
    %891 = vector.broadcast %cst_290 : f32 to vector<8x256xf32>
    %892 = arith.addf %891, %890 : vector<8x256xf32>
    %893 = arith.divf %891, %892 : vector<8x256xf32>
    %894 = math.tanh %888 : vector<8x256xf32>
    %895 = arith.select %2, %893, %894 : vector<8x256xi1>, vector<8x256xf32>
    %896 = vector.extract_strided_slice %895 {offsets = [0, 0], sizes = [8, 64], strides = [1, 1]} : vector<8x256xf32> to vector<8x64xf32>
    %897 = vector.extract_strided_slice %895 {offsets = [0, 64], sizes = [8, 64], strides = [1, 1]} : vector<8x256xf32> to vector<8x64xf32>
    %898 = vector.extract_strided_slice %895 {offsets = [0, 128], sizes = [8, 64], strides = [1, 1]} : vector<8x256xf32> to vector<8x64xf32>
    %899 = vector.extract_strided_slice %895 {offsets = [0, 192], sizes = [8, 64], strides = [1, 1]} : vector<8x256xf32> to vector<8x64xf32>
    %900 = arith.mulf %897, %882 : vector<8x64xf32>
    %901 = arith.mulf %896, %899 : vector<8x64xf32>
    %902 = arith.addf %900, %901 : vector<8x64xf32>
    %903 = math.tanh %902 : vector<8x64xf32>
    %904 = arith.mulf %898, %903 : vector<8x64xf32>
    %905 = arith.truncf %904 : vector<8x64xf32> to vector<8x64xbf16>
    %c0_291 = arith.constant 0 : index
    %c0_292 = arith.constant 0 : index
    %906 = vector.load %arg4[%c0_291, %c0_292] : memref<64x128xbf16, #tpu.memory_space<vmem>>, vector<64x128xbf16>
    %cst_293 = arith.constant dense<0.000000e+00> : vector<8x128xf32>
    %907 = tpu.matmul %905, %906, %cst_293 {dimension_numbers = #tpu.dot_dimension_numbers<[1], [0], [0], [1], [0, 0, 1, 1], [], []>} : vector<8x64xbf16>, vector<64x128xbf16>, vector<8x128xf32> -> vector<8x128xf32>
    %c0_294 = arith.constant 0 : index
    %c0_295 = arith.constant 0 : index
    %908 = vector.load %arg5[%c0_294, %c0_295] : memref<1x128xf32, #tpu.memory_space<vmem>>, vector<1x128xf32>
    %909 = vector.broadcast %908 : vector<1x128xf32> to vector<8x128xf32>
    %910 = arith.addf %907, %909 : vector<8x128xf32>
    %cst_296 = arith.constant 0.000000e+00 : f32
    %911 = vector.broadcast %cst_296 : f32 to vector<8x128xf32>
    %912 = arith.maximumf %910, %911 : vector<8x128xf32>
    %913 = arith.truncf %912 : vector<8x128xf32> to vector<8x128xbf16>
    %c0_297 = arith.constant 0 : index
    %c0_298 = arith.constant 0 : index
    %914 = vector.load %arg6[%c0_297, %c0_298] : memref<128x128xbf16, #tpu.memory_space<vmem>>, vector<128x128xbf16>
    %cst_299 = arith.constant dense<0.000000e+00> : vector<8x128xf32>
    %915 = tpu.matmul %913, %914, %cst_299 {dimension_numbers = #tpu.dot_dimension_numbers<[1], [0], [0], [1], [0, 0, 1, 1], [], []>} : vector<8x128xbf16>, vector<128x128xbf16>, vector<8x128xf32> -> vector<8x128xf32>
    %c0_300 = arith.constant 0 : index
    %c0_301 = arith.constant 0 : index
    %916 = vector.load %arg7[%c0_300, %c0_301] : memref<1x128xf32, #tpu.memory_space<vmem>>, vector<1x128xf32>
    %917 = vector.broadcast %916 : vector<1x128xf32> to vector<8x128xf32>
    %918 = arith.addf %915, %917 : vector<8x128xf32>
    %c0_302 = arith.constant 0 : index
    %c0_303 = arith.constant 0 : index
    %919 = vector.load %arg8[%c0_302, %c0_303] : memref<8x128xf32, #tpu.memory_space<vmem>>, vector<8x128xf32>
    tpu.vector_store %arg8[%c0_302, %c0_303], %918 {strides = array<i32>} : memref<8x128xf32, #tpu.memory_space<vmem>>, vector<8x128xf32>,
    return
  }
}

</mosaic_0001>

<bundles_post_ra>
// kernel: lstm_signal_forward.1
= control target key start
LH: loop header
LB: loop body
LE: loop exit
PB: predicated region body
PF: predicated region fallthrough
CT: control target
= control target key end

     0   :  { %13 = vsyncpa [#allocation5], 0  ;;  %s6928_s0 = inlined_call_operand.vmem [shape: f32[64,64], index: 0, kind: input, shape index: {}]   ;;  %s6929_s1 = inlined_call_operand.hbm [shape: bf16[5,64,256], index: 1, kind: input, shape index: {}]   ;;  %s6930_s2 = inlined_call_operand.hbm [shape: bf16[5,64,256], index: 2, kind: input, shape index: {}]   ;;  %s6931_s3 = inlined_call_operand.vmem [shape: f32[5,1,256], index: 3, kind: input, shape index: {}]   ;;  %s6932_s4 = inlined_call_operand.vmem [shape: bf16[64,128], index: 4, kind: input, shape index: {}]   ;;  %s6933_s5 = inlined_call_operand.vmem [shape: f32[1,128], index: 5, kind: input, shape index: {}]   ;;  %s6934_s6 = inlined_call_operand.vmem [shape: bf16[128,128], index: 6, kind: input, shape index: {}]   ;;  %s6935_s7 = inlined_call_operand.vmem [shape: f32[1,128], index: 7, kind: input, shape index: {}]   ;;  %s6936_s8 = inlined_call_operand.vmem [shape: f32[8,128], index: 8, kind: output, shape index: {}]  }
   0x1   :  { %14 = vsyncpa [#allocation7], 0  ;;  %s5627_s27 = smov [#allocation4]   ;;  %s5579_s9 = scalar_lea.hbm %s6929_s1, 5120 }
   0x2   :  { %s22_s28 = sshll.u32 %s5627_s27, 4  ;;  %p5580_p0 = scmp.ne.s32.totalorder %s6929_s1, %s5579_s9  ;;  %s23_s28 = int_to_ptr.vmem [resolvable:$true] %s22_s28 }
   0x3   :  { %p5583_p1 = scmp.lt.u32.totalorder %s5579_s9, %s6929_s1 }
   0x5   :  { %p5585_p2 = pnand %p5583_p1, %p5580_p0 }
   0x7   :  { %5588 = shalt.err (!%p5585_p2)
}
   0x8   :  { %s5589_s14 = scalar_lea.vmem %s23_s28, 5120  ;;  %p5594_p4 = scmp.lt.s32.totalorder %s23_s28, %s23_s28 }
   0x9   :  { %p5590_p3 = scmp.ne.s32.totalorder %s23_s28, %s5589_s14  ;;  %p5595_p5 = scmp.lt.s32.totalorder %s5589_s14, %s5589_s14 }
   0xb   :  { %p5596_p6 = por %p5595_p5, %p5594_p4 }
   0xd   :  { %p5597_p7 = pnand %p5596_p6, %p5590_p3 }
   0xf   :  { %5600 = shalt.err (!%p5597_p7)
}
  0x10   :  { %s5628_s15 = smov 128   ;;  %s5629_s16 = smov 8  }
  0x11   :  { %28 = dma.hbm_to_vmem [thread:$0]  %s6929_s1, 5120, %s23_s28, [#allocation5], %s5628_s15, %s5628_s15, %s5629_s16  }
  0x12   :  { %s5630_s19 = smov [#allocation6]   ;;  %s5601_s23 = scalar_lea.hbm %s6930_s2, 5120 }
  0x13   :  { %s34_s20 = sshll.u32 %s5630_s19, 4  ;;  %p5602_p8 = scmp.ne.s32.totalorder %s6930_s2, %s5601_s23  ;;  %s35_s20 = int_to_ptr.vmem [resolvable:$true] %s34_s20 }
  0x14   :  { %p5605_p9 = scmp.lt.u32.totalorder %s5601_s23, %s6930_s2 }
  0x16   :  { %p5607_p10 = pnand %p5605_p9, %p5602_p8 }
  0x18   :  { %5610 = shalt.err (!%p5607_p10)
}
  0x19   :  { %s5611_s29 = scalar_lea.vmem %s35_s20, 5120  ;;  %p5616_p12 = scmp.lt.s32.totalorder %s35_s20, %s35_s20 }
  0x1a   :  { %p5612_p11 = scmp.ne.s32.totalorder %s35_s20, %s5611_s29  ;;  %p5617_p13 = scmp.lt.s32.totalorder %s5611_s29, %s5611_s29 }
  0x1c   :  { %p5618_p0 = por %p5617_p13, %p5616_p12 }
  0x1e   :  { %p5619_p1 = pnand %p5618_p0, %p5612_p11 }
  0x20   :  { %5622 = shalt.err (!%p5619_p1)
}
  0x21   :  { %40 = dma.hbm_to_vmem [thread:$0]  %s6930_s2, 5120, %s35_s20, [#allocation7], %s5628_s15, %s5628_s15, %s5629_s16  }
  0x22   :  { %5623 = dma.done.wait [#allocation5], 5120  }
  0x23   :  { %5624 = vsyncadd [#allocation5], 4294962176 }
  0x24   :  { %5625 = dma.done.wait [#allocation7], 5120  }
  0x25   :  { %5626 = vsyncadd [#allocation7], 4294962176  ;;  %v5631_v0 = vmov 0   ;;  %v4967_v1 = vld [vmem:[#allocation4 + $0x4] ss:$8 sps:$4 sm:$0xff]   ;;  %vm143_vm0 = vcmask 523264   ;;  %v58_v20 = vlaneseq }
  0x26   :  { %188 = vmatprep.mubr.bf16.mxu0 %v5631_v0  ;;  %322 = vmatprep.mubr.bf16.mxu1 %v5631_v0  ;;  %v5706_v2 = vld [vmem:[#allocation6 + $0x4] ss:$8 sps:$4 sm:$0xff]   ;;  %v4971_v3 = vld [vmem:[#allocation4] ss:$8 sps:$4 sm:$0xff]   ;;  %v4973_v5 = vld [vmem:[#allocation4 + $0x14] ss:$8 sps:$4 sm:$0xff]  }
  0x27   :  { %156 = vmatprep.subr.bf16.mxu0 %v4967_v1  ;;  %v5708_v4 = vld [vmem:[#allocation6] ss:$8 sps:$4 sm:$0xff]   ;;  %290 = vmatprep.subr.bf16.mxu1 %v5706_v2  ;;  %v5712_v6 = vld [vmem:[#allocation6 + $0x14] ss:$8 sps:$4 sm:$0xff]   ;;  %v4977_v7 = vld [vmem:[#allocation4 + $0x10] ss:$8 sps:$4 sm:$0xff]  }
  0x28   :  { %157 = vmatpush1.bf16.msra.mxu0 %v4971_v3  ;;  %291 = vmatpush1.bf16.msra.mxu1 %v5708_v4  ;;  %v5714_v8 = vld [vmem:[#allocation6 + $0x10] ss:$8 sps:$4 sm:$0xff]   ;;  %v4979_v9 = vld [vmem:[#allocation4 + $0x24] ss:$8 sps:$4 sm:$0xff]   ;;  %v4983_v11 = vld [vmem:[#allocation4 + $0x20] ss:$8 sps:$4 sm:$0xff]  }
  0x29   :  { %158 = vmatprep.subr.bf16.mxu0 %v4973_v5  ;;  %292 = vmatprep.subr.bf16.mxu1 %v5712_v6  ;;  %v5717_v10 = vld [vmem:[#allocation6 + $0x24] ss:$8 sps:$4 sm:$0xff]   ;;  %v5719_v12 = vld [vmem:[#allocation6 + $0x20] ss:$8 sps:$4 sm:$0xff]   ;;  %v4985_v13 = vld [vmem:[#allocation4 + $0x34] ss:$8 sps:$4 sm:$0xff]  }
  0x2a   :  { %v5723_v14 = vld [vmem:[#allocation6 + $0x34] ss:$8 sps:$4 sm:$0xff]   ;;  %v4989_v15 = vld [vmem:[#allocation4 + $0x30] ss:$8 sps:$4 sm:$0xff]   ;;  %v80_v17 = vld [vmem:[%s6928_s0] sm:$0xff]  ;;  %v94_v21 = vshrl.u32 %v58_v20, 7 }
  0x2b   :  { %v5725_v16 = vld [vmem:[#allocation6 + $0x30] ss:$8 sps:$4 sm:$0xff]   ;;  %v81_v18 = vld [vmem:[%s6928_s0 + $0x8] sm:$0xff]  ;;  %v79_v23 = vld [vmem:[%s6931_s3] sm:$0x3]  ;;  %v59_v42 = vand.u32 127, %v58_v20 }
  0x2c   :  { %159 = vmatpush1.bf16.msra.mxu0 %v4977_v7  ;;  %293 = vmatpush1.bf16.msra.mxu1 %v5714_v8  ;;  %v88_v19 = vpack.c.bf16 %v81_v18, %v80_v17  ;;  %v5758_v22 = vsub.s32 0, %v94_v21  ;;  %v5763_v24 = vsub.s32 1, %v94_v21  ;;  %s5632_s13 = smov 64   ;;  %vm5634_vm2 = vmmov 0  }
  0x2d   :  { %160 = vmatprep.subr.bf16.mxu0 %v4979_v9  ;;  %294 = vmatprep.subr.bf16.mxu1 %v5717_v10  ;;  %v5773_v43 = vadd.s32 128, %v59_v42 }
  0x2e   :  { %v5766_v25 = vrot.slane %v79_v23, %v5758_v22  ;;  %v5769_v26 = vrot.slane %v79_v23, %v5763_v24 }
  0x2f   :  { %vm62_vm1 = vcmp.lt.s32.totalorder %v5773_v43, 192  ;;  %v5088_v43 = vld [vmem:[%s6932_s4 + $0x8] sm:$0xff]  }
  0x30   :  { %161 = vmatpush1.bf16.msra.mxu0 %v4983_v11  ;;  %295 = vmatpush1.bf16.msra.mxu1 %v5719_v12 }
  0x31   :  { %162 = vmatprep.subr.bf16.mxu0 %v4985_v13  ;;  %296 = vmatprep.subr.bf16.mxu1 %v5723_v14 }
  0x34   :  { %163 = vmatpush1.bf16.msra.mxu0 %v4989_v15  ;;  %297 = vmatpush1.bf16.msra.mxu1 %v5725_v16 }
  0x35   :  { %373 = vmatprep.subr.bf16.mxu1 %v5706_v2  ;;  %456 = vmatprep.subr.bf16.mxu0 %v5706_v2 }
  0x37   :  { %4687 = vmatmul.mubr.msk.bf16.vlgmr.msra.gmra.mrb[0].mxu0 %vm143_vm0, %v88_v19  ;;  %323 = vmatmul.mubr.bf16.vlgmr.msra.gmra.mrb[0].mxu1 %v5631_v0 }
  0x38   :  { %374 = vmatpush1.bf16.msra.mxu1 %v5708_v4  ;;  %405 = vmatprep.mubr.bf16.mxu1 %v5631_v0 }
  0x39   :  { %375 = vmatprep.subr.bf16.mxu1 %v5712_v6  ;;  %457 = vmatpush1.bf16.msra.mxu0 %v5708_v4 }
  0x3a   :  { %198 = vmatprep.mubr.bf16.mxu0 %v5631_v0  ;;  %458 = vmatprep.subr.bf16.mxu0 %v5712_v6 }
  0x3c   :  { %376 = vmatpush1.bf16.msra.mxu1 %v5714_v8 }
  0x3d   :  { %377 = vmatprep.subr.bf16.mxu1 %v5717_v10  ;;  %459 = vmatpush1.bf16.msra.mxu0 %v5714_v8 }
  0x3e   :  { %460 = vmatprep.subr.bf16.mxu0 %v5717_v10 }
  0x40   :  { %378 = vmatpush1.bf16.msra.mxu1 %v5719_v12 }
  0x41   :  { %379 = vmatprep.subr.bf16.mxu1 %v5723_v14  ;;  %461 = vmatpush1.bf16.msra.mxu0 %v5719_v12 }
  0x42   :  { %462 = vmatprep.subr.bf16.mxu0 %v5723_v14 }
  0x44   :  { %380 = vmatpush1.bf16.msra.mxu1 %v5725_v16 }
  0x45   :  { %463 = vmatpush1.bf16.msra.mxu0 %v5725_v16  ;;  %539 = vmatprep.subr.bf16.mxu1 %v5706_v2 }
  0x46   :  { %622 = vmatprep.subr.bf16.mxu0 %v5706_v2 }
 0x10a   :  { %v190_v27 = vpop.f32.mrb[0].mxu0  ;;  %v324_v28 = vpop.f32.mrb[0].mxu1 }
 0x10b   :  { %v191_v29 = vadd.f32 %v190_v27, %v5766_v25  ;;  %v192_v30 = vpop.f32.mrb[1].mxu0  ;;  %v326_v31 = vpop.f32.mrb[1].mxu1 }
 0x10c   :  { %v193_v32 = vadd.f32 %v192_v30, %v5769_v26  ;;  %v194_v33 = vpop.f32.mrb[2].mxu0  ;;  %v328_v34 = vpop.f32.mrb[2].mxu1  ;;  %v83_v30 = vld [vmem:[%s6928_s0 + $0x18] sm:$0xff] }
 0x10d   :  { %v331_v35 = vadd.f32 %v324_v28, %v191_v29  ;;  %v196_v36 = vpop.f32.mrb[3].mxu0  ;;  %v329_v37 = vpop.f32.mrb[3].mxu1  ;;  %v195_v60 = vadd.f32 %v194_v33, %v5766_v25  ;;  %v82_v29 = vld [vmem:[%s6928_s0 + $0x10] sm:$0xff]  ;;  %v85_v33 = vld [vmem:[%s6928_s0 + $0x28] sm:$0xff] }
 0x10e   :  { %v332_v38 = vadd.f32 %v326_v31, %v193_v32  ;;  %v197_v61 = vadd.f32 %v196_v36, %v5769_v26  ;;  %v89_v31 = vpack.c.bf16 %v83_v30, %v82_v29  ;;  %v84_v32 = vld [vmem:[%s6928_s0 + $0x20] sm:$0xff]  ;;  %v87_v36 = vld [vmem:[%s6928_s0 + $0x38] sm:$0xff] }
 0x10f   :  { %v4699_v47 = vmul.f32 -1.442695, %v331_v35  ;;  %v90_v34 = vpack.c.bf16 %v85_v33, %v84_v32  ;;  %v86_v35 = vld [vmem:[%s6928_s0 + $0x30] sm:$0xff] }
 0x110   :  { %v4700_v39 = vmul.f32 -1.442695, %v332_v38  ;;  %4688 = vmatmul.mubr.msk.bf16.gmra.mrb[4].mxu0 %vm143_vm0, %v89_v31  ;;  %v91_v37 = vpack.c.bf16 %v87_v36, %v86_v35 }
 0x111   :  { %208 = vmatprep.mubr.bf16.mxu0 %v5631_v0 }
 0x112   :  { %5099 = vpow2.f32 %v4700_v39 }
 0x113   :  { %5101 = vtanh.f32 %v332_v38 }
 0x118   :  { %4689 = vmatmul.mubr.msk.bf16.gmra.mrb[8].mxu0 %vm143_vm0, %v90_v34 }
 0x119   :  { %218 = vmatprep.mubr.bf16.mxu0 %v5631_v0 }
 0x11c   :  { %v5100_v40 = vpop.eup %5099 }
 0x11d   :  { %v340_v41 = vadd.f32 1.0, %v5100_v40  ;;  %v5102_v44 = vpop.eup %5101 }
 0x11f   :  { %5103 = vrcp.f32 %v340_v41 }
 0x120   :  { %5105 = vpow2.f32 %v4699_v47  ;;  %4690 = vmatmul.mubr.msk.bf16.gmra.mrb[12].mxu0 %vm143_vm0, %v91_v37 }
 0x121   :  { %488 = vmatprep.mubr.bf16.mxu0 %v5631_v0 }
 0x129   :  { %v5104_v45 = vpop.eup %5103 }
 0x12a   :  { %v348_v46 = vsel %vm62_vm1, %v5104_v45, %v5102_v44  ;;  %v5106_v48 = vpop.eup %5105 }
 0x12b   :  { %351 = vrot.lane.b32.xlu0 %v348_v46, %s5632_s13  ;;  %v339_v49 = vadd.f32 1.0, %v5106_v48 }
 0x12d   :  { %5107 = vrcp.f32 %v339_v49 }
 0x137   :  { %v5108_v50 = vpop.eup %5107 }
 0x138   :  { %v349_v53 = vmul.f32 0.0, %v5108_v50 }
 0x19d   :  { %v352_v51 = vpop.permute.xlu0 %351 }
 0x19e   :  { %v354_v52 = vmul.f32 %v5108_v50, %v352_v51 }
 0x1a0   :  { %356 = vrot.lane.b32.xlu0 %v354_v52, %s5632_s13 }
 0x1e3   :  { %v200_v42 = vpop.f32.mrb[4].mxu0 }
 0x1e4   :  { %v202_v44 = vpop.f32.mrb[5].mxu0 }
 0x1e5   :  { %v5823_v45 = vpop.f32.mrb[6].mxu0 }
 0x1e6   :  { %v205_v34 = vadd.f32 %v5823_v45, %v5766_v25 }
 0x212   :  { %v357_v54 = vpop.permute.xlu0 %356 }
 0x213   :  { %v359_v55 = vadd.f32 %v357_v54, %v349_v53 }
 0x215   :  { %5109 = vtanh.f32 %v359_v55 }
 0x21f   :  { %v5110_v56 = vpop.eup %5109 }
 0x220   :  { %362 = vrot.lane.b32.xlu1 %v5110_v56, %s5632_s13 }
 0x292   :  { %v363_v57 = vpop.permute.xlu1 %362 }
 0x293   :  { %v365_v58 = vmul.f32 %v363_v57, %v348_v46  ;;  %v5825_v46 = vpop.f32.mrb[7].mxu0 }
 0x294   :  { %v5827_v47 = vpop.f32.mrb[8].mxu0  ;;  %v207_v35 = vadd.f32 %v5825_v46, %v5769_v26 }
 0x295   :  { %366 = vst.msk [vmem:[#allocation2] sm:$0xff] %vm143_vm0, %v365_v58  ;;  %v369_v59 = vpack.c.bf16 %v365_v58, %v365_v58  ;;  %v5829_v48 = vpop.f32.mrb[9].mxu0  ;;  %v201_v58 = vadd.f32 %v200_v42, %v5766_v25 }
 0x296   :  { %v5831_v49 = vpop.f32.mrb[10].mxu0 }
 0x297   :  { %4701 = vmatmul.mubr.msk.bf16.vlgmr.msra.gmra.mrb[4].mxu1 %vm143_vm0, %v369_v59  ;;  %v5833_v50 = vpop.f32.mrb[11].mxu0  ;;  %v203_v59 = vadd.f32 %v202_v44, %v5769_v26 }
 0x298   :  { %540 = vmatpush1.bf16.msra.mxu1 %v5708_v4  ;;  %571 = vmatprep.mubr.bf16.mxu1 %v5631_v0  ;;  %v5835_v51 = vpop.f32.mrb[12].mxu0 }
 0x299   :  { %541 = vmatprep.subr.bf16.mxu1 %v5712_v6  ;;  %v5837_v52 = vpop.f32.mrb[13].mxu0 }
 0x29a   :  { %v5839_v53 = vpop.f32.mrb[14].mxu0 }
 0x29b   :  { %v5841_v54 = vpop.f32.mrb[15].mxu0 }
 0x29c   :  { %542 = vmatpush1.bf16.msra.mxu1 %v5714_v8 }
 0x29d   :  { %543 = vmatprep.subr.bf16.mxu1 %v5717_v10 }
 0x2a0   :  { %544 = vmatpush1.bf16.msra.mxu1 %v5719_v12 }
 0x2a1   :  { %545 = vmatprep.subr.bf16.mxu1 %v5723_v14 }
 0x2a4   :  { %546 = vmatpush1.bf16.msra.mxu1 %v5725_v16 }
 0x2a5   :  { %705 = vmatprep.subr.bf16.mxu1 %v5706_v2 }
 0x36a   :  { %v407_v62 = vpop.f32.mrb[4].mxu1 }
 0x36b   :  { %v414_v63 = vadd.f32 %v407_v62, %v195_v60  ;;  %v409_v1 = vpop.f32.mrb[5].mxu1 }
 0x36c   :  { %v415_v3 = vadd.f32 %v409_v1, %v197_v61  ;;  %v411_v5 = vpop.f32.mrb[6].mxu1 }
 0x36d   :  { %v412_v7 = vpop.f32.mrb[7].mxu1  ;;  %v4702_v19 = vmul.f32 -1.442695, %v414_v63 }
 0x36e   :  { %v4703_v9 = vmul.f32 -1.442695, %v415_v3 }
 0x370   :  { %5111 = vpow2.f32 %v4703_v9 }
 0x371   :  { %5113 = vtanh.f32 %v415_v3 }
 0x37a   :  { %v5112_v11 = vpop.eup %5111 }
 0x37b   :  { %v423_v13 = vadd.f32 1.0, %v5112_v11  ;;  %v5114_v15 = vpop.eup %5113 }
 0x37d   :  { %5115 = vrcp.f32 %v423_v13 }
 0x37e   :  { %5117 = vpow2.f32 %v4702_v19 }
 0x387   :  { %v5116_v17 = vpop.eup %5115 }
 0x388   :  { %v431_v18 = vsel %vm62_vm1, %v5116_v17, %v5114_v15  ;;  %v5118_v20 = vpop.eup %5117 }
 0x389   :  { %434 = vrot.lane.b32.xlu1 %v431_v18, %s5632_s13  ;;  %v422_v21 = vadd.f32 1.0, %v5118_v20 }
 0x38b   :  { %5119 = vrcp.f32 %v422_v21 }
 0x395   :  { %v5120_v23 = vpop.eup %5119 }
 0x396   :  { %v432_v38 = vmul.f32 %v5120_v23, %v359_v55 }
 0x3fb   :  { %v435_v27 = vpop.permute.xlu1 %434 }
 0x3fc   :  { %v437_v28 = vmul.f32 %v5120_v23, %v435_v27 }
 0x3fe   :  { %439 = vrot.lane.b32.xlu0 %v437_v28, %s5632_s13 }
 0x470   :  { %v440_v39 = vpop.permute.xlu0 %439 }
 0x471   :  { %v442_v40 = vadd.f32 %v440_v39, %v432_v38 }
 0x473   :  { %5121 = vtanh.f32 %v442_v40 }
 0x47d   :  { %v5122_v41 = vpop.eup %5121 }
 0x47e   :  { %445 = vrot.lane.b32.xlu1 %v5122_v41, %s5632_s13 }
 0x4f0   :  { %v446_v55 = vpop.permute.xlu1 %445 }
 0x4f1   :  { %v448_v56 = vmul.f32 %v446_v55, %v431_v18 }
 0x4f3   :  { %449 = vst.msk [vmem:[#allocation2 + $0x8] sm:$0xff] %vm143_vm0, %v448_v56  ;;  %v452_v57 = vpack.c.bf16 %v448_v56, %v448_v56 }
 0x4f5   :  { %4704 = vmatmul.mubr.msk.bf16.vlgmr.msra.gmra.mrb[16].mxu0 %vm143_vm0, %v452_v57 }
 0x4f6   :  { %623 = vmatpush1.bf16.msra.mxu0 %v5708_v4  ;;  %654 = vmatprep.mubr.bf16.mxu0 %v5631_v0 }
 0x4f7   :  { %624 = vmatprep.subr.bf16.mxu0 %v5712_v6 }
 0x4fa   :  { %625 = vmatpush1.bf16.msra.mxu0 %v5714_v8 }
 0x4fb   :  { %626 = vmatprep.subr.bf16.mxu0 %v5717_v10 }
 0x4fe   :  { %627 = vmatpush1.bf16.msra.mxu0 %v5719_v12 }
 0x4ff   :  { %628 = vmatprep.subr.bf16.mxu0 %v5723_v14 }
 0x502   :  { %629 = vmatpush1.bf16.msra.mxu0 %v5725_v16 }
 0x503   :  { %788 = vmatprep.subr.bf16.mxu0 %v5706_v2 }
 0x5c8   :  { %v490_v60 = vpop.f32.mrb[16].mxu0 }
 0x5c9   :  { %v497_v61 = vadd.f32 %v490_v60, %v201_v58  ;;  %v492_v62 = vpop.f32.mrb[17].mxu0 }
 0x5ca   :  { %v498_v63 = vadd.f32 %v492_v62, %v203_v59  ;;  %v494_v1 = vpop.f32.mrb[18].mxu0 }
 0x5cb   :  { %v495_v3 = vpop.f32.mrb[19].mxu0  ;;  %v4705_v17 = vmul.f32 -1.442695, %v497_v61 }
 0x5cc   :  { %v4706_v5 = vmul.f32 -1.442695, %v498_v63 }
 0x5ce   :  { %5123 = vpow2.f32 %v4706_v5 }
 0x5cf   :  { %5125 = vtanh.f32 %v498_v63 }
 0x5d8   :  { %v5124_v7 = vpop.eup %5123 }
 0x5d9   :  { %v506_v9 = vadd.f32 1.0, %v5124_v7  ;;  %v5126_v11 = vpop.eup %5125 }
 0x5db   :  { %5127 = vrcp.f32 %v506_v9 }
 0x5dc   :  { %5129 = vpow2.f32 %v4705_v17 }
 0x5e5   :  { %v5128_v13 = vpop.eup %5127 }
 0x5e6   :  { %v514_v15 = vsel %vm62_vm1, %v5128_v13, %v5126_v11  ;;  %v5130_v18 = vpop.eup %5129  ;;  %v211_v11 = vadd.f32 %v5827_v47, %v5766_v25  ;;  %v213_v13 = vadd.f32 %v5829_v48, %v5769_v26 }
 0x5e7   :  { %517 = vrot.lane.b32.xlu0 %v514_v15, %s5632_s13  ;;  %v505_v19 = vadd.f32 1.0, %v5130_v18 }
 0x5e9   :  { %5131 = vrcp.f32 %v505_v19 }
 0x5f3   :  { %v5132_v20 = vpop.eup %5131 }
 0x5f4   :  { %v515_v27 = vmul.f32 %v5132_v20, %v442_v40 }
 0x659   :  { %v518_v21 = vpop.permute.xlu0 %517 }
 0x65a   :  { %v520_v23 = vmul.f32 %v5132_v20, %v518_v21 }
 0x65c   :  { %522 = vrot.lane.b32.xlu1 %v520_v23, %s5632_s13 }
 0x6ce   :  { %v523_v28 = vpop.permute.xlu1 %522 }
 0x6cf   :  { %v525_v29 = vadd.f32 %v523_v28, %v515_v27 }
 0x6d1   :  { %5133 = vtanh.f32 %v525_v29 }
 0x6db   :  { %v5134_v30 = vpop.eup %5133 }
 0x6dc   :  { %528 = vrot.lane.b32.xlu0 %v5134_v30, %s5632_s13 }
 0x74e   :  { %v529_v31 = vpop.permute.xlu0 %528 }
 0x74f   :  { %v531_v32 = vmul.f32 %v529_v31, %v514_v15 }
 0x751   :  { %532 = vst.msk [vmem:[#allocation2 + $0x10] sm:$0xff] %vm143_vm0, %v531_v32  ;;  %v535_v33 = vpack.c.bf16 %v531_v32, %v531_v32 }
 0x753   :  { %4707 = vmatmul.mubr.msk.bf16.vlgmr.msra.gmra.mrb[8].mxu1 %vm143_vm0, %v535_v33 }
 0x754   :  { %706 = vmatpush1.bf16.msra.mxu1 %v5708_v4  ;;  %737 = vmatprep.mubr.bf16.mxu1 %v5631_v0 }
 0x755   :  { %707 = vmatprep.subr.bf16.mxu1 %v5712_v6 }
 0x758   :  { %708 = vmatpush1.bf16.msra.mxu1 %v5714_v8 }
 0x759   :  { %709 = vmatprep.subr.bf16.mxu1 %v5717_v10 }
 0x75c   :  { %710 = vmatpush1.bf16.msra.mxu1 %v5719_v12 }
 0x75d   :  { %711 = vmatprep.subr.bf16.mxu1 %v5723_v14 }
 0x760   :  { %712 = vmatpush1.bf16.msra.mxu1 %v5725_v16 }
 0x761   :  { %871 = vmatprep.subr.bf16.mxu1 %v5706_v2 }
 0x826   :  { %v573_v36 = vpop.f32.mrb[8].mxu1 }
 0x827   :  { %v580_v37 = vadd.f32 %v573_v36, %v205_v34  ;;  %v575_v38 = vpop.f32.mrb[9].mxu1 }
 0x828   :  { %v581_v39 = vadd.f32 %v575_v38, %v207_v35  ;;  %v577_v40 = vpop.f32.mrb[10].mxu1 }
 0x829   :  { %v578_v41 = vpop.f32.mrb[11].mxu1  ;;  %v4708_v46 = vmul.f32 -1.442695, %v580_v37 }
 0x82a   :  { %v4709_v42 = vmul.f32 -1.442695, %v581_v39 }
 0x82c   :  { %5135 = vpow2.f32 %v4709_v42 }
 0x82d   :  { %5137 = vtanh.f32 %v581_v39 }
 0x836   :  { %v5136_v44 = vpop.eup %5135 }
 0x837   :  { %v589_v55 = vadd.f32 1.0, %v5136_v44  ;;  %v5138_v56 = vpop.eup %5137  ;;  %v215_v44 = vadd.f32 %v5831_v49, %v5766_v25 }
 0x839   :  { %5139 = vrcp.f32 %v589_v55 }
 0x83a   :  { %5141 = vpow2.f32 %v4708_v46 }
 0x843   :  { %v5140_v2 = vpop.eup %5139 }
 0x844   :  { %v597_v45 = vsel %vm62_vm1, %v5140_v2, %v5138_v56  ;;  %v5142_v57 = vpop.eup %5141 }
 0x845   :  { %600 = vrot.lane.b32.xlu1 %v597_v45, %s5632_s13  ;;  %v588_v58 = vadd.f32 1.0, %v5142_v57 }
 0x847   :  { %5143 = vrcp.f32 %v588_v58 }
 0x851   :  { %v5144_v59 = vpop.eup %5143 }
 0x852   :  { %v598_v62 = vmul.f32 %v5144_v59, %v525_v29 }
 0x8b7   :  { %v601_v60 = vpop.permute.xlu1 %600 }
 0x8b8   :  { %v603_v61 = vmul.f32 %v5144_v59, %v601_v60 }
 0x8ba   :  { %605 = vrot.lane.b32.xlu0 %v603_v61, %s5632_s13 }
 0x92c   :  { %v606_v63 = vpop.permute.xlu0 %605 }
 0x92d   :  { %v608_v1 = vadd.f32 %v606_v63, %v598_v62 }
 0x92f   :  { %5145 = vtanh.f32 %v608_v1 }
 0x939   :  { %v5146_v3 = vpop.eup %5145 }
 0x93a   :  { %611 = vrot.lane.b32.xlu1 %v5146_v3, %s5632_s13  ;;  %v4993_v3 = vld [vmem:[#allocation4 + $0x44] ss:$8 sps:$4 sm:$0xff]  }
 0x9ac   :  { %v612_v5 = vpop.permute.xlu1 %611 }
 0x9ad   :  { %v614_v7 = vmul.f32 %v612_v5, %v597_v45 }
 0x9af   :  { %615 = vst.msk [vmem:[#allocation2 + $0x18] sm:$0xff] %vm143_vm0, %v614_v7  ;;  %v618_v9 = vpack.c.bf16 %v614_v7, %v614_v7 }
 0x9b1   :  { %4710 = vmatmul.mubr.msk.bf16.vlgmr.msra.gmra.mrb[20].mxu0 %vm143_vm0, %v618_v9 }
 0x9b2   :  { %789 = vmatpush1.bf16.msra.mxu0 %v5708_v4  ;;  %820 = vmatprep.mubr.bf16.mxu0 %v5631_v0 }
 0x9b3   :  { %790 = vmatprep.subr.bf16.mxu0 %v5712_v6 }
 0x9b6   :  { %791 = vmatpush1.bf16.msra.mxu0 %v5714_v8 }
 0x9b7   :  { %792 = vmatprep.subr.bf16.mxu0 %v5717_v10 }
 0x9ba   :  { %793 = vmatpush1.bf16.msra.mxu0 %v5719_v12 }
 0x9bb   :  { %794 = vmatprep.subr.bf16.mxu0 %v5723_v14 }
 0x9be   :  { %795 = vmatpush1.bf16.msra.mxu0 %v5725_v16 }
 0x9bf   :  { %1043 = vmatprep.subr.bf16.mxu0 %v4993_v3 }
 0xa84   :  { %v656_v15 = vpop.f32.mrb[20].mxu0 }
 0xa85   :  { %v663_v17 = vadd.f32 %v656_v15, %v211_v11  ;;  %v658_v18 = vpop.f32.mrb[21].mxu0  ;;  %v4991_v11 = vld [vmem:[#allocation4 + $0x40] ss:$8 sps:$4 sm:$0xff]   ;;  %v4996_v15 = vld [vmem:[#allocation4 + $0x54] ss:$8 sps:$4 sm:$0xff]  }
 0xa86   :  { %v664_v19 = vadd.f32 %v658_v18, %v213_v13  ;;  %v660_v20 = vpop.f32.mrb[22].mxu0  ;;  %v4999_v18 = vld [vmem:[#allocation4 + $0x64] ss:$8 sps:$4 sm:$0xff]  }
 0xa87   :  { %v661_v21 = vpop.f32.mrb[23].mxu0  ;;  %v4711_v48 = vmul.f32 -1.442695, %v663_v17  ;;  %v4994_v17 = vld [vmem:[#allocation4 + $0x50] ss:$8 sps:$4 sm:$0xff]  }
 0xa88   :  { %v4712_v23 = vmul.f32 -1.442695, %v664_v19  ;;  %v5002_v20 = vld [vmem:[#allocation4 + $0x74] ss:$8 sps:$4 sm:$0xff]   ;;  %v5000_v21 = vld [vmem:[#allocation4 + $0x70] ss:$8 sps:$4 sm:$0xff]  }
 0xa8a   :  { %5147 = vpow2.f32 %v4712_v23  ;;  %v969_v23 = vld [vmem:[#allocation2 + $0x8] sm:$0xff] }
 0xa8b   :  { %5149 = vtanh.f32 %v664_v19  ;;  %v4997_v19 = vld [vmem:[#allocation4 + $0x60] ss:$8 sps:$4 sm:$0xff]  }
 0xa94   :  { %v5148_v27 = vpop.eup %5147 }
 0xa95   :  { %v672_v28 = vadd.f32 1.0, %v5148_v27  ;;  %v5150_v29 = vpop.eup %5149  ;;  %v968_v27 = vld [vmem:[#allocation2] sm:$0xff] }
 0xa97   :  { %5151 = vrcp.f32 %v672_v28  ;;  %v976_v28 = vpack.c.bf16 %v969_v23, %v968_v27  ;;  %v225_v23 = vadd.f32 %v5839_v53, %v5766_v25  ;;  %v227_v27 = vadd.f32 %v5841_v54, %v5769_v26 }
 0xa98   :  { %5153 = vpow2.f32 %v4711_v48 }
 0xaa1   :  { %v5152_v30 = vpop.eup %5151 }
 0xaa2   :  { %v680_v47 = vsel %vm62_vm1, %v5152_v30, %v5150_v29  ;;  %v5154_v31 = vpop.eup %5153  ;;  %v971_v29 = vld [vmem:[#allocation2 + $0x18] sm:$0xff]  ;;  %v970_v30 = vld [vmem:[#allocation2 + $0x10] sm:$0xff] }
 0xaa3   :  { %683 = vrot.lane.b32.xlu0 %v680_v47, %s5632_s13  ;;  %v671_v32 = vadd.f32 1.0, %v5154_v31 }
 0xaa5   :  { %5155 = vrcp.f32 %v671_v32 }
 0xaaf   :  { %v5156_v33 = vpop.eup %5155 }
 0xab0   :  { %v681_v36 = vmul.f32 %v5156_v33, %v608_v1 }
 0xb15   :  { %v684_v34 = vpop.permute.xlu0 %683 }
 0xb16   :  { %v686_v35 = vmul.f32 %v5156_v33, %v684_v34  ;;  %v221_v33 = vadd.f32 %v5835_v51, %v5766_v25  ;;  %v223_v34 = vadd.f32 %v5837_v52, %v5769_v26 }
 0xb18   :  { %688 = vrot.lane.b32.xlu1 %v686_v35, %s5632_s13 }
 0xb8a   :  { %v689_v37 = vpop.permute.xlu1 %688 }
 0xb8b   :  { %v691_v38 = vadd.f32 %v689_v37, %v681_v36 }
 0xb8d   :  { %5157 = vtanh.f32 %v691_v38 }
 0xb97   :  { %v5158_v39 = vpop.eup %5157 }
 0xb98   :  { %694 = vrot.lane.b32.xlu0 %v5158_v39, %s5632_s13 }
 0xc0a   :  { %v695_v40 = vpop.permute.xlu0 %694 }
 0xc0b   :  { %v697_v41 = vmul.f32 %v695_v40, %v680_v47  ;;  %v977_v47 = vpack.c.bf16 %v971_v29, %v970_v30 }
 0xc0d   :  { %698 = vst.msk [vmem:[#allocation2 + $0x20] sm:$0xff] %vm143_vm0, %v697_v41  ;;  %v701_v42 = vpack.c.bf16 %v697_v41, %v697_v41 }
 0xc0f   :  { %4713 = vmatmul.mubr.msk.bf16.vlgmr.msra.gmra.mrb[12].mxu1 %vm143_vm0, %v701_v42 }
 0xc10   :  { %872 = vmatpush1.bf16.msra.mxu1 %v5708_v4  ;;  %903 = vmatprep.mubr.bf16.mxu1 %v5631_v0  ;;  %v217_v4 = vadd.f32 %v5833_v50, %v5769_v26 }
 0xc11   :  { %873 = vmatprep.subr.bf16.mxu1 %v5712_v6 }
 0xc14   :  { %874 = vmatpush1.bf16.msra.mxu1 %v5714_v8  ;;  %v972_v31 = vld [vmem:[#allocation2 + $0x20] sm:$0xff] }
 0xc15   :  { %875 = vmatprep.subr.bf16.mxu1 %v5717_v10 }
 0xc18   :  { %876 = vmatpush1.bf16.msra.mxu1 %v5719_v12 }
 0xc19   :  { %877 = vmatprep.subr.bf16.mxu1 %v5723_v14 }
 0xc1c   :  { %878 = vmatpush1.bf16.msra.mxu1 %v5725_v16 }
 0xce2   :  { %v739_v55 = vpop.f32.mrb[12].mxu1 }
 0xce3   :  { %v746_v56 = vadd.f32 %v739_v55, %v215_v44  ;;  %v741_v2 = vpop.f32.mrb[13].mxu1 }
 0xce4   :  { %v747_v6 = vadd.f32 %v741_v2, %v217_v4  ;;  %v743_v45 = vpop.f32.mrb[14].mxu1 }
 0xce5   :  { %v744_v8 = vpop.f32.mrb[15].mxu1  ;;  %v4714_v50 = vmul.f32 -1.442695, %v746_v56 }
 0xce6   :  { %v4715_v46 = vmul.f32 -1.442695, %v747_v6 }
 0xce8   :  { %5159 = vpow2.f32 %v4715_v46 }
 0xce9   :  { %5161 = vtanh.f32 %v747_v6 }
 0xcf2   :  { %v5160_v10 = vpop.eup %5159 }
 0xcf3   :  { %v755_v12 = vadd.f32 1.0, %v5160_v10  ;;  %v5162_v14 = vpop.eup %5161 }
 0xcf5   :  { %5163 = vrcp.f32 %v755_v12 }
 0xcf6   :  { %5165 = vpow2.f32 %v4714_v50 }
 0xcff   :  { %v5164_v16 = vpop.eup %5163 }
 0xd00   :  { %v763_v49 = vsel %vm62_vm1, %v5164_v16, %v5162_v14  ;;  %v5166_v57 = vpop.eup %5165 }
 0xd01   :  { %766 = vrot.lane.b32.xlu1 %v763_v49, %s5632_s13  ;;  %v754_v58 = vadd.f32 1.0, %v5166_v57 }
 0xd03   :  { %5167 = vrcp.f32 %v754_v58 }
 0xd0d   :  { %v5168_v59 = vpop.eup %5167 }
 0xd0e   :  { %v764_v62 = vmul.f32 %v5168_v59, %v691_v38 }
 0xd73   :  { %v767_v60 = vpop.permute.xlu1 %766 }
 0xd74   :  { %v769_v61 = vmul.f32 %v5168_v59, %v767_v60 }
 0xd76   :  { %771 = vrot.lane.b32.xlu0 %v769_v61, %s5632_s13 }
 0xde8   :  { %v772_v63 = vpop.permute.xlu0 %771 }
 0xde9   :  { %v5918_v1 = vadd.f32 %v772_v63, %v764_v62 }
 0xdeb   :  { %5169 = vtanh.f32 %v5918_v1 }
 0xdf5   :  { %v5170_v5 = vpop.eup %5169 }
 0xdf6   :  { %777 = vrot.lane.b32.xlu1 %v5170_v5, %s5632_s13  ;;  %v5967_v5 = vld [vmem:[#allocation6 + $0x44] ss:$8 sps:$4 sm:$0xff]  }
 0xdf7   :  { %1174 = vmatprep.subr.bf16.mxu1 %v5967_v5 }
 0xe68   :  { %v778_v7 = vpop.permute.xlu1 %777 }
 0xe69   :  { %v780_v9 = vmul.f32 %v778_v7, %v763_v49  ;;  %v5969_v7 = vld [vmem:[#allocation6 + $0x40] ss:$8 sps:$4 sm:$0xff]  }
 0xe6b   :  { %781 = vst.msk [vmem:[#allocation2 + $0x28] sm:$0xff] %vm143_vm0, %v780_v9  ;;  %v784_v13 = vpack.c.bf16 %v780_v9, %v780_v9  ;;  %v5973_v9 = vld [vmem:[#allocation6 + $0x54] ss:$8 sps:$4 sm:$0xff]  }
 0xe6d   :  { %4716 = vmatmul.mubr.msk.bf16.vlgmr.msra.gmra.mrb[24].mxu0 %vm143_vm0, %v784_v13  ;;  %v5982_v13 = vld [vmem:[#allocation6 + $0x60] ss:$8 sps:$4 sm:$0xff]  }
 0xe6e   :  { %1044 = vmatpush1.bf16.msra.mxu0 %v4991_v11  ;;  %1075 = vmatprep.mubr.bf16.mxu0 %v5631_v0  ;;  %v5976_v11 = vld [vmem:[#allocation6 + $0x50] ss:$8 sps:$4 sm:$0xff]  }
 0xe6f   :  { %1045 = vmatprep.subr.bf16.mxu0 %v4996_v15 }
 0xe72   :  { %1046 = vmatpush1.bf16.msra.mxu0 %v4994_v17  ;;  %v973_v48 = vld [vmem:[#allocation2 + $0x28] sm:$0xff]  ;;  %v5986_v17 = vld [vmem:[#allocation6 + $0x74] ss:$8 sps:$4 sm:$0xff]  }
 0xe73   :  { %1047 = vmatprep.subr.bf16.mxu0 %v4999_v18  ;;  %v978_v32 = vpack.c.bf16 %v973_v48, %v972_v31  ;;  %v5989_v18 = vld [vmem:[#allocation6 + $0x70] ss:$8 sps:$4 sm:$0xff]  }
 0xe76   :  { %1048 = vmatpush1.bf16.msra.mxu0 %v4997_v19 }
 0xe77   :  { %1049 = vmatprep.subr.bf16.mxu0 %v5002_v20 }
 0xe7a   :  { %1050 = vmatpush1.bf16.msra.mxu0 %v5000_v21 }
 0xe7b   :  { %1340 = vmatprep.subr.bf16.mxu0 %v5967_v5 }
 0xe7d   :  { %4731 = vmatmul.mubr.msk.bf16.vlgmr.msra.gmra.mrb[28].mxu0 %vm143_vm0, %v976_v28 }
 0xe7e   :  { %1085 = vmatprep.mubr.bf16.mxu0 %v5631_v0  ;;  %1341 = vmatpush1.bf16.msra.mxu0 %v5969_v7 }
 0xe7f   :  { %1342 = vmatprep.subr.bf16.mxu0 %v5973_v9 }
 0xe82   :  { %1343 = vmatpush1.bf16.msra.mxu0 %v5976_v11 }
 0xe85   :  { %4732 = vmatmul.mubr.msk.bf16.gmra.mrb[32].mxu0 %vm143_vm0, %v977_v47 }
 0xe86   :  { %1095 = vmatprep.mubr.bf16.mxu0 %v5631_v0 }
 0xe8d   :  { %4733 = vmatmul.mubr.msk.bf16.gmra.mrb[36].mxu0 %vm143_vm0, %v978_v32  ;;  %v4722_v32 = vld [vmem:[%s6931_s3 + $0x2] sm:$0x3] }
 0xe8e   :  { %1105 = vmatprep.mubr.bf16.mxu0 %v5631_v0 }
 0xf40   :  { %v822_v35 = vpop.f32.mrb[24].mxu0 }
 0xf41   :  { %v829_v36 = vadd.f32 %v822_v35, %v221_v33  ;;  %v824_v37 = vpop.f32.mrb[25].mxu0  ;;  %v6023_v33 = vrot.slane %v4722_v32, %v5758_v22 }
 0xf42   :  { %v830_v38 = vadd.f32 %v824_v37, %v223_v34  ;;  %v826_v39 = vpop.f32.mrb[26].mxu0  ;;  %v6026_v34 = vrot.slane %v4722_v32, %v5763_v24 }
 0xf43   :  { %v827_v40 = vpop.f32.mrb[27].mxu0  ;;  %v4717_v50 = vmul.f32 -1.442695, %v829_v36 }
 0xf44   :  { %v4718_v41 = vmul.f32 -1.442695, %v830_v38 }
 0xf46   :  { %5171 = vpow2.f32 %v4718_v41 }
 0xf47   :  { %5173 = vtanh.f32 %v830_v38 }
 0xf50   :  { %v5172_v42 = vpop.eup %5171  ;;  %v5935_v44 = vpop.f32.mrb[28].mxu0 }
 0xf51   :  { %v838_v4 = vadd.f32 1.0, %v5172_v42  ;;  %v5937_v55 = vpop.f32.mrb[29].mxu0  ;;  %v5174_v8 = vpop.eup %5173  ;;  %v1078_v25 = vadd.f32 %v5935_v44, %v6023_v33 }
 0xf52   :  { %v5939_v56 = vpop.f32.mrb[30].mxu0  ;;  %v1080_v26 = vadd.f32 %v5937_v55, %v6026_v34 }
 0xf53   :  { %5175 = vrcp.f32 %v838_v4  ;;  %v5941_v51 = vpop.f32.mrb[31].mxu0 }
 0xf54   :  { %5177 = vpow2.f32 %v4717_v50 }
 0xf58   :  { %v5943_v52 = vpop.f32.mrb[32].mxu0 }
 0xf59   :  { %v5945_v2 = vpop.f32.mrb[33].mxu0 }
 0xf5a   :  { %v5947_v6 = vpop.f32.mrb[34].mxu0 }
 0xf5b   :  { %v5949_v45 = vpop.f32.mrb[35].mxu0 }
 0xf5d   :  { %v5176_v46 = vpop.eup %5175 }
 0xf5e   :  { %v846_v10 = vsel %vm62_vm1, %v5176_v46, %v5174_v8  ;;  %v5178_v57 = vpop.eup %5177 }
 0xf5f   :  { %849 = vrot.lane.b32.xlu0 %v846_v10, %s5632_s13  ;;  %v837_v58 = vadd.f32 1.0, %v5178_v57 }
 0xf60   :  { %v5954_v12 = vpop.f32.mrb[36].mxu0 }
 0xf61   :  { %v5956_v14 = vpop.f32.mrb[37].mxu0  ;;  %5179 = vrcp.f32 %v837_v58 }
 0xf62   :  { %v5958_v16 = vpop.f32.mrb[38].mxu0 }
 0xf63   :  { %v5960_v49 = vpop.f32.mrb[39].mxu0 }
 0xf6b   :  { %v5180_v59 = vpop.eup %5179 }
 0xf6c   :  { %v847_v62 = vmul.f32 %v5180_v59, %v5918_v1  ;;  %v5979_v1 = vld [vmem:[#allocation6 + $0x64] ss:$8 sps:$4 sm:$0xff]  }
 0xf6d   :  { %1344 = vmatprep.subr.bf16.mxu0 %v5979_v1 }
 0xf6e   :  { %1345 = vmatpush1.bf16.msra.mxu0 %v5982_v13 }
 0xf6f   :  { %1346 = vmatprep.subr.bf16.mxu0 %v5986_v17 }
 0xf72   :  { %1347 = vmatpush1.bf16.msra.mxu0 %v5989_v18 }
 0xf73   :  { %1506 = vmatprep.subr.bf16.mxu0 %v5967_v5 }
 0xfd1   :  { %v850_v60 = vpop.permute.xlu0 %849 }
 0xfd2   :  { %v852_v61 = vmul.f32 %v5180_v59, %v850_v60 }
 0xfd4   :  { %854 = vrot.lane.b32.xlu1 %v852_v61, %s5632_s13 }
0x1046   :  { %v855_v63 = vpop.permute.xlu1 %854 }
0x1047   :  { %v5964_v3 = vadd.f32 %v855_v63, %v847_v62 }
0x1049   :  { %5181 = vtanh.f32 %v5964_v3 }
0x1053   :  { %v5182_v15 = vpop.eup %5181 }
0x1054   :  { %860 = vrot.lane.b32.xlu0 %v5182_v15, %s5632_s13 }
0x10c6   :  { %v861_v19 = vpop.permute.xlu0 %860 }
0x10c7   :  { %v863_v20 = vmul.f32 %v861_v19, %v846_v10 }
0x10c9   :  { %864 = vst.msk [vmem:[#allocation2 + $0x30] sm:$0xff] %vm143_vm0, %v863_v20  ;;  %v867_v21 = vpack.c.bf16 %v863_v20, %v863_v20 }
0x10cb   :  { %4719 = vmatmul.mubr.msk.bf16.vlgmr.msra.gmra.mrb[16].mxu1 %vm143_vm0, %v867_v21 }
0x10cc   :  { %1175 = vmatpush1.bf16.msra.mxu1 %v5969_v7  ;;  %1206 = vmatprep.mubr.bf16.mxu1 %v5631_v0 }
0x10cd   :  { %1176 = vmatprep.subr.bf16.mxu1 %v5973_v9 }
0x10d0   :  { %1177 = vmatpush1.bf16.msra.mxu1 %v5976_v11 }
0x10d1   :  { %1178 = vmatprep.subr.bf16.mxu1 %v5979_v1 }
0x10d4   :  { %1179 = vmatpush1.bf16.msra.mxu1 %v5982_v13 }
0x10d5   :  { %1180 = vmatprep.subr.bf16.mxu1 %v5986_v17 }
0x10d8   :  { %1181 = vmatpush1.bf16.msra.mxu1 %v5989_v18 }
0x10d9   :  { %1257 = vmatprep.subr.bf16.mxu1 %v5967_v5 }
0x10db   :  { %1207 = vmatmul.mubr.bf16.vlgmr.msra.gmra.mrb[20].mxu1 %v5631_v0 }
0x10dc   :  { %1258 = vmatpush1.bf16.msra.mxu1 %v5969_v7  ;;  %1289 = vmatprep.mubr.bf16.mxu1 %v5631_v0 }
0x10dd   :  { %1259 = vmatprep.subr.bf16.mxu1 %v5973_v9 }
0x10e0   :  { %1260 = vmatpush1.bf16.msra.mxu1 %v5976_v11 }
0x10e1   :  { %1261 = vmatprep.subr.bf16.mxu1 %v5979_v1 }
0x10e4   :  { %1262 = vmatpush1.bf16.msra.mxu1 %v5982_v13 }
0x10e5   :  { %1263 = vmatprep.subr.bf16.mxu1 %v5986_v17 }
0x10e8   :  { %1264 = vmatpush1.bf16.msra.mxu1 %v5989_v18 }
0x10e9   :  { %1423 = vmatprep.subr.bf16.mxu1 %v5967_v5 }
0x119e   :  { %v905_v28 = vpop.f32.mrb[16].mxu1 }
0x119f   :  { %v912_v29 = vadd.f32 %v905_v28, %v225_v23  ;;  %v907_v30 = vpop.f32.mrb[17].mxu1 }
0x11a0   :  { %v913_v47 = vadd.f32 %v907_v30, %v227_v27  ;;  %v909_v48 = vpop.f32.mrb[18].mxu1 }
0x11a1   :  { %v910_v31 = vpop.f32.mrb[19].mxu1  ;;  %v4720_v15 = vmul.f32 -1.442695, %v912_v29 }
0x11a2   :  { %v4721_v8 = vmul.f32 -1.442695, %v913_v47 }
0x11ae   :  { %v1208_v53 = vpop.f32.mrb[20].mxu1 }
0x11af   :  { %v1215_v54 = vadd.f32 %v1208_v53, %v1078_v25  ;;  %v1210_v35 = vpop.f32.mrb[21].mxu1 }
0x11b0   :  { %v1216_v36 = vadd.f32 %v1210_v35, %v1080_v26  ;;  %v1212_v37 = vpop.f32.mrb[22].mxu1 }
0x11b1   :  { %v1213_v38 = vpop.f32.mrb[23].mxu1  ;;  %v4743_v55 = vmul.f32 -1.442695, %v1215_v54 }
0x11b2   :  { %v4744_v39 = vmul.f32 -1.442695, %v1216_v36 }
0x11b4   :  { %5183 = vpow2.f32 %v4744_v39  ;;  %v1082_v39 = vadd.f32 %v5939_v56, %v6023_v33 }
0x11b5   :  { %5185 = vtanh.f32 %v1216_v36  ;;  %v974_v36 = vld [vmem:[#allocation2 + $0x30] sm:$0xff] }
0x11be   :  { %v5184_v40 = vpop.eup %5183 }
0x11bf   :  { %v1224_v41 = vadd.f32 1.0, %v5184_v40  ;;  %v5186_v42 = vpop.eup %5185  ;;  %v1084_v40 = vadd.f32 %v5941_v51, %v6026_v34 }
0x11c1   :  { %5187 = vrcp.f32 %v1224_v41 }
0x11c2   :  { %5189 = vpow2.f32 %v4743_v55 }
0x11c3   :  { %5191 = vpow2.f32 %v4721_v8 }
0x11cb   :  { %v5188_v4 = vpop.eup %5187 }
0x11cc   :  { %v1232_v44 = vsel %vm62_vm1, %v5188_v4, %v5186_v42  ;;  %v5190_v46 = vpop.eup %5189 }
0x11cd   :  { %1235 = vrot.lane.b32.xlu1 %v1232_v44, %s5632_s13  ;;  %v5192_v10 = vpop.eup %5191  ;;  %v1223_v50 = vadd.f32 1.0, %v5190_v46 }
0x11ce   :  { %v921_v57 = vadd.f32 1.0, %v5192_v10 }
0x11cf   :  { %5193 = vrcp.f32 %v1223_v50 }
0x11d0   :  { %5195 = vrcp.f32 %v921_v57 }
0x11d1   :  { %5197 = vtanh.f32 %v913_v47 }
0x11d2   :  { %5199 = vpow2.f32 %v4720_v15 }
0x11d9   :  { %v5194_v58 = vpop.eup %5193 }
0x11da   :  { %v5196_v61 = vpop.eup %5195  ;;  %v1233_v21 = vmul.f32 0.0, %v5194_v58 }
0x11db   :  { %v5198_v62 = vpop.eup %5197 }
0x11dc   :  { %v929_v63 = vsel %vm62_vm1, %v5196_v61, %v5198_v62  ;;  %v5200_v19 = vpop.eup %5199 }
0x11dd   :  { %v920_v20 = vadd.f32 1.0, %v5200_v19 }
0x11df   :  { %5201 = vrcp.f32 %v920_v20 }
0x11e9   :  { %v5202_v28 = vpop.eup %5201 }
0x11ea   :  { %v930_v29 = vmul.f32 %v5202_v28, %v5964_v3 }
0x123f   :  { %v1236_v59 = vpop.permute.xlu1 %1235 }
0x1240   :  { %v1238_v60 = vmul.f32 %v5194_v58, %v1236_v59 }
0x1242   :  { %1240 = vrot.lane.b32.xlu0 %v1238_v60, %s5632_s13 }
0x1246   :  { %932 = vrot.lane.b32.xlu0 %v929_v63, %s5632_s13 }
0x12b4   :  { %v1241_v23 = vpop.permute.xlu0 %1240 }
0x12b5   :  { %v6039_v27 = vadd.f32 %v1241_v23, %v1233_v21 }
0x12b7   :  { %5203 = vtanh.f32 %v6039_v27 }
0x12b8   :  { %v933_v30 = vpop.permute.xlu0 %932 }
0x12b9   :  { %v935_v47 = vmul.f32 %v5202_v28, %v933_v30 }
0x12bb   :  { %937 = vrot.lane.b32.xlu0 %v935_v47, %s5632_s13 }
0x12c1   :  { %v5204_v48 = vpop.eup %5203 }
0x12c2   :  { %1246 = vrot.lane.b32.xlu1 %v5204_v48, %s5632_s13 }
0x132d   :  { %v938_v31 = vpop.permute.xlu0 %937 }
0x132e   :  { %v940_v32 = vadd.f32 %v938_v31, %v930_v29 }
0x1330   :  { %5205 = vtanh.f32 %v940_v32  ;;  %v1090_v32 = vadd.f32 %v5945_v2, %v6026_v34 }
0x1334   :  { %v1247_v25 = vpop.permute.xlu1 %1246 }
0x1335   :  { %v1249_v26 = vmul.f32 %v1247_v25, %v1232_v44 }
0x1337   :  { %1250 = vst.msk [vmem:[#allocation2] sm:$0xff] %vm143_vm0, %v1249_v26  ;;  %v1253_v53 = vpack.c.bf16 %v1249_v26, %v1249_v26 }
0x1339   :  { %4745 = vmatmul.mubr.msk.bf16.vlgmr.msra.gmra.mrb[24].mxu1 %vm143_vm0, %v1253_v53 }
0x133a   :  { %v5206_v54 = vpop.eup %5205  ;;  %1424 = vmatpush1.bf16.msra.mxu1 %v5969_v7  ;;  %1455 = vmatprep.mubr.bf16.mxu1 %v5631_v0 }
0x133b   :  { %943 = vrot.lane.b32.xlu0 %v5206_v54, %s5632_s13  ;;  %1425 = vmatprep.subr.bf16.mxu1 %v5973_v9 }
0x133e   :  { %1426 = vmatpush1.bf16.msra.mxu1 %v5976_v11 }
0x133f   :  { %1427 = vmatprep.subr.bf16.mxu1 %v5979_v1 }
0x1342   :  { %1428 = vmatpush1.bf16.msra.mxu1 %v5982_v13 }
0x1343   :  { %1429 = vmatprep.subr.bf16.mxu1 %v5986_v17 }
0x1346   :  { %1430 = vmatpush1.bf16.msra.mxu1 %v5989_v18 }
0x1347   :  { %1589 = vmatprep.subr.bf16.mxu1 %v5967_v5 }
0x13ad   :  { %v944_v3 = vpop.permute.xlu0 %943 }
0x13ae   :  { %v946_v35 = vmul.f32 %v944_v3, %v929_v63 }
0x13b0   :  { %947 = vst.msk [vmem:[#allocation2 + $0x38] sm:$0xff] %vm143_vm0, %v946_v35 }
0x13b7   :  { %v975_v37 = vld [vmem:[#allocation2 + $0x38] sm:$0xff] }
0x13b8   :  { %v979_v38 = vpack.c.bf16 %v975_v37, %v974_v36 }
0x13ba   :  { %4734 = vmatmul.mubr.msk.bf16.gmra.mrb[40].mxu0 %vm143_vm0, %v979_v38 }
0x13bb   :  { %1372 = vmatprep.mubr.bf16.mxu0 %v5631_v0 }
0x140c   :  { %v1291_v41 = vpop.f32.mrb[24].mxu1 }
0x140d   :  { %v1298_v42 = vadd.f32 %v1291_v41, %v1082_v39  ;;  %v1293_v4 = vpop.f32.mrb[25].mxu1 }
0x140e   :  { %v1299_v44 = vadd.f32 %v1293_v4, %v1084_v40  ;;  %v1295_v55 = vpop.f32.mrb[26].mxu1 }
0x140f   :  { %v1296_v8 = vpop.f32.mrb[27].mxu1  ;;  %v4746_v51 = vmul.f32 -1.442695, %v1298_v42 }
0x1410   :  { %v4747_v46 = vmul.f32 -1.442695, %v1299_v44 }
0x1412   :  { %5207 = vpow2.f32 %v4747_v46 }
0x1413   :  { %5209 = vtanh.f32 %v1299_v44 }
0x141c   :  { %v5208_v10 = vpop.eup %5207 }
0x141d   :  { %v1307_v50 = vadd.f32 1.0, %v5208_v10  ;;  %v5210_v57 = vpop.eup %5209 }
0x141f   :  { %5211 = vrcp.f32 %v1307_v50 }
0x1420   :  { %5213 = vpow2.f32 %v4746_v51  ;;  %v1092_v51 = vadd.f32 %v5947_v6, %v6023_v33 }
0x1429   :  { %v5212_v58 = vpop.eup %5211 }
0x142a   :  { %v1315_v56 = vsel %vm62_vm1, %v5212_v58, %v5210_v57  ;;  %v5214_v59 = vpop.eup %5213 }
0x142b   :  { %1318 = vrot.lane.b32.xlu1 %v1315_v56, %s5632_s13  ;;  %v1306_v62 = vadd.f32 1.0, %v5214_v59  ;;  %v1094_v59 = vadd.f32 %v5949_v45, %v6026_v34 }
0x142d   :  { %5215 = vrcp.f32 %v1306_v62 }
0x1437   :  { %v5216_v19 = vpop.eup %5215 }
0x1438   :  { %v1316_v23 = vmul.f32 %v5216_v19, %v6039_v27  ;;  %v1088_v27 = vadd.f32 %v5943_v52, %v6023_v33 }
0x148d   :  { %v6067_v60 = vpop.f32.mrb[40].mxu0 }
0x148e   :  { %v6069_v61 = vpop.f32.mrb[41].mxu0 }
0x148f   :  { %v6071_v63 = vpop.f32.mrb[42].mxu0 }
0x1490   :  { %v6073_v15 = vpop.f32.mrb[43].mxu0 }
0x149d   :  { %v1319_v20 = vpop.permute.xlu1 %1318 }
0x149e   :  { %v1321_v21 = vmul.f32 %v5216_v19, %v1319_v20 }
0x14a0   :  { %1323 = vrot.lane.b32.xlu1 %v1321_v21, %s5632_s13 }
0x1512   :  { %v1324_v28 = vpop.permute.xlu1 %1323 }
0x1513   :  { %v1326_v30 = vadd.f32 %v1324_v28, %v1316_v23 }
0x1515   :  { %5217 = vtanh.f32 %v1326_v30 }
0x151f   :  { %v5218_v47 = vpop.eup %5217 }
0x1520   :  { %1329 = vrot.lane.b32.xlu1 %v5218_v47, %s5632_s13 }
0x1592   :  { %v1330_v48 = vpop.permute.xlu1 %1329 }
0x1593   :  { %v1332_v29 = vmul.f32 %v1330_v48, %v1315_v56 }
0x1595   :  { %1333 = vst.msk [vmem:[#allocation2 + $0x8] sm:$0xff] %vm143_vm0, %v1332_v29  ;;  %v1336_v31 = vpack.c.bf16 %v1332_v29, %v1332_v29 }
0x1597   :  { %4748 = vmatmul.mubr.msk.bf16.vlgmr.msra.gmra.mrb[44].mxu0 %vm143_vm0, %v1336_v31 }
0x1598   :  { %1507 = vmatpush1.bf16.msra.mxu0 %v5969_v7  ;;  %1538 = vmatprep.mubr.bf16.mxu0 %v5631_v0 }
0x1599   :  { %1508 = vmatprep.subr.bf16.mxu0 %v5973_v9 }
0x159c   :  { %1509 = vmatpush1.bf16.msra.mxu0 %v5976_v11 }
0x159d   :  { %1510 = vmatprep.subr.bf16.mxu0 %v5979_v1 }
0x15a0   :  { %1511 = vmatpush1.bf16.msra.mxu0 %v5982_v13 }
0x15a1   :  { %1512 = vmatprep.subr.bf16.mxu0 %v5986_v17 }
0x15a4   :  { %1513 = vmatpush1.bf16.msra.mxu0 %v5989_v18 }
0x15a5   :  { %1672 = vmatprep.subr.bf16.mxu0 %v5967_v5 }
0x166a   :  { %v1374_v25 = vpop.f32.mrb[44].mxu0 }
0x166b   :  { %v1381_v26 = vadd.f32 %v1374_v25, %v1088_v27  ;;  %v1376_v53 = vpop.f32.mrb[45].mxu0 }
0x166c   :  { %v1382_v54 = vadd.f32 %v1376_v53, %v1090_v32  ;;  %v1378_v3 = vpop.f32.mrb[46].mxu0 }
0x166d   :  { %v1379_v35 = vpop.f32.mrb[47].mxu0  ;;  %v4749_v2 = vmul.f32 -1.442695, %v1381_v26 }
0x166e   :  { %v4750_v36 = vmul.f32 -1.442695, %v1382_v54 }
0x1670   :  { %5219 = vpow2.f32 %v4750_v36 }
0x1671   :  { %5221 = vtanh.f32 %v1382_v54 }
0x167a   :  { %v5220_v37 = vpop.eup %5219 }
0x167b   :  { %v1390_v38 = vadd.f32 1.0, %v5220_v37  ;;  %v5222_v39 = vpop.eup %5221 }
0x167d   :  { %5223 = vrcp.f32 %v1390_v38 }
0x167e   :  { %5225 = vpow2.f32 %v4749_v2 }
0x1687   :  { %v5224_v40 = vpop.eup %5223 }
0x1688   :  { %v1398_v52 = vsel %vm62_vm1, %v5224_v40, %v5222_v39  ;;  %v5226_v41 = vpop.eup %5225  ;;  %v1098_v39 = vadd.f32 %v5954_v12, %v6023_v33  ;;  %v1100_v40 = vadd.f32 %v5956_v14, %v6026_v34 }
0x1689   :  { %1401 = vrot.lane.b32.xlu0 %v1398_v52, %s5632_s13  ;;  %v1389_v42 = vadd.f32 1.0, %v5226_v41 }
0x168b   :  { %5227 = vrcp.f32 %v1389_v42 }
0x1695   :  { %v5228_v4 = vpop.eup %5227 }
0x1696   :  { %v1399_v8 = vmul.f32 %v5228_v4, %v1326_v30 }
0x16fb   :  { %v1402_v44 = vpop.permute.xlu0 %1401 }
0x16fc   :  { %v1404_v55 = vmul.f32 %v5228_v4, %v1402_v44 }
0x16fe   :  { %1406 = vrot.lane.b32.xlu1 %v1404_v55, %s5632_s13 }
0x1770   :  { %v1407_v46 = vpop.permute.xlu1 %1406 }
0x1771   :  { %v1409_v10 = vadd.f32 %v1407_v46, %v1399_v8 }
0x1773   :  { %5229 = vtanh.f32 %v1409_v10 }
0x177d   :  { %v5230_v50 = vpop.eup %5229 }
0x177e   :  { %1412 = vrot.lane.b32.xlu0 %v5230_v50, %s5632_s13 }
0x17f0   :  { %v1413_v57 = vpop.permute.xlu0 %1412 }
0x17f1   :  { %v1415_v58 = vmul.f32 %v1413_v57, %v1398_v52 }
0x17f3   :  { %1416 = vst.msk [vmem:[#allocation2 + $0x10] sm:$0xff] %vm143_vm0, %v1415_v58  ;;  %v1419_v56 = vpack.c.bf16 %v1415_v58, %v1415_v58 }
0x17f5   :  { %4751 = vmatmul.mubr.msk.bf16.vlgmr.msra.gmra.mrb[28].mxu1 %vm143_vm0, %v1419_v56 }
0x17f6   :  { %1590 = vmatpush1.bf16.msra.mxu1 %v5969_v7  ;;  %1621 = vmatprep.mubr.bf16.mxu1 %v5631_v0 }
0x17f7   :  { %1591 = vmatprep.subr.bf16.mxu1 %v5973_v9 }
0x17fa   :  { %1592 = vmatpush1.bf16.msra.mxu1 %v5976_v11 }
0x17fb   :  { %1593 = vmatprep.subr.bf16.mxu1 %v5979_v1 }
0x17fe   :  { %1594 = vmatpush1.bf16.msra.mxu1 %v5982_v13 }
0x17ff   :  { %1595 = vmatprep.subr.bf16.mxu1 %v5986_v17 }
0x1802   :  { %1596 = vmatpush1.bf16.msra.mxu1 %v5989_v18 }
0x1803   :  { %1755 = vmatprep.subr.bf16.mxu1 %v5967_v5 }
0x18c8   :  { %v1457_v62 = vpop.f32.mrb[28].mxu1 }
0x18c9   :  { %v1464_v19 = vadd.f32 %v1457_v62, %v1092_v51  ;;  %v1459_v20 = vpop.f32.mrb[29].mxu1 }
0x18ca   :  { %v1465_v21 = vadd.f32 %v1459_v20, %v1094_v59  ;;  %v1461_v23 = vpop.f32.mrb[30].mxu1 }
0x18cb   :  { %v1462_v28 = vpop.f32.mrb[31].mxu1  ;;  %v4752_v45 = vmul.f32 -1.442695, %v1464_v19 }
0x18cc   :  { %v4753_v30 = vmul.f32 -1.442695, %v1465_v21 }
0x18ce   :  { %5231 = vpow2.f32 %v4753_v30 }
0x18cf   :  { %5233 = vtanh.f32 %v1465_v21 }
0x18d8   :  { %v5232_v47 = vpop.eup %5231 }
0x18d9   :  { %v1473_v48 = vadd.f32 1.0, %v5232_v47  ;;  %v5234_v29 = vpop.eup %5233  ;;  %v1102_v47 = vadd.f32 %v5958_v16, %v6023_v33 }
0x18db   :  { %5235 = vrcp.f32 %v1473_v48 }
0x18dc   :  { %5237 = vpow2.f32 %v4752_v45 }
0x18e5   :  { %v5236_v5 = vpop.eup %5235 }
0x18e6   :  { %v1481_v6 = vsel %vm62_vm1, %v5236_v5, %v5234_v29  ;;  %v5238_v31 = vpop.eup %5237 }
0x18e7   :  { %1484 = vrot.lane.b32.xlu1 %v1481_v6, %s5632_s13  ;;  %v1472_v27 = vadd.f32 1.0, %v5238_v31 }
0x18e9   :  { %5239 = vrcp.f32 %v1472_v27 }
0x18f3   :  { %v5240_v32 = vpop.eup %5239 }
0x18f4   :  { %v1482_v53 = vmul.f32 %v5240_v32, %v1409_v10 }
0x1959   :  { %v1485_v25 = vpop.permute.xlu1 %1484 }
0x195a   :  { %v1487_v26 = vmul.f32 %v5240_v32, %v1485_v25 }
0x195c   :  { %1489 = vrot.lane.b32.xlu0 %v1487_v26, %s5632_s13 }
0x19ce   :  { %v1490_v54 = vpop.permute.xlu0 %1489 }
0x19cf   :  { %v1492_v3 = vadd.f32 %v1490_v54, %v1482_v53 }
0x19d1   :  { %5241 = vtanh.f32 %v1492_v3 }
0x19db   :  { %v5242_v35 = vpop.eup %5241 }
0x19dc   :  { %1495 = vrot.lane.b32.xlu1 %v5242_v35, %s5632_s13  ;;  %v5017_v35 = vld [vmem:[#allocation4 + $0x84] ss:$8 sps:$4 sm:$0xff]  }
0x1a4e   :  { %v1496_v36 = vpop.permute.xlu1 %1495 }
0x1a4f   :  { %v1498_v37 = vmul.f32 %v1496_v36, %v1481_v6 }
0x1a51   :  { %1499 = vst.msk [vmem:[#allocation2 + $0x18] sm:$0xff] %vm143_vm0, %v1498_v37  ;;  %v1502_v38 = vpack.c.bf16 %v1498_v37, %v1498_v37 }
0x1a53   :  { %4754 = vmatmul.mubr.msk.bf16.vlgmr.msra.gmra.mrb[48].mxu0 %vm143_vm0, %v1502_v38 }
0x1a54   :  { %1673 = vmatpush1.bf16.msra.mxu0 %v5969_v7  ;;  %1704 = vmatprep.mubr.bf16.mxu0 %v5631_v0 }
0x1a55   :  { %1674 = vmatprep.subr.bf16.mxu0 %v5973_v9 }
0x1a58   :  { %1675 = vmatpush1.bf16.msra.mxu0 %v5976_v11 }
0x1a59   :  { %1676 = vmatprep.subr.bf16.mxu0 %v5979_v1 }
0x1a5c   :  { %1677 = vmatpush1.bf16.msra.mxu0 %v5982_v13 }
0x1a5d   :  { %1678 = vmatprep.subr.bf16.mxu0 %v5986_v17 }
0x1a60   :  { %1679 = vmatpush1.bf16.msra.mxu0 %v5989_v18 }
0x1a61   :  { %1927 = vmatprep.subr.bf16.mxu0 %v5017_v35 }
0x1b26   :  { %v1540_v52 = vpop.f32.mrb[48].mxu0 }
0x1b27   :  { %v1547_v2 = vadd.f32 %v1540_v52, %v1098_v39  ;;  %v1542_v41 = vpop.f32.mrb[49].mxu0  ;;  %v5015_v39 = vld [vmem:[#allocation4 + $0x80] ss:$8 sps:$4 sm:$0xff]   ;;  %v5020_v52 = vld [vmem:[#allocation4 + $0x94] ss:$8 sps:$4 sm:$0xff]  }
0x1b28   :  { %v1548_v42 = vadd.f32 %v1542_v41, %v1100_v40  ;;  %v1544_v4 = vpop.f32.mrb[50].mxu0  ;;  %v5023_v41 = vld [vmem:[#allocation4 + $0xa4] ss:$8 sps:$4 sm:$0xff]  }
0x1b29   :  { %v1545_v44 = vpop.f32.mrb[51].mxu0  ;;  %v4755_v14 = vmul.f32 -1.442695, %v1547_v2  ;;  %v5018_v2 = vld [vmem:[#allocation4 + $0x90] ss:$8 sps:$4 sm:$0xff]  }
0x1b2a   :  { %v4756_v55 = vmul.f32 -1.442695, %v1548_v42  ;;  %v5026_v4 = vld [vmem:[#allocation4 + $0xb4] ss:$8 sps:$4 sm:$0xff]   ;;  %v5024_v44 = vld [vmem:[#allocation4 + $0xb0] ss:$8 sps:$4 sm:$0xff]  }
0x1b2c   :  { %5243 = vpow2.f32 %v4756_v55  ;;  %v1853_v55 = vld [vmem:[#allocation2 + $0x8] sm:$0xff] }
0x1b2d   :  { %5245 = vtanh.f32 %v1548_v42  ;;  %v5021_v42 = vld [vmem:[#allocation4 + $0xa0] ss:$8 sps:$4 sm:$0xff]  }
0x1b36   :  { %v5244_v8 = vpop.eup %5243 }
0x1b37   :  { %v1556_v46 = vadd.f32 1.0, %v5244_v8  ;;  %v5246_v10 = vpop.eup %5245  ;;  %v1852_v8 = vld [vmem:[#allocation2] sm:$0xff] }
0x1b39   :  { %5247 = vrcp.f32 %v1556_v46  ;;  %v1860_v46 = vpack.c.bf16 %v1853_v55, %v1852_v8  ;;  %v1112_v55 = vadd.f32 %v6071_v63, %v6023_v33  ;;  %v1114_v8 = vadd.f32 %v6073_v15, %v6026_v34 }
0x1b3a   :  { %5249 = vpow2.f32 %v4755_v14 }
0x1b43   :  { %v5248_v50 = vpop.eup %5247 }
0x1b44   :  { %v1564_v12 = vsel %vm62_vm1, %v5248_v50, %v5246_v10  ;;  %v5250_v57 = vpop.eup %5249  ;;  %v1855_v10 = vld [vmem:[#allocation2 + $0x18] sm:$0xff]  ;;  %v1854_v50 = vld [vmem:[#allocation2 + $0x10] sm:$0xff] }
0x1b45   :  { %1567 = vrot.lane.b32.xlu0 %v1564_v12, %s5632_s13  ;;  %v1555_v58 = vadd.f32 1.0, %v5250_v57 }
0x1b47   :  { %5251 = vrcp.f32 %v1555_v58 }
0x1b51   :  { %v5252_v56 = vpop.eup %5251 }
0x1b52   :  { %v1565_v62 = vmul.f32 %v5252_v56, %v1492_v3 }
0x1bb7   :  { %v1568_v51 = vpop.permute.xlu0 %1567 }
0x1bb8   :  { %v1570_v59 = vmul.f32 %v5252_v56, %v1568_v51  ;;  %v1108_v56 = vadd.f32 %v6067_v60, %v6023_v33  ;;  %v1110_v51 = vadd.f32 %v6069_v61, %v6026_v34 }
0x1bba   :  { %1572 = vrot.lane.b32.xlu1 %v1570_v59, %s5632_s13 }
0x1c2c   :  { %v1573_v19 = vpop.permute.xlu1 %1572 }
0x1c2d   :  { %v1575_v20 = vadd.f32 %v1573_v19, %v1565_v62 }
0x1c2f   :  { %5253 = vtanh.f32 %v1575_v20 }
0x1c39   :  { %v5254_v21 = vpop.eup %5253 }
0x1c3a   :  { %1578 = vrot.lane.b32.xlu0 %v5254_v21, %s5632_s13 }
0x1cac   :  { %v1579_v23 = vpop.permute.xlu0 %1578 }
0x1cad   :  { %v1581_v28 = vmul.f32 %v1579_v23, %v1564_v12  ;;  %v1861_v12 = vpack.c.bf16 %v1855_v10, %v1854_v50 }
0x1caf   :  { %1582 = vst.msk [vmem:[#allocation2 + $0x20] sm:$0xff] %vm143_vm0, %v1581_v28  ;;  %v1585_v30 = vpack.c.bf16 %v1581_v28, %v1581_v28 }
0x1cb1   :  { %4757 = vmatmul.mubr.msk.bf16.vlgmr.msra.gmra.mrb[32].mxu1 %vm143_vm0, %v1585_v30 }
0x1cb2   :  { %1756 = vmatpush1.bf16.msra.mxu1 %v5969_v7  ;;  %1787 = vmatprep.mubr.bf16.mxu1 %v5631_v0  ;;  %v1104_v7 = vadd.f32 %v5960_v49, %v6026_v34 }
0x1cb3   :  { %1757 = vmatprep.subr.bf16.mxu1 %v5973_v9 }
0x1cb6   :  { %1758 = vmatpush1.bf16.msra.mxu1 %v5976_v11  ;;  %v1856_v57 = vld [vmem:[#allocation2 + $0x20] sm:$0xff] }
0x1cb7   :  { %1759 = vmatprep.subr.bf16.mxu1 %v5979_v1 }
0x1cba   :  { %1760 = vmatpush1.bf16.msra.mxu1 %v5982_v13 }
0x1cbb   :  { %1761 = vmatprep.subr.bf16.mxu1 %v5986_v17 }
0x1cbe   :  { %1762 = vmatpush1.bf16.msra.mxu1 %v5989_v18 }
0x1d84   :  { %v1623_v48 = vpop.f32.mrb[32].mxu1 }
0x1d85   :  { %v1630_v29 = vadd.f32 %v1623_v48, %v1102_v47  ;;  %v1625_v5 = vpop.f32.mrb[33].mxu1 }
0x1d86   :  { %v1631_v9 = vadd.f32 %v1625_v5, %v1104_v7  ;;  %v1627_v6 = vpop.f32.mrb[34].mxu1 }
0x1d87   :  { %v1628_v11 = vpop.f32.mrb[35].mxu1  ;;  %v4758_v49 = vmul.f32 -1.442695, %v1630_v29 }
0x1d88   :  { %v4759_v45 = vmul.f32 -1.442695, %v1631_v9 }
0x1d8a   :  { %5255 = vpow2.f32 %v4759_v45 }
0x1d8b   :  { %5257 = vtanh.f32 %v1631_v9 }
0x1d94   :  { %v5256_v1 = vpop.eup %5255 }
0x1d95   :  { %v1639_v13 = vadd.f32 1.0, %v5256_v1  ;;  %v5258_v17 = vpop.eup %5257 }
0x1d97   :  { %5259 = vrcp.f32 %v1639_v13 }
0x1d98   :  { %5261 = vpow2.f32 %v4758_v49 }
0x1da1   :  { %v5260_v18 = vpop.eup %5259 }
0x1da2   :  { %v1647_v16 = vsel %vm62_vm1, %v5260_v18, %v5258_v17  ;;  %v5262_v31 = vpop.eup %5261 }
0x1da3   :  { %1650 = vrot.lane.b32.xlu1 %v1647_v16, %s5632_s13  ;;  %v1638_v27 = vadd.f32 1.0, %v5262_v31 }
0x1da5   :  { %5263 = vrcp.f32 %v1638_v27 }
0x1daf   :  { %v5264_v32 = vpop.eup %5263 }
0x1db0   :  { %v1648_v53 = vmul.f32 %v5264_v32, %v1575_v20 }
0x1e15   :  { %v1651_v25 = vpop.permute.xlu1 %1650 }
0x1e16   :  { %v1653_v26 = vmul.f32 %v5264_v32, %v1651_v25 }
0x1e18   :  { %1655 = vrot.lane.b32.xlu0 %v1653_v26, %s5632_s13 }
0x1e8a   :  { %v1656_v54 = vpop.permute.xlu0 %1655 }
0x1e8b   :  { %v6155_v3 = vadd.f32 %v1656_v54, %v1648_v53 }
0x1e8d   :  { %5265 = vtanh.f32 %v6155_v3 }
0x1e97   :  { %v5266_v36 = vpop.eup %5265 }
0x1e98   :  { %1661 = vrot.lane.b32.xlu1 %v5266_v36, %s5632_s13  ;;  %v6204_v36 = vld [vmem:[#allocation6 + $0x84] ss:$8 sps:$4 sm:$0xff]  }
0x1e99   :  { %2058 = vmatprep.subr.bf16.mxu1 %v6204_v36 }
0x1f0a   :  { %v1662_v37 = vpop.permute.xlu1 %1661 }
0x1f0b   :  { %v1664_v38 = vmul.f32 %v1662_v37, %v1647_v16  ;;  %v6206_v37 = vld [vmem:[#allocation6 + $0x80] ss:$8 sps:$4 sm:$0xff]  }
0x1f0d   :  { %1665 = vst.msk [vmem:[#allocation2 + $0x28] sm:$0xff] %vm143_vm0, %v1664_v38  ;;  %v1668_v40 = vpack.c.bf16 %v1664_v38, %v1664_v38  ;;  %v6210_v38 = vld [vmem:[#allocation6 + $0x94] ss:$8 sps:$4 sm:$0xff]  }
0x1f0f   :  { %4760 = vmatmul.mubr.msk.bf16.vlgmr.msra.gmra.mrb[52].mxu0 %vm143_vm0, %v1668_v40  ;;  %v6219_v40 = vld [vmem:[#allocation6 + $0xa0] ss:$8 sps:$4 sm:$0xff]  }
0x1f10   :  { %1928 = vmatpush1.bf16.msra.mxu0 %v5015_v39  ;;  %1959 = vmatprep.mubr.bf16.mxu0 %v5631_v0  ;;  %v6213_v39 = vld [vmem:[#allocation6 + $0x90] ss:$8 sps:$4 sm:$0xff]  }
0x1f11   :  { %1929 = vmatprep.subr.bf16.mxu0 %v5020_v52 }
0x1f14   :  { %1930 = vmatpush1.bf16.msra.mxu0 %v5018_v2  ;;  %v1857_v14 = vld [vmem:[#allocation2 + $0x28] sm:$0xff]  ;;  %v6223_v2 = vld [vmem:[#allocation6 + $0xb4] ss:$8 sps:$4 sm:$0xff]  }
0x1f15   :  { %1931 = vmatprep.subr.bf16.mxu0 %v5023_v41  ;;  %v1862_v58 = vpack.c.bf16 %v1857_v14, %v1856_v57  ;;  %v6226_v41 = vld [vmem:[#allocation6 + $0xb0] ss:$8 sps:$4 sm:$0xff]  }
0x1f18   :  { %1932 = vmatpush1.bf16.msra.mxu0 %v5021_v42 }
0x1f19   :  { %1933 = vmatprep.subr.bf16.mxu0 %v5026_v4 }
0x1f1c   :  { %1934 = vmatpush1.bf16.msra.mxu0 %v5024_v44 }
0x1f1d   :  { %2224 = vmatprep.subr.bf16.mxu0 %v6204_v36 }
0x1f1f   :  { %4775 = vmatmul.mubr.msk.bf16.vlgmr.msra.gmra.mrb[56].mxu0 %vm143_vm0, %v1860_v46 }
0x1f20   :  { %1969 = vmatprep.mubr.bf16.mxu0 %v5631_v0  ;;  %2225 = vmatpush1.bf16.msra.mxu0 %v6206_v37 }
0x1f21   :  { %2226 = vmatprep.subr.bf16.mxu0 %v6210_v38 }
0x1f24   :  { %2227 = vmatpush1.bf16.msra.mxu0 %v6213_v39 }
0x1f27   :  { %4776 = vmatmul.mubr.msk.bf16.gmra.mrb[60].mxu0 %vm143_vm0, %v1861_v12 }
0x1f28   :  { %1979 = vmatprep.mubr.bf16.mxu0 %v5631_v0 }
0x1f2f   :  { %4777 = vmatmul.mubr.msk.bf16.gmra.mrb[64].mxu0 %vm143_vm0, %v1862_v58  ;;  %v4766_v58 = vld [vmem:[%s6931_s3 + $0x4] sm:$0x3] }
0x1f30   :  { %1989 = vmatprep.mubr.bf16.mxu0 %v5631_v0 }
0x1fe2   :  { %v1706_v59 = vpop.f32.mrb[52].mxu0 }
0x1fe3   :  { %v1713_v62 = vadd.f32 %v1706_v59, %v1108_v56  ;;  %v1708_v19 = vpop.f32.mrb[53].mxu0  ;;  %v6260_v56 = vrot.slane %v4766_v58, %v5758_v22 }
0x1fe4   :  { %v1714_v20 = vadd.f32 %v1708_v19, %v1110_v51  ;;  %v1710_v21 = vpop.f32.mrb[54].mxu0  ;;  %v6263_v51 = vrot.slane %v4766_v58, %v5763_v24 }
0x1fe5   :  { %v1711_v23 = vpop.f32.mrb[55].mxu0  ;;  %v4761_v49 = vmul.f32 -1.442695, %v1713_v62 }
0x1fe6   :  { %v4762_v28 = vmul.f32 -1.442695, %v1714_v20 }
0x1fe8   :  { %5267 = vpow2.f32 %v4762_v28 }
0x1fe9   :  { %5269 = vtanh.f32 %v1714_v20 }
0x1ff2   :  { %v5268_v30 = vpop.eup %5267  ;;  %v6172_v47 = vpop.f32.mrb[56].mxu0 }
0x1ff3   :  { %v1722_v7 = vadd.f32 1.0, %v5268_v30  ;;  %v6174_v48 = vpop.f32.mrb[57].mxu0  ;;  %v5270_v11 = vpop.eup %5269  ;;  %v1962_v33 = vadd.f32 %v6172_v47, %v6260_v56 }
0x1ff4   :  { %v6176_v29 = vpop.f32.mrb[58].mxu0  ;;  %v1964_v34 = vadd.f32 %v6174_v48, %v6263_v51 }
0x1ff5   :  { %5271 = vrcp.f32 %v1722_v7  ;;  %v6178_v60 = vpop.f32.mrb[59].mxu0 }
0x1ff6   :  { %5273 = vpow2.f32 %v4761_v49 }
0x1ffa   :  { %v6180_v61 = vpop.f32.mrb[60].mxu0 }
0x1ffb   :  { %v6182_v5 = vpop.f32.mrb[61].mxu0 }
0x1ffc   :  { %v6184_v9 = vpop.f32.mrb[62].mxu0 }
0x1ffd   :  { %v6186_v6 = vpop.f32.mrb[63].mxu0 }
0x1fff   :  { %v5272_v45 = vpop.eup %5271 }
0x2000   :  { %v1730_v1 = vsel %vm62_vm1, %v5272_v45, %v5270_v11  ;;  %v5274_v31 = vpop.eup %5273 }
0x2001   :  { %1733 = vrot.lane.b32.xlu0 %v1730_v1, %s5632_s13  ;;  %v1721_v27 = vadd.f32 1.0, %v5274_v31 }
0x2002   :  { %v6191_v13 = vpop.f32.mrb[64].mxu0 }
0x2003   :  { %v6193_v17 = vpop.f32.mrb[65].mxu0  ;;  %5275 = vrcp.f32 %v1721_v27 }
0x2004   :  { %v6195_v18 = vpop.f32.mrb[66].mxu0 }
0x2005   :  { %v6197_v16 = vpop.f32.mrb[67].mxu0 }
0x200d   :  { %v5276_v32 = vpop.eup %5275 }
0x200e   :  { %v1731_v53 = vmul.f32 %v5276_v32, %v6155_v3  ;;  %v6216_v3 = vld [vmem:[#allocation6 + $0xa4] ss:$8 sps:$4 sm:$0xff]  }
0x200f   :  { %2228 = vmatprep.subr.bf16.mxu0 %v6216_v3 }
0x2010   :  { %2229 = vmatpush1.bf16.msra.mxu0 %v6219_v40 }
0x2011   :  { %2230 = vmatprep.subr.bf16.mxu0 %v6223_v2 }
0x2014   :  { %2231 = vmatpush1.bf16.msra.mxu0 %v6226_v41 }
0x2015   :  { %2390 = vmatprep.subr.bf16.mxu0 %v6204_v36 }
0x2073   :  { %v1734_v25 = vpop.permute.xlu0 %1733 }
0x2074   :  { %v1736_v26 = vmul.f32 %v5276_v32, %v1734_v25 }
0x2076   :  { %1738 = vrot.lane.b32.xlu1 %v1736_v26, %s5632_s13 }
0x20e8   :  { %v1739_v54 = vpop.permute.xlu1 %1738 }
0x20e9   :  { %v6201_v35 = vadd.f32 %v1739_v54, %v1731_v53 }
0x20eb   :  { %5277 = vtanh.f32 %v6201_v35 }
0x20f5   :  { %v5278_v52 = vpop.eup %5277 }
0x20f6   :  { %1744 = vrot.lane.b32.xlu0 %v5278_v52, %s5632_s13 }
0x2168   :  { %v1745_v42 = vpop.permute.xlu0 %1744 }
0x2169   :  { %v1747_v4 = vmul.f32 %v1745_v42, %v1730_v1 }
0x216b   :  { %1748 = vst.msk [vmem:[#allocation2 + $0x30] sm:$0xff] %vm143_vm0, %v1747_v4  ;;  %v1751_v44 = vpack.c.bf16 %v1747_v4, %v1747_v4 }
0x216d   :  { %4763 = vmatmul.mubr.msk.bf16.vlgmr.msra.gmra.mrb[36].mxu1 %vm143_vm0, %v1751_v44 }
0x216e   :  { %2059 = vmatpush1.bf16.msra.mxu1 %v6206_v37  ;;  %2090 = vmatprep.mubr.bf16.mxu1 %v5631_v0 }
0x216f   :  { %2060 = vmatprep.subr.bf16.mxu1 %v6210_v38 }
0x2172   :  { %2061 = vmatpush1.bf16.msra.mxu1 %v6213_v39 }
0x2173   :  { %2062 = vmatprep.subr.bf16.mxu1 %v6216_v3 }
0x2176   :  { %2063 = vmatpush1.bf16.msra.mxu1 %v6219_v40 }
0x2177   :  { %2064 = vmatprep.subr.bf16.mxu1 %v6223_v2 }
0x217a   :  { %2065 = vmatpush1.bf16.msra.mxu1 %v6226_v41 }
0x217b   :  { %2141 = vmatprep.subr.bf16.mxu1 %v6204_v36 }
0x217d   :  { %2091 = vmatmul.mubr.bf16.vlgmr.msra.gmra.mrb[40].mxu1 %v5631_v0 }
0x217e   :  { %2142 = vmatpush1.bf16.msra.mxu1 %v6206_v37  ;;  %2173 = vmatprep.mubr.bf16.mxu1 %v5631_v0 }
0x217f   :  { %2143 = vmatprep.subr.bf16.mxu1 %v6210_v38 }
0x2182   :  { %2144 = vmatpush1.bf16.msra.mxu1 %v6213_v39 }
0x2183   :  { %2145 = vmatprep.subr.bf16.mxu1 %v6216_v3 }
0x2186   :  { %2146 = vmatpush1.bf16.msra.mxu1 %v6219_v40 }
0x2187   :  { %2147 = vmatprep.subr.bf16.mxu1 %v6223_v2 }
0x218a   :  { %2148 = vmatpush1.bf16.msra.mxu1 %v6226_v41 }
0x218b   :  { %2307 = vmatprep.subr.bf16.mxu1 %v6204_v36 }
0x2240   :  { %v1789_v46 = vpop.f32.mrb[36].mxu1 }
0x2241   :  { %v1796_v10 = vadd.f32 %v1789_v46, %v1112_v55  ;;  %v1791_v50 = vpop.f32.mrb[37].mxu1 }
0x2242   :  { %v1797_v12 = vadd.f32 %v1791_v50, %v1114_v8  ;;  %v1793_v14 = vpop.f32.mrb[38].mxu1 }
0x2243   :  { %v1794_v57 = vpop.f32.mrb[39].mxu1  ;;  %v4764_v52 = vmul.f32 -1.442695, %v1796_v10 }
0x2244   :  { %v4765_v11 = vmul.f32 -1.442695, %v1797_v12 }
0x2250   :  { %v2092_v63 = vpop.f32.mrb[40].mxu1 }
0x2251   :  { %v2099_v15 = vadd.f32 %v2092_v63, %v1962_v33  ;;  %v2094_v59 = vpop.f32.mrb[41].mxu1 }
0x2252   :  { %v2100_v62 = vadd.f32 %v2094_v59, %v1964_v34  ;;  %v2096_v19 = vpop.f32.mrb[42].mxu1 }
0x2253   :  { %v2097_v20 = vpop.f32.mrb[43].mxu1  ;;  %v4787_v48 = vmul.f32 -1.442695, %v2099_v15 }
0x2254   :  { %v4788_v21 = vmul.f32 -1.442695, %v2100_v62 }
0x2256   :  { %5279 = vpow2.f32 %v4788_v21  ;;  %v1966_v21 = vadd.f32 %v6176_v29, %v6260_v56 }
0x2257   :  { %5281 = vtanh.f32 %v2100_v62  ;;  %v1858_v62 = vld [vmem:[#allocation2 + $0x30] sm:$0xff] }
0x2260   :  { %v5280_v23 = vpop.eup %5279 }
0x2261   :  { %v2108_v28 = vadd.f32 1.0, %v5280_v23  ;;  %v5282_v30 = vpop.eup %5281  ;;  %v1968_v23 = vadd.f32 %v6178_v60, %v6263_v51 }
0x2263   :  { %5283 = vrcp.f32 %v2108_v28 }
0x2264   :  { %5285 = vpow2.f32 %v4787_v48 }
0x2265   :  { %5287 = vpow2.f32 %v4765_v11 }
0x226d   :  { %v5284_v7 = vpop.eup %5283 }
0x226e   :  { %v2116_v47 = vsel %vm62_vm1, %v5284_v7, %v5282_v30  ;;  %v5286_v45 = vpop.eup %5285 }
0x226f   :  { %2119 = vrot.lane.b32.xlu1 %v2116_v47, %s5632_s13  ;;  %v5288_v1 = vpop.eup %5287  ;;  %v2107_v49 = vadd.f32 1.0, %v5286_v45 }
0x2270   :  { %v1805_v31 = vadd.f32 1.0, %v5288_v1 }
0x2271   :  { %5289 = vrcp.f32 %v2107_v49 }
0x2272   :  { %5291 = vrcp.f32 %v1805_v31 }
0x2273   :  { %5293 = vtanh.f32 %v1797_v12 }
0x2274   :  { %5295 = vpow2.f32 %v4764_v52 }
0x227b   :  { %v5290_v27 = vpop.eup %5289 }
0x227c   :  { %v5292_v26 = vpop.eup %5291  ;;  %v2117_v44 = vmul.f32 0.0, %v5290_v27 }
0x227d   :  { %v5294_v53 = vpop.eup %5293 }
0x227e   :  { %v1813_v54 = vsel %vm62_vm1, %v5292_v26, %v5294_v53  ;;  %v5296_v42 = vpop.eup %5295 }
0x227f   :  { %v1804_v4 = vadd.f32 1.0, %v5296_v42 }
0x2281   :  { %5297 = vrcp.f32 %v1804_v4 }
0x228b   :  { %v5298_v46 = vpop.eup %5297 }
0x228c   :  { %v1814_v10 = vmul.f32 %v5298_v46, %v6201_v35 }
0x22e1   :  { %v2120_v32 = vpop.permute.xlu1 %2119 }
0x22e2   :  { %v2122_v25 = vmul.f32 %v5290_v27, %v2120_v32 }
0x22e4   :  { %2124 = vrot.lane.b32.xlu0 %v2122_v25, %s5632_s13 }
0x22e8   :  { %1816 = vrot.lane.b32.xlu0 %v1813_v54, %s5632_s13 }
0x2356   :  { %v2125_v55 = vpop.permute.xlu0 %2124 }
0x2357   :  { %v6276_v8 = vadd.f32 %v2125_v55, %v2117_v44 }
0x2359   :  { %5299 = vtanh.f32 %v6276_v8 }
0x235a   :  { %v1817_v50 = vpop.permute.xlu0 %1816 }
0x235b   :  { %v1819_v12 = vmul.f32 %v5298_v46, %v1817_v50 }
0x235d   :  { %1821 = vrot.lane.b32.xlu0 %v1819_v12, %s5632_s13 }
0x2363   :  { %v5300_v14 = vpop.eup %5299 }
0x2364   :  { %2130 = vrot.lane.b32.xlu1 %v5300_v14, %s5632_s13 }
0x23cf   :  { %v1822_v57 = vpop.permute.xlu0 %1821 }
0x23d0   :  { %v1824_v58 = vadd.f32 %v1822_v57, %v1814_v10 }
0x23d2   :  { %5301 = vtanh.f32 %v1824_v58  ;;  %v1974_v58 = vadd.f32 %v6182_v5, %v6263_v51 }
0x23d6   :  { %v2131_v33 = vpop.permute.xlu1 %2130 }
0x23d7   :  { %v2133_v34 = vmul.f32 %v2131_v33, %v2116_v47 }
0x23d9   :  { %2134 = vst.msk [vmem:[#allocation2] sm:$0xff] %vm143_vm0, %v2133_v34  ;;  %v2137_v63 = vpack.c.bf16 %v2133_v34, %v2133_v34 }
0x23db   :  { %4789 = vmatmul.mubr.msk.bf16.vlgmr.msra.gmra.mrb[44].mxu1 %vm143_vm0, %v2137_v63 }
0x23dc   :  { %v5302_v15 = vpop.eup %5301  ;;  %2308 = vmatpush1.bf16.msra.mxu1 %v6206_v37  ;;  %2339 = vmatprep.mubr.bf16.mxu1 %v5631_v0 }
0x23dd   :  { %1827 = vrot.lane.b32.xlu0 %v5302_v15, %s5632_s13  ;;  %2309 = vmatprep.subr.bf16.mxu1 %v6210_v38 }
0x23e0   :  { %2310 = vmatpush1.bf16.msra.mxu1 %v6213_v39 }
0x23e1   :  { %2311 = vmatprep.subr.bf16.mxu1 %v6216_v3 }
0x23e4   :  { %2312 = vmatpush1.bf16.msra.mxu1 %v6219_v40 }
0x23e5   :  { %2313 = vmatprep.subr.bf16.mxu1 %v6223_v2 }
0x23e8   :  { %2314 = vmatpush1.bf16.msra.mxu1 %v6226_v41 }
0x23e9   :  { %2473 = vmatprep.subr.bf16.mxu1 %v6204_v36 }
0x244f   :  { %v1828_v35 = vpop.permute.xlu0 %1827 }
0x2450   :  { %v1830_v59 = vmul.f32 %v1828_v35, %v1813_v54 }
0x2452   :  { %1831 = vst.msk [vmem:[#allocation2 + $0x38] sm:$0xff] %vm143_vm0, %v1830_v59 }
0x2459   :  { %v1859_v19 = vld [vmem:[#allocation2 + $0x38] sm:$0xff] }
0x245a   :  { %v1863_v20 = vpack.c.bf16 %v1859_v19, %v1858_v62 }
0x245c   :  { %4778 = vmatmul.mubr.msk.bf16.gmra.mrb[68].mxu0 %vm143_vm0, %v1863_v20 }
0x245d   :  { %2256 = vmatprep.mubr.bf16.mxu0 %v5631_v0 }
0x24ae   :  { %v2175_v28 = vpop.f32.mrb[44].mxu1 }
0x24af   :  { %v2182_v30 = vadd.f32 %v2175_v28, %v1966_v21  ;;  %v2177_v7 = vpop.f32.mrb[45].mxu1 }
0x24b0   :  { %v2183_v47 = vadd.f32 %v2177_v7, %v1968_v23  ;;  %v2179_v48 = vpop.f32.mrb[46].mxu1 }
0x24b1   :  { %v2180_v11 = vpop.f32.mrb[47].mxu1  ;;  %v4790_v60 = vmul.f32 -1.442695, %v2182_v30 }
0x24b2   :  { %v4791_v45 = vmul.f32 -1.442695, %v2183_v47 }
0x24b4   :  { %5303 = vpow2.f32 %v4791_v45 }
0x24b5   :  { %5305 = vtanh.f32 %v2183_v47 }
0x24be   :  { %v5304_v1 = vpop.eup %5303 }
0x24bf   :  { %v2191_v49 = vadd.f32 1.0, %v5304_v1  ;;  %v5306_v31 = vpop.eup %5305 }
0x24c1   :  { %5307 = vrcp.f32 %v2191_v49 }
0x24c2   :  { %5309 = vpow2.f32 %v4790_v60  ;;  %v1976_v60 = vadd.f32 %v6184_v9, %v6260_v56 }
0x24cb   :  { %v5308_v27 = vpop.eup %5307 }
0x24cc   :  { %v2199_v29 = vsel %vm62_vm1, %v5308_v27, %v5306_v31  ;;  %v5310_v32 = vpop.eup %5309 }
0x24cd   :  { %2202 = vrot.lane.b32.xlu1 %v2199_v29, %s5632_s13  ;;  %v2190_v53 = vadd.f32 1.0, %v5310_v32  ;;  %v1978_v32 = vadd.f32 %v6186_v6, %v6263_v51 }
0x24cf   :  { %5311 = vrcp.f32 %v2190_v53 }
0x24d9   :  { %v5312_v42 = vpop.eup %5311 }
0x24da   :  { %v2200_v55 = vmul.f32 %v5312_v42, %v6276_v8  ;;  %v1972_v8 = vadd.f32 %v6180_v61, %v6260_v56 }
0x252f   :  { %v6304_v25 = vpop.f32.mrb[68].mxu0 }
0x2530   :  { %v6306_v26 = vpop.f32.mrb[69].mxu0 }
0x2531   :  { %v6308_v54 = vpop.f32.mrb[70].mxu0 }
0x2532   :  { %v6310_v52 = vpop.f32.mrb[71].mxu0 }
0x253f   :  { %v2203_v4 = vpop.permute.xlu1 %2202 }
0x2540   :  { %v2205_v44 = vmul.f32 %v5312_v42, %v2203_v4 }
0x2542   :  { %2207 = vrot.lane.b32.xlu1 %v2205_v44, %s5632_s13 }
0x25b4   :  { %v2208_v46 = vpop.permute.xlu1 %2207 }
0x25b5   :  { %v2210_v50 = vadd.f32 %v2208_v46, %v2200_v55 }
0x25b7   :  { %5313 = vtanh.f32 %v2210_v50 }
0x25c1   :  { %v5314_v12 = vpop.eup %5313 }
0x25c2   :  { %2213 = vrot.lane.b32.xlu1 %v5314_v12, %s5632_s13 }
0x2634   :  { %v2214_v14 = vpop.permute.xlu1 %2213 }
0x2635   :  { %v2216_v10 = vmul.f32 %v2214_v14, %v2199_v29 }
0x2637   :  { %2217 = vst.msk [vmem:[#allocation2 + $0x8] sm:$0xff] %vm143_vm0, %v2216_v10  ;;  %v2220_v57 = vpack.c.bf16 %v2216_v10, %v2216_v10 }
0x2639   :  { %4792 = vmatmul.mubr.msk.bf16.vlgmr.msra.gmra.mrb[72].mxu0 %vm143_vm0, %v2220_v57 }
0x263a   :  { %2391 = vmatpush1.bf16.msra.mxu0 %v6206_v37  ;;  %2422 = vmatprep.mubr.bf16.mxu0 %v5631_v0 }
0x263b   :  { %2392 = vmatprep.subr.bf16.mxu0 %v6210_v38 }
0x263e   :  { %2393 = vmatpush1.bf16.msra.mxu0 %v6213_v39 }
0x263f   :  { %2394 = vmatprep.subr.bf16.mxu0 %v6216_v3 }
0x2642   :  { %2395 = vmatpush1.bf16.msra.mxu0 %v6219_v40 }
0x2643   :  { %2396 = vmatprep.subr.bf16.mxu0 %v6223_v2 }
0x2646   :  { %2397 = vmatpush1.bf16.msra.mxu0 %v6226_v41 }
0x2647   :  { %2556 = vmatprep.subr.bf16.mxu0 %v6204_v36 }
0x270c   :  { %v2258_v33 = vpop.f32.mrb[72].mxu0 }
0x270d   :  { %v2265_v34 = vadd.f32 %v2258_v33, %v1972_v8  ;;  %v2260_v63 = vpop.f32.mrb[73].mxu0 }
0x270e   :  { %v2266_v15 = vadd.f32 %v2260_v63, %v1974_v58  ;;  %v2262_v35 = vpop.f32.mrb[74].mxu0 }
0x270f   :  { %v2263_v59 = vpop.f32.mrb[75].mxu0  ;;  %v4793_v5 = vmul.f32 -1.442695, %v2265_v34 }
0x2710   :  { %v4794_v62 = vmul.f32 -1.442695, %v2266_v15 }
0x2712   :  { %5315 = vpow2.f32 %v4794_v62 }
0x2713   :  { %5317 = vtanh.f32 %v2266_v15 }
0x271c   :  { %v5316_v19 = vpop.eup %5315 }
0x271d   :  { %v2274_v20 = vadd.f32 1.0, %v5316_v19  ;;  %v5318_v21 = vpop.eup %5317 }
0x271f   :  { %5319 = vrcp.f32 %v2274_v20 }
0x2720   :  { %5321 = vpow2.f32 %v4793_v5 }
0x2729   :  { %v5320_v23 = vpop.eup %5319 }
0x272a   :  { %v2282_v61 = vsel %vm62_vm1, %v5320_v23, %v5318_v21  ;;  %v5322_v28 = vpop.eup %5321  ;;  %v1982_v21 = vadd.f32 %v6191_v13, %v6260_v56  ;;  %v1984_v23 = vadd.f32 %v6193_v17, %v6263_v51 }
0x272b   :  { %2285 = vrot.lane.b32.xlu0 %v2282_v61, %s5632_s13  ;;  %v2273_v30 = vadd.f32 1.0, %v5322_v28 }
0x272d   :  { %5323 = vrcp.f32 %v2273_v30 }
0x2737   :  { %v5324_v7 = vpop.eup %5323 }
0x2738   :  { %v2283_v11 = vmul.f32 %v5324_v7, %v2210_v50 }
0x279d   :  { %v2286_v47 = vpop.permute.xlu0 %2285 }
0x279e   :  { %v2288_v48 = vmul.f32 %v5324_v7, %v2286_v47 }
0x27a0   :  { %2290 = vrot.lane.b32.xlu1 %v2288_v48, %s5632_s13 }
0x2812   :  { %v2291_v45 = vpop.permute.xlu1 %2290 }
0x2813   :  { %v2293_v1 = vadd.f32 %v2291_v45, %v2283_v11 }
0x2815   :  { %5325 = vtanh.f32 %v2293_v1 }
0x281f   :  { %v5326_v49 = vpop.eup %5325 }
0x2820   :  { %2296 = vrot.lane.b32.xlu0 %v5326_v49, %s5632_s13 }
0x2892   :  { %v2297_v31 = vpop.permute.xlu0 %2296 }
0x2893   :  { %v2299_v27 = vmul.f32 %v2297_v31, %v2282_v61 }
0x2895   :  { %2300 = vst.msk [vmem:[#allocation2 + $0x10] sm:$0xff] %vm143_vm0, %v2299_v27  ;;  %v2303_v29 = vpack.c.bf16 %v2299_v27, %v2299_v27 }
0x2897   :  { %4795 = vmatmul.mubr.msk.bf16.vlgmr.msra.gmra.mrb[48].mxu1 %vm143_vm0, %v2303_v29 }
0x2898   :  { %2474 = vmatpush1.bf16.msra.mxu1 %v6206_v37  ;;  %2505 = vmatprep.mubr.bf16.mxu1 %v5631_v0 }
0x2899   :  { %2475 = vmatprep.subr.bf16.mxu1 %v6210_v38 }
0x289c   :  { %2476 = vmatpush1.bf16.msra.mxu1 %v6213_v39 }
0x289d   :  { %2477 = vmatprep.subr.bf16.mxu1 %v6216_v3 }
0x28a0   :  { %2478 = vmatpush1.bf16.msra.mxu1 %v6219_v40 }
0x28a1   :  { %2479 = vmatprep.subr.bf16.mxu1 %v6223_v2 }
0x28a4   :  { %2480 = vmatpush1.bf16.msra.mxu1 %v6226_v41 }
0x28a5   :  { %2639 = vmatprep.subr.bf16.mxu1 %v6204_v36 }
0x296a   :  { %v2341_v53 = vpop.f32.mrb[48].mxu1 }
0x296b   :  { %v2348_v42 = vadd.f32 %v2341_v53, %v1976_v60  ;;  %v2343_v4 = vpop.f32.mrb[49].mxu1 }
0x296c   :  { %v2349_v44 = vadd.f32 %v2343_v4, %v1978_v32  ;;  %v2345_v55 = vpop.f32.mrb[50].mxu1 }
0x296d   :  { %v2346_v46 = vpop.f32.mrb[51].mxu1  ;;  %v4796_v6 = vmul.f32 -1.442695, %v2348_v42 }
0x296e   :  { %v4797_v50 = vmul.f32 -1.442695, %v2349_v44 }
0x2970   :  { %5327 = vpow2.f32 %v4797_v50 }
0x2971   :  { %5329 = vtanh.f32 %v2349_v44 }
0x297a   :  { %v5328_v12 = vpop.eup %5327 }
0x297b   :  { %v2357_v14 = vadd.f32 1.0, %v5328_v12  ;;  %v5330_v10 = vpop.eup %5329  ;;  %v1986_v12 = vadd.f32 %v6195_v18, %v6260_v56 }
0x297d   :  { %5331 = vrcp.f32 %v2357_v14 }
0x297e   :  { %5333 = vpow2.f32 %v4796_v6 }
0x2987   :  { %v5332_v36 = vpop.eup %5331 }
0x2988   :  { %v2365_v9 = vsel %vm62_vm1, %v5332_v36, %v5330_v10  ;;  %v5334_v57 = vpop.eup %5333 }
0x2989   :  { %2368 = vrot.lane.b32.xlu1 %v2365_v9, %s5632_s13  ;;  %v2356_v8 = vadd.f32 1.0, %v5334_v57 }
0x298b   :  { %5335 = vrcp.f32 %v2356_v8 }
0x2995   :  { %v5336_v58 = vpop.eup %5335 }
0x2996   :  { %v2366_v63 = vmul.f32 %v5336_v58, %v2293_v1 }
0x29fb   :  { %v2369_v33 = vpop.permute.xlu1 %2368 }
0x29fc   :  { %v2371_v34 = vmul.f32 %v5336_v58, %v2369_v33 }
0x29fe   :  { %2373 = vrot.lane.b32.xlu0 %v2371_v34, %s5632_s13 }
0x2a70   :  { %v2374_v15 = vpop.permute.xlu0 %2373 }
0x2a71   :  { %v2376_v35 = vadd.f32 %v2374_v15, %v2366_v63 }
0x2a73   :  { %5337 = vtanh.f32 %v2376_v35 }
0x2a7d   :  { %v5338_v59 = vpop.eup %5337 }
0x2a7e   :  { %2379 = vrot.lane.b32.xlu1 %v5338_v59, %s5632_s13  ;;  %v5041_v59 = vld [vmem:[#allocation4 + $0xc4] ss:$8 sps:$4 sm:$0xff]  }
0x2af0   :  { %v2380_v62 = vpop.permute.xlu1 %2379 }
0x2af1   :  { %v2382_v19 = vmul.f32 %v2380_v62, %v2365_v9 }
0x2af3   :  { %2383 = vst.msk [vmem:[#allocation2 + $0x18] sm:$0xff] %vm143_vm0, %v2382_v19  ;;  %v2386_v20 = vpack.c.bf16 %v2382_v19, %v2382_v19 }
0x2af5   :  { %4798 = vmatmul.mubr.msk.bf16.vlgmr.msra.gmra.mrb[76].mxu0 %vm143_vm0, %v2386_v20 }
0x2af6   :  { %2557 = vmatpush1.bf16.msra.mxu0 %v6206_v37  ;;  %2588 = vmatprep.mubr.bf16.mxu0 %v5631_v0 }
0x2af7   :  { %2558 = vmatprep.subr.bf16.mxu0 %v6210_v38 }
0x2afa   :  { %2559 = vmatpush1.bf16.msra.mxu0 %v6213_v39 }
0x2afb   :  { %2560 = vmatprep.subr.bf16.mxu0 %v6216_v3 }
0x2afe   :  { %2561 = vmatpush1.bf16.msra.mxu0 %v6219_v40 }
0x2aff   :  { %2562 = vmatprep.subr.bf16.mxu0 %v6223_v2 }
0x2b02   :  { %2563 = vmatpush1.bf16.msra.mxu0 %v6226_v41 }
0x2b03   :  { %2811 = vmatprep.subr.bf16.mxu0 %v5041_v59 }
0x2bc8   :  { %v2424_v61 = vpop.f32.mrb[76].mxu0 }
0x2bc9   :  { %v2431_v5 = vadd.f32 %v2424_v61, %v1982_v21  ;;  %v2426_v28 = vpop.f32.mrb[77].mxu0  ;;  %v5039_v21 = vld [vmem:[#allocation4 + $0xc0] ss:$8 sps:$4 sm:$0xff]   ;;  %v5044_v61 = vld [vmem:[#allocation4 + $0xd4] ss:$8 sps:$4 sm:$0xff]  }
0x2bca   :  { %v2432_v30 = vadd.f32 %v2426_v28, %v1984_v23  ;;  %v2428_v7 = vpop.f32.mrb[78].mxu0  ;;  %v5047_v28 = vld [vmem:[#allocation4 + $0xe4] ss:$8 sps:$4 sm:$0xff]  }
0x2bcb   :  { %v2429_v47 = vpop.f32.mrb[79].mxu0  ;;  %v4799_v17 = vmul.f32 -1.442695, %v2431_v5  ;;  %v5042_v5 = vld [vmem:[#allocation4 + $0xd0] ss:$8 sps:$4 sm:$0xff]  }
0x2bcc   :  { %v4800_v48 = vmul.f32 -1.442695, %v2432_v30  ;;  %v5050_v7 = vld [vmem:[#allocation4 + $0xf4] ss:$8 sps:$4 sm:$0xff]   ;;  %v5048_v47 = vld [vmem:[#allocation4 + $0xf0] ss:$8 sps:$4 sm:$0xff]  }
0x2bce   :  { %5339 = vpow2.f32 %v4800_v48  ;;  %v2737_v48 = vld [vmem:[#allocation2 + $0x8] sm:$0xff] }
0x2bcf   :  { %5341 = vtanh.f32 %v2432_v30  ;;  %v5045_v30 = vld [vmem:[#allocation4 + $0xe0] ss:$8 sps:$4 sm:$0xff]  }
0x2bd8   :  { %v5340_v11 = vpop.eup %5339 }
0x2bd9   :  { %v2440_v45 = vadd.f32 1.0, %v5340_v11  ;;  %v5342_v1 = vpop.eup %5341  ;;  %v2736_v11 = vld [vmem:[#allocation2] sm:$0xff] }
0x2bdb   :  { %5343 = vrcp.f32 %v2440_v45  ;;  %v2744_v45 = vpack.c.bf16 %v2737_v48, %v2736_v11  ;;  %v1996_v48 = vadd.f32 %v6308_v54, %v6260_v56  ;;  %v1998_v11 = vadd.f32 %v6310_v52, %v6263_v51 }
0x2bdc   :  { %5345 = vpow2.f32 %v4799_v17 }
0x2be5   :  { %v5344_v49 = vpop.eup %5343 }
0x2be6   :  { %v2448_v13 = vsel %vm62_vm1, %v5344_v49, %v5342_v1  ;;  %v5346_v31 = vpop.eup %5345  ;;  %v2739_v1 = vld [vmem:[#allocation2 + $0x18] sm:$0xff]  ;;  %v2738_v49 = vld [vmem:[#allocation2 + $0x10] sm:$0xff] }
0x2be7   :  { %2451 = vrot.lane.b32.xlu0 %v2448_v13, %s5632_s13  ;;  %v2439_v27 = vadd.f32 1.0, %v5346_v31 }
0x2be9   :  { %5347 = vrcp.f32 %v2439_v27 }
0x2bf3   :  { %v5348_v29 = vpop.eup %5347 }
0x2bf4   :  { %v2449_v53 = vmul.f32 %v5348_v29, %v2376_v35 }
0x2c59   :  { %v2452_v60 = vpop.permute.xlu0 %2451 }
0x2c5a   :  { %v2454_v32 = vmul.f32 %v5348_v29, %v2452_v60  ;;  %v1992_v29 = vadd.f32 %v6304_v25, %v6260_v56  ;;  %v1994_v60 = vadd.f32 %v6306_v26, %v6263_v51 }
0x2c5c   :  { %2456 = vrot.lane.b32.xlu1 %v2454_v32, %s5632_s13 }
0x2cce   :  { %v2457_v42 = vpop.permute.xlu1 %2456 }
0x2ccf   :  { %v2459_v4 = vadd.f32 %v2457_v42, %v2449_v53 }
0x2cd1   :  { %5349 = vtanh.f32 %v2459_v4 }
0x2cdb   :  { %v5350_v44 = vpop.eup %5349 }
0x2cdc   :  { %2462 = vrot.lane.b32.xlu0 %v5350_v44, %s5632_s13 }
0x2d4e   :  { %v2463_v55 = vpop.permute.xlu0 %2462 }
0x2d4f   :  { %v2465_v46 = vmul.f32 %v2463_v55, %v2448_v13  ;;  %v2745_v13 = vpack.c.bf16 %v2739_v1, %v2738_v49 }
0x2d51   :  { %2466 = vst.msk [vmem:[#allocation2 + $0x20] sm:$0xff] %vm143_vm0, %v2465_v46  ;;  %v2469_v50 = vpack.c.bf16 %v2465_v46, %v2465_v46 }
0x2d53   :  { %4801 = vmatmul.mubr.msk.bf16.vlgmr.msra.gmra.mrb[52].mxu1 %vm143_vm0, %v2469_v50 }
0x2d54   :  { %2640 = vmatpush1.bf16.msra.mxu1 %v6206_v37  ;;  %2671 = vmatprep.mubr.bf16.mxu1 %v5631_v0  ;;  %v1988_v37 = vadd.f32 %v6197_v16, %v6263_v51 }
0x2d55   :  { %2641 = vmatprep.subr.bf16.mxu1 %v6210_v38 }
0x2d58   :  { %2642 = vmatpush1.bf16.msra.mxu1 %v6213_v39  ;;  %v2740_v31 = vld [vmem:[#allocation2 + $0x20] sm:$0xff] }
0x2d59   :  { %2643 = vmatprep.subr.bf16.mxu1 %v6216_v3 }
0x2d5c   :  { %2644 = vmatpush1.bf16.msra.mxu1 %v6219_v40 }
0x2d5d   :  { %2645 = vmatprep.subr.bf16.mxu1 %v6223_v2 }
0x2d60   :  { %2646 = vmatpush1.bf16.msra.mxu1 %v6226_v41 }
0x2e26   :  { %v2507_v14 = vpop.f32.mrb[52].mxu1 }
0x2e27   :  { %v2514_v10 = vadd.f32 %v2507_v14, %v1986_v12  ;;  %v2509_v36 = vpop.f32.mrb[53].mxu1 }
0x2e28   :  { %v2515_v38 = vadd.f32 %v2509_v36, %v1988_v37  ;;  %v2511_v9 = vpop.f32.mrb[54].mxu1 }
0x2e29   :  { %v2512_v39 = vpop.f32.mrb[55].mxu1  ;;  %v4802_v16 = vmul.f32 -1.442695, %v2514_v10 }
0x2e2a   :  { %v4803_v6 = vmul.f32 -1.442695, %v2515_v38 }
0x2e2c   :  { %5351 = vpow2.f32 %v4803_v6 }
0x2e2d   :  { %5353 = vtanh.f32 %v2515_v38 }
0x2e36   :  { %v5352_v3 = vpop.eup %5351 }
0x2e37   :  { %v2523_v40 = vadd.f32 1.0, %v5352_v3  ;;  %v5354_v2 = vpop.eup %5353 }
0x2e39   :  { %5355 = vrcp.f32 %v2523_v40 }
0x2e3a   :  { %5357 = vpow2.f32 %v4802_v16 }
0x2e43   :  { %v5356_v41 = vpop.eup %5355 }
0x2e44   :  { %v2531_v18 = vsel %vm62_vm1, %v5356_v41, %v5354_v2  ;;  %v5358_v57 = vpop.eup %5357 }
0x2e45   :  { %2534 = vrot.lane.b32.xlu1 %v2531_v18, %s5632_s13  ;;  %v2522_v8 = vadd.f32 1.0, %v5358_v57 }
0x2e47   :  { %5359 = vrcp.f32 %v2522_v8 }
0x2e51   :  { %v5360_v58 = vpop.eup %5359 }
0x2e52   :  { %v2532_v63 = vmul.f32 %v5360_v58, %v2459_v4 }
0x2eb7   :  { %v2535_v33 = vpop.permute.xlu1 %2534 }
0x2eb8   :  { %v2537_v34 = vmul.f32 %v5360_v58, %v2535_v33 }
0x2eba   :  { %2539 = vrot.lane.b32.xlu0 %v2537_v34, %s5632_s13 }
0x2f2c   :  { %v2540_v15 = vpop.permute.xlu0 %2539 }
0x2f2d   :  { %v6392_v35 = vadd.f32 %v2540_v15, %v2532_v63 }
0x2f2f   :  { %5361 = vtanh.f32 %v6392_v35 }
0x2f39   :  { %v5362_v62 = vpop.eup %5361 }
0x2f3a   :  { %2545 = vrot.lane.b32.xlu1 %v5362_v62, %s5632_s13  ;;  %v6441_v62 = vld [vmem:[#allocation6 + $0xc4] ss:$8 sps:$4 sm:$0xff]  }
0x2f3b   :  { %2942 = vmatprep.subr.bf16.mxu1 %v6441_v62 }
0x2fac   :  { %v2546_v19 = vpop.permute.xlu1 %2545 }
0x2fad   :  { %v2548_v20 = vmul.f32 %v2546_v19, %v2531_v18  ;;  %v6443_v19 = vld [vmem:[#allocation6 + $0xc0] ss:$8 sps:$4 sm:$0xff]  }
0x2faf   :  { %2549 = vst.msk [vmem:[#allocation2 + $0x28] sm:$0xff] %vm143_vm0, %v2548_v20  ;;  %v2552_v23 = vpack.c.bf16 %v2548_v20, %v2548_v20  ;;  %v6447_v20 = vld [vmem:[#allocation6 + $0xd4] ss:$8 sps:$4 sm:$0xff]  }
0x2fb1   :  { %4804 = vmatmul.mubr.msk.bf16.vlgmr.msra.gmra.mrb[80].mxu0 %vm143_vm0, %v2552_v23  ;;  %v6456_v23 = vld [vmem:[#allocation6 + $0xe0] ss:$8 sps:$4 sm:$0xff]  }
0x2fb2   :  { %2812 = vmatpush1.bf16.msra.mxu0 %v5039_v21  ;;  %2843 = vmatprep.mubr.bf16.mxu0 %v5631_v0  ;;  %v6450_v21 = vld [vmem:[#allocation6 + $0xd0] ss:$8 sps:$4 sm:$0xff]  }
0x2fb3   :  { %2813 = vmatprep.subr.bf16.mxu0 %v5044_v61 }
0x2fb6   :  { %2814 = vmatpush1.bf16.msra.mxu0 %v5042_v5  ;;  %v2741_v17 = vld [vmem:[#allocation2 + $0x28] sm:$0xff]  ;;  %v6460_v5 = vld [vmem:[#allocation6 + $0xf4] ss:$8 sps:$4 sm:$0xff]  }
0x2fb7   :  { %2815 = vmatprep.subr.bf16.mxu0 %v5047_v28  ;;  %v2746_v27 = vpack.c.bf16 %v2741_v17, %v2740_v31  ;;  %v6463_v28 = vld [vmem:[#allocation6 + $0xf0] ss:$8 sps:$4 sm:$0xff]  }
0x2fba   :  { %2816 = vmatpush1.bf16.msra.mxu0 %v5045_v30 }
0x2fbb   :  { %2817 = vmatprep.subr.bf16.mxu0 %v5050_v7 }
0x2fbe   :  { %2818 = vmatpush1.bf16.msra.mxu0 %v5048_v47 }
0x2fbf   :  { %3108 = vmatprep.subr.bf16.mxu0 %v6441_v62 }
0x2fc1   :  { %4819 = vmatmul.mubr.msk.bf16.vlgmr.msra.gmra.mrb[84].mxu0 %vm143_vm0, %v2744_v45 }
0x2fc2   :  { %2853 = vmatprep.mubr.bf16.mxu0 %v5631_v0  ;;  %3109 = vmatpush1.bf16.msra.mxu0 %v6443_v19 }
0x2fc3   :  { %3110 = vmatprep.subr.bf16.mxu0 %v6447_v20 }
0x2fc6   :  { %3111 = vmatpush1.bf16.msra.mxu0 %v6450_v21 }
0x2fc9   :  { %4820 = vmatmul.mubr.msk.bf16.gmra.mrb[88].mxu0 %vm143_vm0, %v2745_v13 }
0x2fca   :  { %2863 = vmatprep.mubr.bf16.mxu0 %v5631_v0 }
0x2fd1   :  { %4821 = vmatmul.mubr.msk.bf16.gmra.mrb[92].mxu0 %vm143_vm0, %v2746_v27  ;;  %v4810_v27 = vld [vmem:[%s6931_s3 + $0x6] sm:$0x3] }
0x2fd2   :  { %2873 = vmatprep.mubr.bf16.mxu0 %v5631_v0 }
0x3084   :  { %v2590_v32 = vpop.f32.mrb[80].mxu0 }
0x3085   :  { %v2597_v53 = vadd.f32 %v2590_v32, %v1992_v29  ;;  %v2592_v42 = vpop.f32.mrb[81].mxu0  ;;  %v6497_v29 = vrot.slane %v4810_v27, %v5758_v22 }
0x3086   :  { %v2598_v4 = vadd.f32 %v2592_v42, %v1994_v60  ;;  %v2594_v44 = vpop.f32.mrb[82].mxu0  ;;  %v6500_v60 = vrot.slane %v4810_v27, %v5763_v24 }
0x3087   :  { %v2595_v55 = vpop.f32.mrb[83].mxu0  ;;  %v4805_v16 = vmul.f32 -1.442695, %v2597_v53 }
0x3088   :  { %v4806_v46 = vmul.f32 -1.442695, %v2598_v4 }
0x308a   :  { %5363 = vpow2.f32 %v4806_v46 }
0x308b   :  { %5365 = vtanh.f32 %v2598_v4 }
0x3094   :  { %v5364_v50 = vpop.eup %5363  ;;  %v6409_v12 = vpop.f32.mrb[84].mxu0 }
0x3095   :  { %v2606_v37 = vadd.f32 1.0, %v5364_v50  ;;  %v6411_v14 = vpop.f32.mrb[85].mxu0  ;;  %v5366_v39 = vpop.eup %5365  ;;  %v2846_v56 = vadd.f32 %v6409_v12, %v6497_v29 }
0x3096   :  { %v6413_v10 = vpop.f32.mrb[86].mxu0  ;;  %v2848_v51 = vadd.f32 %v6411_v14, %v6500_v60 }
0x3097   :  { %5367 = vrcp.f32 %v2606_v37  ;;  %v6415_v25 = vpop.f32.mrb[87].mxu0 }
0x3098   :  { %5369 = vpow2.f32 %v4805_v16 }
0x309c   :  { %v6417_v26 = vpop.f32.mrb[88].mxu0 }
0x309d   :  { %v6419_v36 = vpop.f32.mrb[89].mxu0 }
0x309e   :  { %v6421_v38 = vpop.f32.mrb[90].mxu0 }
0x309f   :  { %v6423_v9 = vpop.f32.mrb[91].mxu0 }
0x30a1   :  { %v5368_v6 = vpop.eup %5367 }
0x30a2   :  { %v2614_v3 = vsel %vm62_vm1, %v5368_v6, %v5366_v39  ;;  %v5370_v57 = vpop.eup %5369 }
0x30a3   :  { %2617 = vrot.lane.b32.xlu0 %v2614_v3, %s5632_s13  ;;  %v2605_v8 = vadd.f32 1.0, %v5370_v57 }
0x30a4   :  { %v6428_v40 = vpop.f32.mrb[92].mxu0 }
0x30a5   :  { %v6430_v2 = vpop.f32.mrb[93].mxu0  ;;  %5371 = vrcp.f32 %v2605_v8 }
0x30a6   :  { %v6432_v41 = vpop.f32.mrb[94].mxu0 }
0x30a7   :  { %v6434_v18 = vpop.f32.mrb[95].mxu0 }
0x30af   :  { %v5372_v58 = vpop.eup %5371 }
0x30b0   :  { %v2615_v63 = vmul.f32 %v5372_v58, %v6392_v35  ;;  %v6453_v35 = vld [vmem:[#allocation6 + $0xe4] ss:$8 sps:$4 sm:$0xff]  }
0x30b1   :  { %3112 = vmatprep.subr.bf16.mxu0 %v6453_v35 }
0x30b2   :  { %3113 = vmatpush1.bf16.msra.mxu0 %v6456_v23 }
0x30b3   :  { %3114 = vmatprep.subr.bf16.mxu0 %v6460_v5 }
0x30b6   :  { %3115 = vmatpush1.bf16.msra.mxu0 %v6463_v28 }
0x30b7   :  { %3274 = vmatprep.subr.bf16.mxu0 %v6441_v62 }
0x3115   :  { %v2618_v33 = vpop.permute.xlu0 %2617 }
0x3116   :  { %v2620_v34 = vmul.f32 %v5372_v58, %v2618_v33 }
0x3118   :  { %2622 = vrot.lane.b32.xlu1 %v2620_v34, %s5632_s13 }
0x318a   :  { %v2623_v15 = vpop.permute.xlu1 %2622 }
0x318b   :  { %v6438_v59 = vadd.f32 %v2623_v15, %v2615_v63 }
0x318d   :  { %5373 = vtanh.f32 %v6438_v59 }
0x3197   :  { %v5374_v61 = vpop.eup %5373 }
0x3198   :  { %2628 = vrot.lane.b32.xlu0 %v5374_v61, %s5632_s13 }
0x320a   :  { %v2629_v30 = vpop.permute.xlu0 %2628 }
0x320b   :  { %v2631_v7 = vmul.f32 %v2629_v30, %v2614_v3 }
0x320d   :  { %2632 = vst.msk [vmem:[#allocation2 + $0x30] sm:$0xff] %vm143_vm0, %v2631_v7  ;;  %v2635_v47 = vpack.c.bf16 %v2631_v7, %v2631_v7 }
0x320f   :  { %4807 = vmatmul.mubr.msk.bf16.vlgmr.msra.gmra.mrb[56].mxu1 %vm143_vm0, %v2635_v47 }
0x3210   :  { %2943 = vmatpush1.bf16.msra.mxu1 %v6443_v19  ;;  %2974 = vmatprep.mubr.bf16.mxu1 %v5631_v0 }
0x3211   :  { %2944 = vmatprep.subr.bf16.mxu1 %v6447_v20 }
0x3214   :  { %2945 = vmatpush1.bf16.msra.mxu1 %v6450_v21 }
0x3215   :  { %2946 = vmatprep.subr.bf16.mxu1 %v6453_v35 }
0x3218   :  { %2947 = vmatpush1.bf16.msra.mxu1 %v6456_v23 }
0x3219   :  { %2948 = vmatprep.subr.bf16.mxu1 %v6460_v5 }
0x321c   :  { %2949 = vmatpush1.bf16.msra.mxu1 %v6463_v28 }
0x321d   :  { %3025 = vmatprep.subr.bf16.mxu1 %v6441_v62 }
0x321f   :  { %2975 = vmatmul.mubr.bf16.vlgmr.msra.gmra.mrb[60].mxu1 %v5631_v0 }
0x3220   :  { %3026 = vmatpush1.bf16.msra.mxu1 %v6443_v19  ;;  %3057 = vmatprep.mubr.bf16.mxu1 %v5631_v0 }
0x3221   :  { %3027 = vmatprep.subr.bf16.mxu1 %v6447_v20 }
0x3224   :  { %3028 = vmatpush1.bf16.msra.mxu1 %v6450_v21 }
0x3225   :  { %3029 = vmatprep.subr.bf16.mxu1 %v6453_v35 }
0x3228   :  { %3030 = vmatpush1.bf16.msra.mxu1 %v6456_v23 }
0x3229   :  { %3031 = vmatprep.subr.bf16.mxu1 %v6460_v5 }
0x322c   :  { %3032 = vmatpush1.bf16.msra.mxu1 %v6463_v28 }
0x322d   :  { %3191 = vmatprep.subr.bf16.mxu1 %v6441_v62 }
0x32e2   :  { %v2673_v45 = vpop.f32.mrb[56].mxu1 }
0x32e3   :  { %v2680_v1 = vadd.f32 %v2673_v45, %v1996_v48  ;;  %v2675_v49 = vpop.f32.mrb[57].mxu1 }
0x32e4   :  { %v2681_v13 = vadd.f32 %v2675_v49, %v1998_v11  ;;  %v2677_v17 = vpop.f32.mrb[58].mxu1 }
0x32e5   :  { %v2678_v31 = vpop.f32.mrb[59].mxu1  ;;  %v4808_v61 = vmul.f32 -1.442695, %v2680_v1 }
0x32e6   :  { %v4809_v39 = vmul.f32 -1.442695, %v2681_v13 }
0x32f2   :  { %v2976_v54 = vpop.f32.mrb[60].mxu1 }
0x32f3   :  { %v2983_v52 = vadd.f32 %v2976_v54, %v2846_v56  ;;  %v2978_v32 = vpop.f32.mrb[61].mxu1 }
0x32f4   :  { %v2984_v53 = vadd.f32 %v2978_v32, %v2848_v51  ;;  %v2980_v42 = vpop.f32.mrb[62].mxu1 }
0x32f5   :  { %v2981_v4 = vpop.f32.mrb[63].mxu1  ;;  %v4831_v14 = vmul.f32 -1.442695, %v2983_v52 }
0x32f6   :  { %v4832_v44 = vmul.f32 -1.442695, %v2984_v53 }
0x32f8   :  { %5375 = vpow2.f32 %v4832_v44  ;;  %v2850_v44 = vadd.f32 %v6413_v10, %v6497_v29 }
0x32f9   :  { %5377 = vtanh.f32 %v2984_v53  ;;  %v2742_v53 = vld [vmem:[#allocation2 + $0x30] sm:$0xff] }
0x3302   :  { %v5376_v55 = vpop.eup %5375 }
0x3303   :  { %v2992_v46 = vadd.f32 1.0, %v5376_v55  ;;  %v5378_v50 = vpop.eup %5377  ;;  %v2852_v55 = vadd.f32 %v6415_v25, %v6500_v60 }
0x3305   :  { %5379 = vrcp.f32 %v2992_v46 }
0x3306   :  { %5381 = vpow2.f32 %v4831_v14 }
0x3307   :  { %5383 = vpow2.f32 %v4809_v39 }
0x330f   :  { %v5380_v37 = vpop.eup %5379 }
0x3310   :  { %v3000_v12 = vsel %vm62_vm1, %v5380_v37, %v5378_v50  ;;  %v5382_v6 = vpop.eup %5381 }
0x3311   :  { %3003 = vrot.lane.b32.xlu1 %v3000_v12, %s5632_s13  ;;  %v5384_v3 = vpop.eup %5383  ;;  %v2991_v16 = vadd.f32 1.0, %v5382_v6 }
0x3312   :  { %v2689_v57 = vadd.f32 1.0, %v5384_v3 }
0x3313   :  { %5385 = vrcp.f32 %v2991_v16 }
0x3314   :  { %5387 = vrcp.f32 %v2689_v57 }
0x3315   :  { %5389 = vtanh.f32 %v2681_v13 }
0x3316   :  { %5391 = vpow2.f32 %v4808_v61 }
0x331d   :  { %v5386_v8 = vpop.eup %5385 }
0x331e   :  { %v5388_v34 = vpop.eup %5387  ;;  %v3001_v47 = vmul.f32 0.0, %v5386_v8 }
0x331f   :  { %v5390_v63 = vpop.eup %5389 }
0x3320   :  { %v2697_v15 = vsel %vm62_vm1, %v5388_v34, %v5390_v63  ;;  %v5392_v30 = vpop.eup %5391 }
0x3321   :  { %v2688_v7 = vadd.f32 1.0, %v5392_v30 }
0x3323   :  { %5393 = vrcp.f32 %v2688_v7 }
0x332d   :  { %v5394_v45 = vpop.eup %5393 }
0x332e   :  { %v2698_v1 = vmul.f32 %v5394_v45, %v6438_v59 }
0x3383   :  { %v3004_v58 = vpop.permute.xlu1 %3003 }
0x3384   :  { %v3006_v33 = vmul.f32 %v5386_v8, %v3004_v58 }
0x3386   :  { %3008 = vrot.lane.b32.xlu0 %v3006_v33, %s5632_s13 }
0x338a   :  { %2700 = vrot.lane.b32.xlu0 %v2697_v15, %s5632_s13 }
0x33f8   :  { %v3009_v48 = vpop.permute.xlu0 %3008 }
0x33f9   :  { %v6513_v11 = vadd.f32 %v3009_v48, %v3001_v47 }
0x33fb   :  { %5395 = vtanh.f32 %v6513_v11 }
0x33fc   :  { %v2701_v49 = vpop.permute.xlu0 %2700 }
0x33fd   :  { %v2703_v13 = vmul.f32 %v5394_v45, %v2701_v49 }
0x33ff   :  { %2705 = vrot.lane.b32.xlu0 %v2703_v13, %s5632_s13 }
0x3405   :  { %v5396_v17 = vpop.eup %5395 }
0x3406   :  { %3014 = vrot.lane.b32.xlu1 %v5396_v17, %s5632_s13 }
0x3471   :  { %v2706_v31 = vpop.permute.xlu0 %2705 }
0x3472   :  { %v2708_v27 = vadd.f32 %v2706_v31, %v2698_v1 }
0x3474   :  { %5397 = vtanh.f32 %v2708_v27  ;;  %v2858_v27 = vadd.f32 %v6419_v36, %v6500_v60 }
0x3478   :  { %v3015_v56 = vpop.permute.xlu1 %3014 }
0x3479   :  { %v3017_v51 = vmul.f32 %v3015_v56, %v3000_v12 }
0x347b   :  { %3018 = vst.msk [vmem:[#allocation2] sm:$0xff] %vm143_vm0, %v3017_v51  ;;  %v3021_v54 = vpack.c.bf16 %v3017_v51, %v3017_v51 }
0x347d   :  { %4833 = vmatmul.mubr.msk.bf16.vlgmr.msra.gmra.mrb[64].mxu1 %vm143_vm0, %v3021_v54 }
0x347e   :  { %v5398_v52 = vpop.eup %5397  ;;  %3192 = vmatpush1.bf16.msra.mxu1 %v6443_v19  ;;  %3223 = vmatprep.mubr.bf16.mxu1 %v5631_v0 }
0x347f   :  { %2711 = vrot.lane.b32.xlu0 %v5398_v52, %s5632_s13  ;;  %3193 = vmatprep.subr.bf16.mxu1 %v6447_v20 }
0x3482   :  { %3194 = vmatpush1.bf16.msra.mxu1 %v6450_v21 }
0x3483   :  { %3195 = vmatprep.subr.bf16.mxu1 %v6453_v35 }
0x3486   :  { %3196 = vmatpush1.bf16.msra.mxu1 %v6456_v23 }
0x3487   :  { %3197 = vmatprep.subr.bf16.mxu1 %v6460_v5 }
0x348a   :  { %3198 = vmatpush1.bf16.msra.mxu1 %v6463_v28 }
0x348b   :  { %3357 = vmatprep.subr.bf16.mxu1 %v6441_v62 }
0x34f1   :  { %v2712_v59 = vpop.permute.xlu0 %2711 }
0x34f2   :  { %v2714_v32 = vmul.f32 %v2712_v59, %v2697_v15 }
0x34f4   :  { %2715 = vst.msk [vmem:[#allocation2 + $0x38] sm:$0xff] %vm143_vm0, %v2714_v32 }
0x34fb   :  { %v2743_v42 = vld [vmem:[#allocation2 + $0x38] sm:$0xff] }
0x34fc   :  { %v2747_v4 = vpack.c.bf16 %v2743_v42, %v2742_v53 }
0x34fe   :  { %4822 = vmatmul.mubr.msk.bf16.gmra.mrb[96].mxu0 %vm143_vm0, %v2747_v4 }
0x34ff   :  { %3140 = vmatprep.mubr.bf16.mxu0 %v5631_v0 }
0x3550   :  { %v3059_v46 = vpop.f32.mrb[64].mxu1 }
0x3551   :  { %v3066_v50 = vadd.f32 %v3059_v46, %v2850_v44  ;;  %v3061_v37 = vpop.f32.mrb[65].mxu1 }
0x3552   :  { %v3067_v12 = vadd.f32 %v3061_v37, %v2852_v55  ;;  %v3063_v14 = vpop.f32.mrb[66].mxu1 }
0x3553   :  { %v3064_v39 = vpop.f32.mrb[67].mxu1  ;;  %v4834_v25 = vmul.f32 -1.442695, %v3066_v50 }
0x3554   :  { %v4835_v6 = vmul.f32 -1.442695, %v3067_v12 }
0x3556   :  { %5399 = vpow2.f32 %v4835_v6 }
0x3557   :  { %5401 = vtanh.f32 %v3067_v12 }
0x3560   :  { %v5400_v3 = vpop.eup %5399 }
0x3561   :  { %v3075_v16 = vadd.f32 1.0, %v5400_v3  ;;  %v5402_v57 = vpop.eup %5401 }
0x3563   :  { %5403 = vrcp.f32 %v3075_v16 }
0x3564   :  { %5405 = vpow2.f32 %v4834_v25  ;;  %v2860_v25 = vadd.f32 %v6421_v38, %v6497_v29 }
0x356d   :  { %v5404_v8 = vpop.eup %5403 }
0x356e   :  { %v3083_v10 = vsel %vm62_vm1, %v5404_v8, %v5402_v57  ;;  %v5406_v58 = vpop.eup %5405 }
0x356f   :  { %3086 = vrot.lane.b32.xlu1 %v3083_v10, %s5632_s13  ;;  %v3074_v63 = vadd.f32 1.0, %v5406_v58  ;;  %v2862_v58 = vadd.f32 %v6423_v9, %v6500_v60 }
0x3571   :  { %5407 = vrcp.f32 %v3074_v63 }
0x357b   :  { %v5408_v30 = vpop.eup %5407 }
0x357c   :  { %v3084_v48 = vmul.f32 %v5408_v30, %v6513_v11  ;;  %v2856_v11 = vadd.f32 %v6417_v26, %v6497_v29 }
0x35d1   :  { %v6541_v33 = vpop.f32.mrb[96].mxu0 }
0x35d2   :  { %v6543_v34 = vpop.f32.mrb[97].mxu0 }
0x35d3   :  { %v6545_v15 = vpop.f32.mrb[98].mxu0 }
0x35d4   :  { %v6547_v61 = vpop.f32.mrb[99].mxu0 }
0x35e1   :  { %v3087_v7 = vpop.permute.xlu1 %3086 }
0x35e2   :  { %v3089_v47 = vmul.f32 %v5408_v30, %v3087_v7 }
0x35e4   :  { %3091 = vrot.lane.b32.xlu1 %v3089_v47, %s5632_s13 }
0x3656   :  { %v3092_v45 = vpop.permute.xlu1 %3091 }
0x3657   :  { %v3094_v49 = vadd.f32 %v3092_v45, %v3084_v48 }
0x3659   :  { %5409 = vtanh.f32 %v3094_v49 }
0x3663   :  { %v5410_v13 = vpop.eup %5409 }
0x3664   :  { %3097 = vrot.lane.b32.xlu1 %v5410_v13, %s5632_s13 }
0x36d6   :  { %v3098_v17 = vpop.permute.xlu1 %3097 }
0x36d7   :  { %v3100_v1 = vmul.f32 %v3098_v17, %v3083_v10 }
0x36d9   :  { %3101 = vst.msk [vmem:[#allocation2 + $0x8] sm:$0xff] %vm143_vm0, %v3100_v1  ;;  %v3104_v31 = vpack.c.bf16 %v3100_v1, %v3100_v1 }
0x36db   :  { %4836 = vmatmul.mubr.msk.bf16.vlgmr.msra.gmra.mrb[100].mxu0 %vm143_vm0, %v3104_v31 }
0x36dc   :  { %3275 = vmatpush1.bf16.msra.mxu0 %v6443_v19  ;;  %3306 = vmatprep.mubr.bf16.mxu0 %v5631_v0 }
0x36dd   :  { %3276 = vmatprep.subr.bf16.mxu0 %v6447_v20 }
0x36e0   :  { %3277 = vmatpush1.bf16.msra.mxu0 %v6450_v21 }
0x36e1   :  { %3278 = vmatprep.subr.bf16.mxu0 %v6453_v35 }
0x36e4   :  { %3279 = vmatpush1.bf16.msra.mxu0 %v6456_v23 }
0x36e5   :  { %3280 = vmatprep.subr.bf16.mxu0 %v6460_v5 }
0x36e8   :  { %3281 = vmatpush1.bf16.msra.mxu0 %v6463_v28 }
0x36e9   :  { %3440 = vmatprep.subr.bf16.mxu0 %v6441_v62 }
0x37ae   :  { %v3142_v56 = vpop.f32.mrb[100].mxu0 }
0x37af   :  { %v3149_v51 = vadd.f32 %v3142_v56, %v2856_v11  ;;  %v3144_v54 = vpop.f32.mrb[101].mxu0 }
0x37b0   :  { %v3150_v52 = vadd.f32 %v3144_v54, %v2858_v27  ;;  %v3146_v59 = vpop.f32.mrb[102].mxu0 }
0x37b1   :  { %v3147_v32 = vpop.f32.mrb[103].mxu0  ;;  %v4837_v36 = vmul.f32 -1.442695, %v3149_v51 }
0x37b2   :  { %v4838_v53 = vmul.f32 -1.442695, %v3150_v52 }
0x37b4   :  { %5411 = vpow2.f32 %v4838_v53 }
0x37b5   :  { %5413 = vtanh.f32 %v3150_v52 }
0x37be   :  { %v5412_v42 = vpop.eup %5411 }
0x37bf   :  { %v3158_v4 = vadd.f32 1.0, %v5412_v42  ;;  %v5414_v44 = vpop.eup %5413 }
0x37c1   :  { %5415 = vrcp.f32 %v3158_v4 }
0x37c2   :  { %5417 = vpow2.f32 %v4837_v36 }
0x37cb   :  { %v5416_v55 = vpop.eup %5415 }
0x37cc   :  { %v3166_v26 = vsel %vm62_vm1, %v5416_v55, %v5414_v44  ;;  %v5418_v46 = vpop.eup %5417  ;;  %v2866_v44 = vadd.f32 %v6428_v40, %v6497_v29  ;;  %v2868_v55 = vadd.f32 %v6430_v2, %v6500_v60 }
0x37cd   :  { %3169 = vrot.lane.b32.xlu0 %v3166_v26, %s5632_s13  ;;  %v3157_v50 = vadd.f32 1.0, %v5418_v46 }
0x37cf   :  { %5419 = vrcp.f32 %v3157_v50 }
0x37d9   :  { %v5420_v37 = vpop.eup %5419 }
0x37da   :  { %v3167_v39 = vmul.f32 %v5420_v37, %v3094_v49 }
0x383f   :  { %v3170_v12 = vpop.permute.xlu0 %3169 }
0x3840   :  { %v3172_v14 = vmul.f32 %v5420_v37, %v3170_v12 }
0x3842   :  { %3174 = vrot.lane.b32.xlu1 %v3172_v14, %s5632_s13 }
0x38b4   :  { %v3175_v6 = vpop.permute.xlu1 %3174 }
0x38b5   :  { %v3177_v3 = vadd.f32 %v3175_v6, %v3167_v39 }
0x38b7   :  { %5421 = vtanh.f32 %v3177_v3 }
0x38c1   :  { %v5422_v16 = vpop.eup %5421 }
0x38c2   :  { %3180 = vrot.lane.b32.xlu0 %v5422_v16, %s5632_s13 }
0x3934   :  { %v3181_v57 = vpop.permute.xlu0 %3180 }
0x3935   :  { %v3183_v8 = vmul.f32 %v3181_v57, %v3166_v26 }
0x3937   :  { %3184 = vst.msk [vmem:[#allocation2 + $0x10] sm:$0xff] %vm143_vm0, %v3183_v8  ;;  %v3187_v10 = vpack.c.bf16 %v3183_v8, %v3183_v8 }
0x3939   :  { %4839 = vmatmul.mubr.msk.bf16.vlgmr.msra.gmra.mrb[68].mxu1 %vm143_vm0, %v3187_v10 }
0x393a   :  { %3358 = vmatpush1.bf16.msra.mxu1 %v6443_v19  ;;  %3389 = vmatprep.mubr.bf16.mxu1 %v5631_v0 }
0x393b   :  { %3359 = vmatprep.subr.bf16.mxu1 %v6447_v20 }
0x393e   :  { %3360 = vmatpush1.bf16.msra.mxu1 %v6450_v21 }
0x393f   :  { %3361 = vmatprep.subr.bf16.mxu1 %v6453_v35 }
0x3942   :  { %3362 = vmatpush1.bf16.msra.mxu1 %v6456_v23 }
0x3943   :  { %3363 = vmatprep.subr.bf16.mxu1 %v6460_v5 }
0x3946   :  { %3364 = vmatpush1.bf16.msra.mxu1 %v6463_v28 }
0x3947   :  { %3523 = vmatprep.subr.bf16.mxu1 %v6441_v62 }
0x3a0c   :  { %v3225_v63 = vpop.f32.mrb[68].mxu1 }
0x3a0d   :  { %v3232_v30 = vadd.f32 %v3225_v63, %v2860_v25  ;;  %v3227_v7 = vpop.f32.mrb[69].mxu1 }
0x3a0e   :  { %v3233_v47 = vadd.f32 %v3227_v7, %v2862_v58  ;;  %v3229_v48 = vpop.f32.mrb[70].mxu1 }
0x3a0f   :  { %v3230_v45 = vpop.f32.mrb[71].mxu1  ;;  %v4840_v9 = vmul.f32 -1.442695, %v3232_v30 }
0x3a10   :  { %v4841_v49 = vmul.f32 -1.442695, %v3233_v47 }
0x3a12   :  { %5423 = vpow2.f32 %v4841_v49 }
0x3a13   :  { %5425 = vtanh.f32 %v3233_v47 }
0x3a1c   :  { %v5424_v13 = vpop.eup %5423 }
0x3a1d   :  { %v3241_v17 = vadd.f32 1.0, %v5424_v13  ;;  %v5426_v1 = vpop.eup %5425  ;;  %v2870_v13 = vadd.f32 %v6432_v41, %v6497_v29 }
0x3a1f   :  { %5427 = vrcp.f32 %v3241_v17 }
0x3a20   :  { %5429 = vpow2.f32 %v4840_v9 }
0x3a29   :  { %v5428_v62 = vpop.eup %5427 }
0x3a2a   :  { %v3249_v38 = vsel %vm62_vm1, %v5428_v62, %v5426_v1  ;;  %v5430_v31 = vpop.eup %5429 }
0x3a2b   :  { %3252 = vrot.lane.b32.xlu1 %v3249_v38, %s5632_s13  ;;  %v3240_v11 = vadd.f32 1.0, %v5430_v31 }
0x3a2d   :  { %5431 = vrcp.f32 %v3240_v11 }
0x3a37   :  { %v5432_v27 = vpop.eup %5431 }
0x3a38   :  { %v3250_v54 = vmul.f32 %v5432_v27, %v3177_v3 }
0x3a9d   :  { %v3253_v56 = vpop.permute.xlu1 %3252 }
0x3a9e   :  { %v3255_v51 = vmul.f32 %v5432_v27, %v3253_v56 }
0x3aa0   :  { %3257 = vrot.lane.b32.xlu0 %v3255_v51, %s5632_s13 }
0x3b12   :  { %v3258_v52 = vpop.permute.xlu0 %3257 }
0x3b13   :  { %v3260_v59 = vadd.f32 %v3258_v52, %v3250_v54 }
0x3b15   :  { %5433 = vtanh.f32 %v3260_v59 }
0x3b1f   :  { %v5434_v32 = vpop.eup %5433 }
0x3b20   :  { %3263 = vrot.lane.b32.xlu1 %v5434_v32, %s5632_s13  ;;  %v5065_v32 = vld [vmem:[#allocation4 + $0x104] ss:$8 sps:$4 sm:$0xff]  }
0x3b92   :  { %v3264_v53 = vpop.permute.xlu1 %3263 }
0x3b93   :  { %v3266_v42 = vmul.f32 %v3264_v53, %v3249_v38 }
0x3b95   :  { %3267 = vst.msk [vmem:[#allocation2 + $0x18] sm:$0xff] %vm143_vm0, %v3266_v42  ;;  %v3270_v4 = vpack.c.bf16 %v3266_v42, %v3266_v42 }
0x3b97   :  { %4842 = vmatmul.mubr.msk.bf16.vlgmr.msra.gmra.mrb[104].mxu0 %vm143_vm0, %v3270_v4 }
0x3b98   :  { %3441 = vmatpush1.bf16.msra.mxu0 %v6443_v19  ;;  %3472 = vmatprep.mubr.bf16.mxu0 %v5631_v0 }
0x3b99   :  { %3442 = vmatprep.subr.bf16.mxu0 %v6447_v20 }
0x3b9c   :  { %3443 = vmatpush1.bf16.msra.mxu0 %v6450_v21 }
0x3b9d   :  { %3444 = vmatprep.subr.bf16.mxu0 %v6453_v35 }
0x3ba0   :  { %3445 = vmatpush1.bf16.msra.mxu0 %v6456_v23 }
0x3ba1   :  { %3446 = vmatprep.subr.bf16.mxu0 %v6460_v5 }
0x3ba4   :  { %3447 = vmatpush1.bf16.msra.mxu0 %v6463_v28 }
0x3ba5   :  { %3695 = vmatprep.subr.bf16.mxu0 %v5065_v32 }
0x3c6a   :  { %v3308_v26 = vpop.f32.mrb[104].mxu0 }
0x3c6b   :  { %v3315_v36 = vadd.f32 %v3308_v26, %v2866_v44  ;;  %v3310_v46 = vpop.f32.mrb[105].mxu0  ;;  %v5063_v44 = vld [vmem:[#allocation4 + $0x100] ss:$8 sps:$4 sm:$0xff]   ;;  %v5068_v26 = vld [vmem:[#allocation4 + $0x114] ss:$8 sps:$4 sm:$0xff]  }
0x3c6c   :  { %v3316_v50 = vadd.f32 %v3310_v46, %v2868_v55  ;;  %v3312_v37 = vpop.f32.mrb[106].mxu0  ;;  %v5071_v46 = vld [vmem:[#allocation4 + $0x124] ss:$8 sps:$4 sm:$0xff]  }
0x3c6d   :  { %v3313_v12 = vpop.f32.mrb[107].mxu0  ;;  %v4843_v2 = vmul.f32 -1.442695, %v3315_v36  ;;  %v5066_v36 = vld [vmem:[#allocation4 + $0x110] ss:$8 sps:$4 sm:$0xff]  }
0x3c6e   :  { %v4844_v14 = vmul.f32 -1.442695, %v3316_v50  ;;  %v5074_v37 = vld [vmem:[#allocation4 + $0x134] ss:$8 sps:$4 sm:$0xff]   ;;  %v5072_v12 = vld [vmem:[#allocation4 + $0x130] ss:$8 sps:$4 sm:$0xff]  }
0x3c70   :  { %5435 = vpow2.f32 %v4844_v14  ;;  %v3621_v14 = vld [vmem:[#allocation2 + $0x8] sm:$0xff] }
0x3c71   :  { %5437 = vtanh.f32 %v3316_v50  ;;  %v5069_v50 = vld [vmem:[#allocation4 + $0x120] ss:$8 sps:$4 sm:$0xff]  }
0x3c7a   :  { %v5436_v39 = vpop.eup %5435 }
0x3c7b   :  { %v3324_v6 = vadd.f32 1.0, %v5436_v39  ;;  %v5438_v3 = vpop.eup %5437  ;;  %v3620_v39 = vld [vmem:[#allocation2] sm:$0xff] }
0x3c7d   :  { %5439 = vrcp.f32 %v3324_v6  ;;  %v3628_v6 = vpack.c.bf16 %v3621_v14, %v3620_v39  ;;  %v2880_v14 = vadd.f32 %v6545_v15, %v6497_v29  ;;  %v2882_v39 = vadd.f32 %v6547_v61, %v6500_v60 }
0x3c7e   :  { %5441 = vpow2.f32 %v4843_v2 }
0x3c87   :  { %v5440_v16 = vpop.eup %5439 }
0x3c88   :  { %v3332_v40 = vsel %vm62_vm1, %v5440_v16, %v5438_v3  ;;  %v5442_v57 = vpop.eup %5441  ;;  %v3623_v3 = vld [vmem:[#allocation2 + $0x18] sm:$0xff]  ;;  %v3622_v16 = vld [vmem:[#allocation2 + $0x10] sm:$0xff] }
0x3c89   :  { %3335 = vrot.lane.b32.xlu0 %v3332_v40, %s5632_s13  ;;  %v3323_v8 = vadd.f32 1.0, %v5442_v57 }
0x3c8b   :  { %5443 = vrcp.f32 %v3323_v8 }
0x3c95   :  { %v5444_v10 = vpop.eup %5443 }
0x3c96   :  { %v3333_v63 = vmul.f32 %v5444_v10, %v3260_v59 }
0x3cfb   :  { %v3336_v25 = vpop.permute.xlu0 %3335 }
0x3cfc   :  { %v3338_v58 = vmul.f32 %v5444_v10, %v3336_v25  ;;  %v2876_v10 = vadd.f32 %v6541_v33, %v6497_v29  ;;  %v2878_v25 = vadd.f32 %v6543_v34, %v6500_v60 }
0x3cfe   :  { %3340 = vrot.lane.b32.xlu1 %v3338_v58, %s5632_s13 }
0x3d70   :  { %v3341_v30 = vpop.permute.xlu1 %3340 }
0x3d71   :  { %v3343_v7 = vadd.f32 %v3341_v30, %v3333_v63 }
0x3d73   :  { %5445 = vtanh.f32 %v3343_v7 }
0x3d7d   :  { %v5446_v47 = vpop.eup %5445 }
0x3d7e   :  { %3346 = vrot.lane.b32.xlu0 %v5446_v47, %s5632_s13 }
0x3df0   :  { %v3347_v48 = vpop.permute.xlu0 %3346 }
0x3df1   :  { %v3349_v45 = vmul.f32 %v3347_v48, %v3332_v40  ;;  %v3629_v40 = vpack.c.bf16 %v3623_v3, %v3622_v16 }
0x3df3   :  { %3350 = vst.msk [vmem:[#allocation2 + $0x20] sm:$0xff] %vm143_vm0, %v3349_v45  ;;  %v3353_v49 = vpack.c.bf16 %v3349_v45, %v3349_v45 }
0x3df5   :  { %4845 = vmatmul.mubr.msk.bf16.vlgmr.msra.gmra.mrb[72].mxu1 %vm143_vm0, %v3353_v49 }
0x3df6   :  { %3524 = vmatpush1.bf16.msra.mxu1 %v6443_v19  ;;  %3555 = vmatprep.mubr.bf16.mxu1 %v5631_v0  ;;  %v2872_v19 = vadd.f32 %v6434_v18, %v6500_v60 }
0x3df7   :  { %3525 = vmatprep.subr.bf16.mxu1 %v6447_v20 }
0x3dfa   :  { %3526 = vmatpush1.bf16.msra.mxu1 %v6450_v21  ;;  %v3624_v57 = vld [vmem:[#allocation2 + $0x20] sm:$0xff] }
0x3dfb   :  { %3527 = vmatprep.subr.bf16.mxu1 %v6453_v35 }
0x3dfe   :  { %3528 = vmatpush1.bf16.msra.mxu1 %v6456_v23 }
0x3dff   :  { %3529 = vmatprep.subr.bf16.mxu1 %v6460_v5 }
0x3e02   :  { %3530 = vmatpush1.bf16.msra.mxu1 %v6463_v28 }
0x3ec8   :  { %v3391_v17 = vpop.f32.mrb[72].mxu1 }
0x3ec9   :  { %v3398_v1 = vadd.f32 %v3391_v17, %v2870_v13  ;;  %v3393_v62 = vpop.f32.mrb[73].mxu1 }
0x3eca   :  { %v3399_v20 = vadd.f32 %v3393_v62, %v2872_v19  ;;  %v3395_v38 = vpop.f32.mrb[74].mxu1 }
0x3ecb   :  { %v3396_v21 = vpop.f32.mrb[75].mxu1  ;;  %v4846_v18 = vmul.f32 -1.442695, %v3398_v1 }
0x3ecc   :  { %v4847_v9 = vmul.f32 -1.442695, %v3399_v20 }
0x3ece   :  { %5447 = vpow2.f32 %v4847_v9 }
0x3ecf   :  { %5449 = vtanh.f32 %v3399_v20 }
0x3ed8   :  { %v5448_v35 = vpop.eup %5447 }
0x3ed9   :  { %v3407_v23 = vadd.f32 1.0, %v5448_v35  ;;  %v5450_v5 = vpop.eup %5449 }
0x3edb   :  { %5451 = vrcp.f32 %v3407_v23 }
0x3edc   :  { %5453 = vpow2.f32 %v4846_v18 }
0x3ee5   :  { %v5452_v28 = vpop.eup %5451 }
0x3ee6   :  { %v3415_v41 = vsel %vm62_vm1, %v5452_v28, %v5450_v5  ;;  %v5454_v31 = vpop.eup %5453 }
0x3ee7   :  { %3418 = vrot.lane.b32.xlu1 %v3415_v41, %s5632_s13  ;;  %v3406_v11 = vadd.f32 1.0, %v5454_v31 }
0x3ee9   :  { %5455 = vrcp.f32 %v3406_v11 }
0x3ef3   :  { %v5456_v27 = vpop.eup %5455 }
0x3ef4   :  { %v3416_v54 = vmul.f32 %v5456_v27, %v3343_v7 }
0x3f59   :  { %v3419_v56 = vpop.permute.xlu1 %3418 }
0x3f5a   :  { %v3421_v51 = vmul.f32 %v5456_v27, %v3419_v56 }
0x3f5c   :  { %3423 = vrot.lane.b32.xlu0 %v3421_v51, %s5632_s13 }
0x3fce   :  { %v3424_v52 = vpop.permute.xlu0 %3423 }
0x3fcf   :  { %v6629_v59 = vadd.f32 %v3424_v52, %v3416_v54 }
0x3fd1   :  { %5457 = vtanh.f32 %v6629_v59 }
0x3fdb   :  { %v5458_v53 = vpop.eup %5457 }
0x3fdc   :  { %3429 = vrot.lane.b32.xlu1 %v5458_v53, %s5632_s13  ;;  %v6678_v53 = vld [vmem:[#allocation6 + $0x104] ss:$8 sps:$4 sm:$0xff]  }
0x3fdd   :  { %3826 = vmatprep.subr.bf16.mxu1 %v6678_v53 }
0x404e   :  { %v3430_v42 = vpop.permute.xlu1 %3429 }
0x404f   :  { %v3432_v4 = vmul.f32 %v3430_v42, %v3415_v41  ;;  %v6680_v42 = vld [vmem:[#allocation6 + $0x100] ss:$8 sps:$4 sm:$0xff]  }
0x4051   :  { %3433 = vst.msk [vmem:[#allocation2 + $0x28] sm:$0xff] %vm143_vm0, %v3432_v4  ;;  %v3436_v55 = vpack.c.bf16 %v3432_v4, %v3432_v4  ;;  %v6684_v4 = vld [vmem:[#allocation6 + $0x114] ss:$8 sps:$4 sm:$0xff]  }
0x4053   :  { %4848 = vmatmul.mubr.msk.bf16.vlgmr.msra.gmra.mrb[108].mxu0 %vm143_vm0, %v3436_v55  ;;  %v6693_v55 = vld [vmem:[#allocation6 + $0x120] ss:$8 sps:$4 sm:$0xff]  }
0x4054   :  { %3696 = vmatpush1.bf16.msra.mxu0 %v5063_v44  ;;  %3727 = vmatprep.mubr.bf16.mxu0 %v5631_v0  ;;  %v6687_v44 = vld [vmem:[#allocation6 + $0x110] ss:$8 sps:$4 sm:$0xff]  }
0x4055   :  { %3697 = vmatprep.subr.bf16.mxu0 %v5068_v26 }
0x4058   :  { %3698 = vmatpush1.bf16.msra.mxu0 %v5066_v36  ;;  %v3625_v2 = vld [vmem:[#allocation2 + $0x28] sm:$0xff]  ;;  %v6697_v36 = vld [vmem:[#allocation6 + $0x134] ss:$8 sps:$4 sm:$0xff]  }
0x4059   :  { %3699 = vmatprep.subr.bf16.mxu0 %v5071_v46  ;;  %v3630_v8 = vpack.c.bf16 %v3625_v2, %v3624_v57  ;;  %v6700_v46 = vld [vmem:[#allocation6 + $0x130] ss:$8 sps:$4 sm:$0xff]  }
0x405c   :  { %3700 = vmatpush1.bf16.msra.mxu0 %v5069_v50 }
0x405d   :  { %3701 = vmatprep.subr.bf16.mxu0 %v5074_v37 }
0x4060   :  { %3702 = vmatpush1.bf16.msra.mxu0 %v5072_v12 }
0x4061   :  { %3990 = vmatprep.subr.bf16.mxu0 %v6678_v53 }
0x4063   :  { %4863 = vmatmul.mubr.msk.bf16.vlgmr.msra.gmra.mrb[112].mxu0 %vm143_vm0, %v3628_v6 }
0x4064   :  { %3737 = vmatprep.mubr.bf16.mxu0 %v5631_v0  ;;  %3991 = vmatpush1.bf16.msra.mxu0 %v6680_v42 }
0x4065   :  { %3992 = vmatprep.subr.bf16.mxu0 %v6684_v4 }
0x4068   :  { %3993 = vmatpush1.bf16.msra.mxu0 %v6687_v44 }
0x406b   :  { %4864 = vmatmul.mubr.msk.bf16.gmra.mrb[116].mxu0 %vm143_vm0, %v3629_v40 }
0x406c   :  { %3747 = vmatprep.mubr.bf16.mxu0 %v5631_v0 }
0x4073   :  { %4865 = vmatmul.mubr.msk.bf16.gmra.mrb[120].mxu0 %vm143_vm0, %v3630_v8  ;;  %v4854_v8 = vld [vmem:[%s6931_s3 + $0x8] sm:$0x3] }
0x4074   :  { %3757 = vmatprep.mubr.bf16.mxu0 %v5631_v0 }
0x4126   :  { %v3474_v58 = vpop.f32.mrb[108].mxu0 }
0x4127   :  { %v3481_v63 = vadd.f32 %v3474_v58, %v2876_v10  ;;  %v3476_v30 = vpop.f32.mrb[109].mxu0  ;;  %v6734_v10 = vrot.slane %v4854_v8, %v5758_v22 }
0x4128   :  { %v3482_v7 = vadd.f32 %v3476_v30, %v2878_v25  ;;  %v3478_v47 = vpop.f32.mrb[110].mxu0  ;;  %v6737_v25 = vrot.slane %v4854_v8, %v5763_v24 }
0x4129   :  { %v3479_v48 = vpop.f32.mrb[111].mxu0  ;;  %v4849_v18 = vmul.f32 -1.442695, %v3481_v63 }
0x412a   :  { %v4850_v45 = vmul.f32 -1.442695, %v3482_v7 }
0x412c   :  { %5459 = vpow2.f32 %v4850_v45 }
0x412d   :  { %5461 = vtanh.f32 %v3482_v7 }
0x4136   :  { %v5460_v49 = vpop.eup %5459  ;;  %v6646_v13 = vpop.f32.mrb[112].mxu0 }
0x4137   :  { %v3490_v19 = vadd.f32 1.0, %v5460_v49  ;;  %v6648_v17 = vpop.f32.mrb[113].mxu0  ;;  %v5462_v21 = vpop.eup %5461  ;;  %v3730_v29 = vadd.f32 %v6646_v13, %v6734_v10 }
0x4138   :  { %v6650_v1 = vpop.f32.mrb[114].mxu0  ;;  %v3732_v60 = vadd.f32 %v6648_v17, %v6737_v25 }
0x4139   :  { %5463 = vrcp.f32 %v3490_v19  ;;  %v6652_v33 = vpop.f32.mrb[115].mxu0 }
0x413a   :  { %5465 = vpow2.f32 %v4849_v18 }
0x413e   :  { %v6654_v34 = vpop.f32.mrb[116].mxu0 }
0x413f   :  { %v6656_v62 = vpop.f32.mrb[117].mxu0 }
0x4140   :  { %v6658_v20 = vpop.f32.mrb[118].mxu0 }
0x4141   :  { %v6660_v38 = vpop.f32.mrb[119].mxu0 }
0x4143   :  { %v5464_v9 = vpop.eup %5463 }
0x4144   :  { %v3498_v35 = vsel %vm62_vm1, %v5464_v9, %v5462_v21  ;;  %v5466_v31 = vpop.eup %5465 }
0x4145   :  { %3501 = vrot.lane.b32.xlu0 %v3498_v35, %s5632_s13  ;;  %v3489_v11 = vadd.f32 1.0, %v5466_v31 }
0x4146   :  { %v6665_v23 = vpop.f32.mrb[120].mxu0 }
0x4147   :  { %v6667_v5 = vpop.f32.mrb[121].mxu0  ;;  %5467 = vrcp.f32 %v3489_v11 }
0x4148   :  { %v6669_v28 = vpop.f32.mrb[122].mxu0 }
0x4149   :  { %v6671_v41 = vpop.f32.mrb[123].mxu0 }
0x4151   :  { %v5468_v27 = vpop.eup %5467 }
0x4152   :  { %v3499_v54 = vmul.f32 %v5468_v27, %v6629_v59  ;;  %v6690_v59 = vld [vmem:[#allocation6 + $0x124] ss:$8 sps:$4 sm:$0xff]  }
0x4153   :  { %3994 = vmatprep.subr.bf16.mxu0 %v6690_v59 }
0x4154   :  { %3995 = vmatpush1.bf16.msra.mxu0 %v6693_v55 }
0x4155   :  { %3996 = vmatprep.subr.bf16.mxu0 %v6697_v36 }
0x4158   :  { %3997 = vmatpush1.bf16.msra.mxu0 %v6700_v46 }
0x4159   :  { %4154 = vmatprep.subr.bf16.mxu0 %v6678_v53 }
0x41b7   :  { %v3502_v56 = vpop.permute.xlu0 %3501 }
0x41b8   :  { %v3504_v51 = vmul.f32 %v5468_v27, %v3502_v56 }
0x41ba   :  { %3506 = vrot.lane.b32.xlu1 %v3504_v51, %s5632_s13 }
0x422c   :  { %v3507_v52 = vpop.permute.xlu1 %3506 }
0x422d   :  { %v6675_v32 = vadd.f32 %v3507_v52, %v3499_v54 }
0x422f   :  { %5469 = vtanh.f32 %v6675_v32 }
0x4239   :  { %v5470_v26 = vpop.eup %5469 }
0x423a   :  { %3512 = vrot.lane.b32.xlu0 %v5470_v26, %s5632_s13 }
0x42ac   :  { %v3513_v50 = vpop.permute.xlu0 %3512 }
0x42ad   :  { %v3515_v37 = vmul.f32 %v3513_v50, %v3498_v35 }
0x42af   :  { %3516 = vst.msk [vmem:[#allocation2 + $0x30] sm:$0xff] %vm143_vm0, %v3515_v37  ;;  %v3519_v12 = vpack.c.bf16 %v3515_v37, %v3515_v37 }
0x42b1   :  { %4851 = vmatmul.mubr.msk.bf16.vlgmr.msra.gmra.mrb[76].mxu1 %vm143_vm0, %v3519_v12 }
0x42b2   :  { %3827 = vmatpush1.bf16.msra.mxu1 %v6680_v42  ;;  %3858 = vmatprep.mubr.bf16.mxu1 %v5631_v0 }
0x42b3   :  { %3828 = vmatprep.subr.bf16.mxu1 %v6684_v4 }
0x42b6   :  { %3829 = vmatpush1.bf16.msra.mxu1 %v6687_v44 }
0x42b7   :  { %3830 = vmatprep.subr.bf16.mxu1 %v6690_v59 }
0x42ba   :  { %3831 = vmatpush1.bf16.msra.mxu1 %v6693_v55 }
0x42bb   :  { %3832 = vmatprep.subr.bf16.mxu1 %v6697_v36 }
0x42be   :  { %3833 = vmatpush1.bf16.msra.mxu1 %v6700_v46 }
0x42bf   :  { %3908 = vmatprep.subr.bf16.mxu1 %v6678_v53 }
0x42c1   :  { %3859 = vmatmul.mubr.bf16.vlgmr.msra.gmra.mrb[80].mxu1 %v5631_v0 }
0x42c2   :  { %3909 = vmatpush1.bf16.msra.mxu1 %v6680_v42  ;;  %3940 = vmatprep.mubr.bf16.mxu1 %v5631_v0 }
0x42c3   :  { %3910 = vmatprep.subr.bf16.mxu1 %v6684_v4 }
0x42c6   :  { %3911 = vmatpush1.bf16.msra.mxu1 %v6687_v44 }
0x42c7   :  { %3912 = vmatprep.subr.bf16.mxu1 %v6690_v59 }
0x42ca   :  { %3913 = vmatpush1.bf16.msra.mxu1 %v6693_v55 }
0x42cb   :  { %3914 = vmatprep.subr.bf16.mxu1 %v6697_v36 }
0x42ce   :  { %3915 = vmatpush1.bf16.msra.mxu1 %v6700_v46 }
0x42cf   :  { %4072 = vmatprep.subr.bf16.mxu1 %v6678_v53 }
0x4384   :  { %v3557_v6 = vpop.f32.mrb[76].mxu1 }
0x4385   :  { %v3564_v3 = vadd.f32 %v3557_v6, %v2880_v14  ;;  %v3559_v16 = vpop.f32.mrb[77].mxu1 }
0x4386   :  { %v3565_v40 = vadd.f32 %v3559_v16, %v2882_v39  ;;  %v3561_v2 = vpop.f32.mrb[78].mxu1 }
0x4387   :  { %v3562_v57 = vpop.f32.mrb[79].mxu1  ;;  %v4852_v54 = vmul.f32 -1.442695, %v3564_v3 }
0x4388   :  { %v4853_v19 = vmul.f32 -1.442695, %v3565_v40 }
0x4394   :  { %v3860_v15 = vpop.f32.mrb[80].mxu1 }
0x4395   :  { %v3867_v61 = vadd.f32 %v3860_v15, %v3730_v29  ;;  %v3862_v58 = vpop.f32.mrb[81].mxu1 }
0x4396   :  { %v3868_v63 = vadd.f32 %v3862_v58, %v3732_v60  ;;  %v3864_v30 = vpop.f32.mrb[82].mxu1 }
0x4397   :  { %v3865_v7 = vpop.f32.mrb[83].mxu1  ;;  %v4875_v13 = vmul.f32 -1.442695, %v3867_v61  ;;  %v3626_v61 = vld [vmem:[#allocation2 + $0x30] sm:$0xff]  ;;  %v3734_v30 = vadd.f32 %v6650_v1, %v6734_v10 }
0x4398   :  { %v4876_v47 = vmul.f32 -1.442695, %v3868_v63  ;;  %v3736_v7 = vadd.f32 %v6652_v33, %v6737_v25 }
0x439a   :  { %5471 = vpow2.f32 %v4876_v47 }
0x439b   :  { %5473 = vtanh.f32 %v3868_v63 }
0x43a4   :  { %v5472_v48 = vpop.eup %5471 }
0x43a5   :  { %v3876_v22 = vadd.f32 1.0, %v5472_v48  ;;  %v5474_v24 = vpop.eup %5473 }
0x43a7   :  { %5475 = vrcp.f32 %v3876_v22 }
0x43a8   :  { %5477 = vpow2.f32 %v4875_v13 }
0x43a9   :  { %5479 = vpow2.f32 %v4853_v19 }
0x43b1   :  { %v5476_v45 = vpop.eup %5475 }
0x43b2   :  { %v3884_v49 = vsel %vm62_vm1, %v5476_v45, %v5474_v24  ;;  %v5478_v17 = vpop.eup %5477 }
0x43b3   :  { %3887 = vrot.lane.b32.xlu1 %v3884_v49, %s5632_s13  ;;  %v5480_v21 = vpop.eup %5479  ;;  %v3875_v9 = vadd.f32 1.0, %v5478_v17 }
0x43b4   :  { %v3573_v35 = vadd.f32 1.0, %v5480_v21 }
0x43b5   :  { %5481 = vrcp.f32 %v3875_v9 }
0x43b6   :  { %5483 = vrcp.f32 %v3573_v35 }
0x43b7   :  { %5485 = vtanh.f32 %v3565_v40 }
0x43b8   :  { %5487 = vpow2.f32 %v4852_v54 }
0x43bf   :  { %v5482_v18 = vpop.eup %5481 }
0x43c0   :  { %v5484_v27 = vpop.eup %5483  ;;  %v3885_v50 = vmul.f32 0.0, %v5482_v18 }
0x43c1   :  { %v5486_v56 = vpop.eup %5485 }
0x43c2   :  { %v3581_v51 = vsel %vm62_vm1, %v5484_v27, %v5486_v56  ;;  %v5488_v52 = vpop.eup %5487 }
0x43c3   :  { %v3572_v26 = vadd.f32 1.0, %v5488_v52 }
0x43c5   :  { %5489 = vrcp.f32 %v3572_v26 }
0x43cf   :  { %v5490_v14 = vpop.eup %5489 }
0x43d0   :  { %v3582_v3 = vmul.f32 %v5490_v14, %v6675_v32 }
0x4425   :  { %v3888_v31 = vpop.permute.xlu1 %3887 }
0x4426   :  { %v3890_v11 = vmul.f32 %v5482_v18, %v3888_v31 }
0x4428   :  { %3892 = vrot.lane.b32.xlu0 %v3890_v11, %s5632_s13 }
0x442c   :  { %3584 = vrot.lane.b32.xlu0 %v3581_v51, %s5632_s13 }
0x449a   :  { %v3893_v37 = vpop.permute.xlu0 %3892 }
0x449b   :  { %v6750_v12 = vadd.f32 %v3893_v37, %v3885_v50 }
0x449d   :  { %5491 = vtanh.f32 %v6750_v12 }
0x449e   :  { %v3585_v39 = vpop.permute.xlu0 %3584 }
0x449f   :  { %v3587_v6 = vmul.f32 %v5490_v14, %v3585_v39 }
0x44a1   :  { %3589 = vrot.lane.b32.xlu0 %v3587_v6, %s5632_s13 }
0x44a7   :  { %v5492_v16 = vpop.eup %5491 }
0x44a8   :  { %3898 = vrot.lane.b32.xlu1 %v5492_v16, %s5632_s13 }
0x4513   :  { %v3590_v40 = vpop.permute.xlu0 %3589 }
0x4514   :  { %v3592_v2 = vadd.f32 %v3590_v40, %v3582_v3  ;;  %v3742_v3 = vadd.f32 %v6656_v62, %v6737_v25 }
0x4516   :  { %5493 = vtanh.f32 %v3592_v2 }
0x451a   :  { %v3899_v57 = vpop.permute.xlu1 %3898 }
0x451b   :  { %v3901_v8 = vmul.f32 %v3899_v57, %v3884_v49 }
0x451d   :  { %v3904_v29 = vpack.c.bf16 %v3901_v8, %v3901_v8 }
0x451f   :  { %4877 = vmatmul.mubr.msk.bf16.vlgmr.msra.gmra.mrb[84].mxu1 %vm143_vm0, %v3904_v29 }
0x4520   :  { %v5494_v60 = vpop.eup %5493  ;;  %4073 = vmatpush1.bf16.msra.mxu1 %v6680_v42  ;;  %4104 = vmatprep.mubr.bf16.mxu1 %v5631_v0 }
0x4521   :  { %3595 = vrot.lane.b32.xlu0 %v5494_v60, %s5632_s13  ;;  %4074 = vmatprep.subr.bf16.mxu1 %v6684_v4 }
0x4524   :  { %4075 = vmatpush1.bf16.msra.mxu1 %v6687_v44 }
0x4525   :  { %4076 = vmatprep.subr.bf16.mxu1 %v6690_v59 }
0x4528   :  { %4077 = vmatpush1.bf16.msra.mxu1 %v6693_v55 }
0x4529   :  { %4078 = vmatprep.subr.bf16.mxu1 %v6697_v36 }
0x452c   :  { %4079 = vmatpush1.bf16.msra.mxu1 %v6700_v46 }
0x452d   :  { %4236 = vmatprep.subr.bf16.mxu1 %v6678_v53 }
0x4593   :  { %v3596_v32 = vpop.permute.xlu0 %3595 }
0x4594   :  { %v3598_v15 = vmul.f32 %v3596_v32, %v3581_v51 }
0x4596   :  { %3599 = vst.msk [vmem:[#allocation2 + $0x38] sm:$0xff] %vm143_vm0, %v3598_v15 }
0x459d   :  { %v3627_v58 = vld [vmem:[#allocation2 + $0x38] sm:$0xff] }
0x459e   :  { %v3631_v63 = vpack.c.bf16 %v3627_v58, %v3626_v61 }
0x45a0   :  { %4866 = vmatmul.mubr.msk.bf16.gmra.mrb[124].mxu0 %vm143_vm0, %v3631_v63 }
0x45a1   :  { %4022 = vmatprep.mubr.bf16.mxu0 %v5631_v0 }
0x45f2   :  { %v3942_v47 = vpop.f32.mrb[84].mxu1 }
0x45f3   :  { %v3949_v48 = vadd.f32 %v3942_v47, %v3734_v30  ;;  %v3944_v22 = vpop.f32.mrb[85].mxu1 }
0x45f4   :  { %v3950_v24 = vadd.f32 %v3944_v22, %v3736_v7  ;;  %v3946_v45 = vpop.f32.mrb[86].mxu1 }
0x45f5   :  { %v3947_v49 = vpop.f32.mrb[87].mxu1  ;;  %v4878_v33 = vmul.f32 -1.442695, %v3949_v48 }
0x45f6   :  { %v4879_v13 = vmul.f32 -1.442695, %v3950_v24 }
0x45f8   :  { %5495 = vpow2.f32 %v4879_v13 }
0x45f9   :  { %5497 = vtanh.f32 %v3950_v24 }
0x4602   :  { %v5496_v19 = vpop.eup %5495 }
0x4603   :  { %v3958_v17 = vadd.f32 1.0, %v5496_v19  ;;  %v5498_v21 = vpop.eup %5497 }
0x4605   :  { %5499 = vrcp.f32 %v3958_v17 }
0x4606   :  { %5501 = vpow2.f32 %v4878_v33 }
0x460f   :  { %v5500_v9 = vpop.eup %5499 }
0x4610   :  { %v3966_v1 = vsel %vm62_vm1, %v5500_v9, %v5498_v21  ;;  %v5502_v35 = vpop.eup %5501  ;;  %v3744_v9 = vadd.f32 %v6658_v20, %v6734_v10 }
0x4611   :  { %3969 = vrot.lane.b32.xlu1 %v3966_v1, %s5632_s13  ;;  %v3957_v11 = vadd.f32 1.0, %v5502_v35 }
0x4613   :  { %5503 = vrcp.f32 %v3957_v11 }
0x461d   :  { %v5504_v51 = vpop.eup %5503 }
0x461e   :  { %v3967_v26 = vmul.f32 %v5504_v51, %v6750_v12  ;;  %v3740_v12 = vadd.f32 %v6654_v34, %v6734_v10 }
0x4673   :  { %v6777_v18 = vpop.f32.mrb[124].mxu0 }
0x4674   :  { %v6779_v31 = vpop.f32.mrb[125].mxu0 }
0x4675   :  { %v6781_v27 = vpop.f32.mrb[126].mxu0 }
0x4676   :  { %v6783_v56 = vpop.f32.mrb[127].mxu0 }
0x4683   :  { %v3970_v54 = vpop.permute.xlu1 %3969 }
0x4684   :  { %v3972_v52 = vmul.f32 %v5504_v51, %v3970_v54 }
0x4686   :  { %3974 = vrot.lane.b32.xlu1 %v3972_v52, %s5632_s13 }
0x46f8   :  { %v3975_v50 = vpop.permute.xlu1 %3974 }
0x46f9   :  { %v3977_v37 = vadd.f32 %v3975_v50, %v3967_v26 }
0x46fb   :  { %5505 = vtanh.f32 %v3977_v37 }
0x4705   :  { %v5506_v14 = vpop.eup %5505 }
0x4706   :  { %3980 = vrot.lane.b32.xlu1 %v5506_v14, %s5632_s13 }
0x4778   :  { %v3981_v39 = vpop.permute.xlu1 %3980 }
0x4779   :  { %v3983_v6 = vmul.f32 %v3981_v39, %v3966_v1  ;;  %v3746_v1 = vadd.f32 %v6660_v38, %v6737_v25 }
0x477b   :  { %v3986_v16 = vpack.c.bf16 %v3983_v6, %v3983_v6 }
0x477d   :  { %4880 = vmatmul.mubr.msk.bf16.vlgmr.msra.gmra.mrb[128].mxu0 %vm143_vm0, %v3986_v16 }
0x477e   :  { %4155 = vmatpush1.bf16.msra.mxu0 %v6680_v42  ;;  %4186 = vmatprep.mubr.bf16.mxu0 %v5631_v0 }
0x477f   :  { %4156 = vmatprep.subr.bf16.mxu0 %v6684_v4 }
0x4782   :  { %4157 = vmatpush1.bf16.msra.mxu0 %v6687_v44 }
0x4783   :  { %4158 = vmatprep.subr.bf16.mxu0 %v6690_v59 }
0x4786   :  { %4159 = vmatpush1.bf16.msra.mxu0 %v6693_v55 }
0x4787   :  { %4160 = vmatprep.subr.bf16.mxu0 %v6697_v36 }
0x478a   :  { %4161 = vmatpush1.bf16.msra.mxu0 %v6700_v46 }
0x478b   :  { %4318 = vmatprep.subr.bf16.mxu0 %v6678_v53 }
0x4850   :  { %v4024_v40 = vpop.f32.mrb[128].mxu0 }
0x4851   :  { %v4031_v2 = vadd.f32 %v4024_v40, %v3740_v12  ;;  %v4026_v57 = vpop.f32.mrb[129].mxu0 }
0x4852   :  { %v4032_v8 = vadd.f32 %v4026_v57, %v3742_v3  ;;  %v4028_v29 = vpop.f32.mrb[130].mxu0 }
0x4853   :  { %v4029_v60 = vpop.f32.mrb[131].mxu0  ;;  %v4881_v62 = vmul.f32 -1.442695, %v4031_v2 }
0x4854   :  { %v4882_v32 = vmul.f32 -1.442695, %v4032_v8 }
0x4856   :  { %5507 = vpow2.f32 %v4882_v32 }
0x4857   :  { %5509 = vtanh.f32 %v4032_v8 }
0x4860   :  { %v5508_v15 = vpop.eup %5507 }
0x4861   :  { %v4040_v61 = vadd.f32 1.0, %v5508_v15  ;;  %v5510_v58 = vpop.eup %5509  ;;  %v3750_v15 = vadd.f32 %v6665_v23, %v6734_v10 }
0x4863   :  { %5511 = vrcp.f32 %v4040_v61  ;;  %v3752_v61 = vadd.f32 %v6667_v5, %v6737_v25 }
0x4864   :  { %5513 = vpow2.f32 %v4881_v62 }
0x486d   :  { %v5512_v63 = vpop.eup %5511 }
0x486e   :  { %v4048_v34 = vsel %vm62_vm1, %v5512_v63, %v5510_v58  ;;  %v5514_v30 = vpop.eup %5513 }
0x486f   :  { %4051 = vrot.lane.b32.xlu0 %v4048_v34, %s5632_s13  ;;  %v4039_v7 = vadd.f32 1.0, %v5514_v30 }
0x4871   :  { %5515 = vrcp.f32 %v4039_v7 }
0x487b   :  { %v5516_v47 = vpop.eup %5515 }
0x487c   :  { %v4049_v24 = vmul.f32 %v5516_v47, %v3977_v37 }
0x48e1   :  { %v4052_v48 = vpop.permute.xlu0 %4051 }
0x48e2   :  { %v4054_v22 = vmul.f32 %v5516_v47, %v4052_v48 }
0x48e4   :  { %4056 = vrot.lane.b32.xlu1 %v4054_v22, %s5632_s13 }
0x4956   :  { %v4057_v45 = vpop.permute.xlu1 %4056 }
0x4957   :  { %v4059_v49 = vadd.f32 %v4057_v45, %v4049_v24 }
0x4959   :  { %5517 = vtanh.f32 %v4059_v49 }
0x4963   :  { %v5518_v13 = vpop.eup %5517 }
0x4964   :  { %4062 = vrot.lane.b32.xlu0 %v5518_v13, %s5632_s13 }
0x49d6   :  { %v4063_v19 = vpop.permute.xlu0 %4062 }
0x49d7   :  { %v4065_v17 = vmul.f32 %v4063_v19, %v4048_v34 }
0x49d9   :  { %v4068_v21 = vpack.c.bf16 %v4065_v17, %v4065_v17 }
0x49db   :  { %4883 = vmatmul.mubr.msk.bf16.vlgmr.msra.gmra.mrb[88].mxu1 %vm143_vm0, %v4068_v21 }
0x49dc   :  { %4237 = vmatpush1.bf16.msra.mxu1 %v6680_v42  ;;  %4268 = vmatprep.mubr.bf16.mxu1 %v5631_v0 }
0x49dd   :  { %4238 = vmatprep.subr.bf16.mxu1 %v6684_v4 }
0x49e0   :  { %4239 = vmatpush1.bf16.msra.mxu1 %v6687_v44 }
0x49e1   :  { %4240 = vmatprep.subr.bf16.mxu1 %v6690_v59 }
0x49e4   :  { %4241 = vmatpush1.bf16.msra.mxu1 %v6693_v55 }
0x49e5   :  { %4242 = vmatprep.subr.bf16.mxu1 %v6697_v36 }
0x49e8   :  { %4243 = vmatpush1.bf16.msra.mxu1 %v6700_v46 }
0x49e9   :  { %4400 = vmatprep.subr.bf16.mxu1 %v6678_v53 }
0x4aae   :  { %v4106_v33 = vpop.f32.mrb[88].mxu1 }
0x4aaf   :  { %v4113_v35 = vadd.f32 %v4106_v33, %v3744_v9  ;;  %v4108_v11 = vpop.f32.mrb[89].mxu1 }
0x4ab0   :  { %v4114_v51 = vadd.f32 %v4108_v11, %v3746_v1  ;;  %v4110_v54 = vpop.f32.mrb[90].mxu1 }
0x4ab1   :  { %v4111_v52 = vpop.f32.mrb[91].mxu1  ;;  %v4884_v38 = vmul.f32 -1.442695, %v4113_v35 }
0x4ab2   :  { %v4885_v26 = vmul.f32 -1.442695, %v4114_v51  ;;  %v3754_v52 = vadd.f32 %v6669_v28, %v6734_v10 }
0x4ab4   :  { %5519 = vpow2.f32 %v4885_v26 }
0x4ab5   :  { %5521 = vtanh.f32 %v4114_v51 }
0x4abe   :  { %v5520_v50 = vpop.eup %5519 }
0x4abf   :  { %v4122_v37 = vadd.f32 1.0, %v5520_v50  ;;  %v5522_v14 = vpop.eup %5521 }
0x4ac1   :  { %5523 = vrcp.f32 %v4122_v37 }
0x4ac2   :  { %5525 = vpow2.f32 %v4884_v38 }
0x4acb   :  { %v5524_v53 = vpop.eup %5523 }
0x4acc   :  { %v4130_v20 = vsel %vm62_vm1, %v5524_v53, %v5522_v14  ;;  %v5526_v39 = vpop.eup %5525 }
0x4acd   :  { %4133 = vrot.lane.b32.xlu1 %v4130_v20, %s5632_s13  ;;  %v4121_v6 = vadd.f32 1.0, %v5526_v39 }
0x4acf   :  { %5527 = vrcp.f32 %v4121_v6 }
0x4ad9   :  { %v5528_v16 = vpop.eup %5527 }
0x4ada   :  { %v4131_v40 = vmul.f32 %v5528_v16, %v4059_v49 }
0x4b3f   :  { %v4134_v12 = vpop.permute.xlu1 %4133 }
0x4b40   :  { %v4136_v3 = vmul.f32 %v5528_v16, %v4134_v12 }
0x4b42   :  { %4138 = vrot.lane.b32.xlu0 %v4136_v3, %s5632_s13 }
0x4bb4   :  { %v4139_v2 = vpop.permute.xlu0 %4138 }
0x4bb5   :  { %v4141_v57 = vadd.f32 %v4139_v2, %v4131_v40 }
0x4bb7   :  { %5529 = vtanh.f32 %v4141_v57 }
0x4bc1   :  { %v5530_v8 = vpop.eup %5529 }
0x4bc2   :  { %4144 = vrot.lane.b32.xlu1 %v5530_v8, %s5632_s13 }
0x4c34   :  { %v4145_v29 = vpop.permute.xlu1 %4144 }
0x4c35   :  { %v4147_v60 = vmul.f32 %v4145_v29, %v4130_v20  ;;  %v3760_v29 = vadd.f32 %v6777_v18, %v6734_v10 }
0x4c37   :  { %v4150_v32 = vpack.c.bf16 %v4147_v60, %v4147_v60  ;;  %v3762_v60 = vadd.f32 %v6779_v31, %v6737_v25 }
0x4c39   :  { %4886 = vmatmul.mubr.msk.bf16.vlgmr.msra.gmra.mrb[132].mxu0 %vm143_vm0, %v4150_v32 }
0x4c3a   :  { %4319 = vmatpush1.bf16.msra.mxu0 %v6680_v42  ;;  %4350 = vmatprep.mubr.bf16.mxu0 %v5631_v0 }
0x4c3b   :  { %4320 = vmatprep.subr.bf16.mxu0 %v6684_v4 }
0x4c3e   :  { %4321 = vmatpush1.bf16.msra.mxu0 %v6687_v44 }
0x4c3f   :  { %4322 = vmatprep.subr.bf16.mxu0 %v6690_v59 }
0x4c42   :  { %4323 = vmatpush1.bf16.msra.mxu0 %v6693_v55 }
0x4c43   :  { %4324 = vmatprep.subr.bf16.mxu0 %v6697_v36 }
0x4c46   :  { %4325 = vmatpush1.bf16.msra.mxu0 %v6700_v46 }
0x4d0c   :  { %v4188_v58 = vpop.f32.mrb[132].mxu0 }
0x4d0d   :  { %v4195_v63 = vadd.f32 %v4188_v58, %v3750_v15  ;;  %v4190_v34 = vpop.f32.mrb[133].mxu0 }
0x4d0e   :  { %v4196_v62 = vadd.f32 %v4190_v34, %v3752_v61  ;;  %v4192_v30 = vpop.f32.mrb[134].mxu0 }
0x4d0f   :  { %v4193_v7 = vpop.f32.mrb[135].mxu0  ;;  %v4887_v5 = vmul.f32 -1.442695, %v4195_v63 }
0x4d10   :  { %v4888_v47 = vmul.f32 -1.442695, %v4196_v62 }
0x4d12   :  { %5531 = vpow2.f32 %v4888_v47 }
0x4d13   :  { %5533 = vtanh.f32 %v4196_v62 }
0x4d1c   :  { %v5532_v48 = vpop.eup %5531 }
0x4d1d   :  { %v4204_v22 = vadd.f32 1.0, %v5532_v48  ;;  %v5534_v24 = vpop.eup %5533 }
0x4d1f   :  { %5535 = vrcp.f32 %v4204_v22 }
0x4d20   :  { %5537 = vpow2.f32 %v4887_v5 }
0x4d29   :  { %v5536_v45 = vpop.eup %5535 }
0x4d2a   :  { %v4212_v23 = vsel %vm62_vm1, %v5536_v45, %v5534_v24  ;;  %v5538_v49 = vpop.eup %5537 }
0x4d2b   :  { %4215 = vrot.lane.b32.xlu0 %v4212_v23, %s5632_s13  ;;  %v4203_v13 = vadd.f32 1.0, %v5538_v49 }
0x4d2d   :  { %5539 = vrcp.f32 %v4203_v13 }
0x4d37   :  { %v5540_v19 = vpop.eup %5539 }
0x4d38   :  { %v4213_v9 = vmul.f32 %v5540_v19, %v4141_v57 }
0x4d9d   :  { %v4216_v17 = vpop.permute.xlu0 %4215 }
0x4d9e   :  { %v4218_v21 = vmul.f32 %v5540_v19, %v4216_v17 }
0x4da0   :  { %4220 = vrot.lane.b32.xlu1 %v4218_v21, %s5632_s13 }
0x4e12   :  { %v4221_v1 = vpop.permute.xlu1 %4220 }
0x4e13   :  { %v4223_v33 = vadd.f32 %v4221_v1, %v4213_v9 }
0x4e15   :  { %5541 = vtanh.f32 %v4223_v33 }
0x4e1f   :  { %v5542_v35 = vpop.eup %5541 }
0x4e20   :  { %4226 = vrot.lane.b32.xlu0 %v5542_v35, %s5632_s13  ;;  %v3766_v35 = vadd.f32 %v6783_v56, %v6737_v25 }
0x4e92   :  { %v4227_v11 = vpop.permute.xlu0 %4226 }
0x4e93   :  { %v4229_v51 = vmul.f32 %v4227_v11, %v4212_v23 }
0x4e95   :  { %v4232_v54 = vpack.c.bf16 %v4229_v51, %v4229_v51 }
0x4e97   :  { %4889 = vmatmul.mubr.msk.bf16.vlgmr.msra.gmra.mrb[92].mxu1 %vm143_vm0, %v4232_v54 }
0x4e98   :  { %4401 = vmatpush1.bf16.msra.mxu1 %v6680_v42  ;;  %4432 = vmatprep.mubr.bf16.mxu1 %v5631_v0  ;;  %v3756_v42 = vadd.f32 %v6671_v41, %v6737_v25 }
0x4e99   :  { %4402 = vmatprep.subr.bf16.mxu1 %v6684_v4 }
0x4e9c   :  { %4403 = vmatpush1.bf16.msra.mxu1 %v6687_v44 }
0x4e9d   :  { %4404 = vmatprep.subr.bf16.mxu1 %v6690_v59 }
0x4ea0   :  { %4405 = vmatpush1.bf16.msra.mxu1 %v6693_v55 }
0x4ea1   :  { %4406 = vmatprep.subr.bf16.mxu1 %v6697_v36 }
0x4ea4   :  { %4407 = vmatpush1.bf16.msra.mxu1 %v6700_v46 }
0x4f6a   :  { %v4270_v26 = vpop.f32.mrb[92].mxu1 }
0x4f6b   :  { %v4277_v0 = vadd.f32 %v4270_v26, %v3754_v52  ;;  %v4272_v50 = vpop.f32.mrb[93].mxu1 }
0x4f6c   :  { %v4278_v4 = vadd.f32 %v4272_v50, %v3756_v42  ;;  %v4274_v37 = vpop.f32.mrb[94].mxu1 }
0x4f6d   :  { %v4275_v44 = vpop.f32.mrb[95].mxu1  ;;  %v4890_v41 = vmul.f32 -1.442695, %v4277_v0 }
0x4f6e   :  { %v4891_v14 = vmul.f32 -1.442695, %v4278_v4 }
0x4f70   :  { %5543 = vpow2.f32 %v4891_v14 }
0x4f71   :  { %5545 = vtanh.f32 %v4278_v4 }
0x4f7a   :  { %v5544_v59 = vpop.eup %5543 }
0x4f7b   :  { %v4286_v55 = vadd.f32 1.0, %v5544_v59  ;;  %v5546_v36 = vpop.eup %5545 }
0x4f7d   :  { %5547 = vrcp.f32 %v4286_v55 }
0x4f7e   :  { %5549 = vpow2.f32 %v4890_v41 }
0x4f87   :  { %v5548_v46 = vpop.eup %5547 }
0x4f88   :  { %v4294_v28 = vsel %vm62_vm1, %v5548_v46, %v5546_v36  ;;  %v5550_v53 = vpop.eup %5549  ;;  %v5087_v36 = vld [vmem:[%s6932_s4] sm:$0xff]   ;;  %v5633_v46 = vmov 0.0  }
0x4f89   :  { %4297 = vrot.lane.b32.xlu1 %v4294_v28, %s5632_s13  ;;  %v4285_v20 = vadd.f32 1.0, %v5550_v53  ;;  %4927 = vmatprep.subr.bf16.mxu0 %v5633_v46 }
0x4f8a   :  { %4939 = vmatprep.subr.bf16.mxu1 %v5633_v46 }
0x4f8b   :  { %5551 = vrcp.f32 %v4285_v20  ;;  %v5090_v20 = vld [vmem:[%s6932_s4 + $0x18] sm:$0xff]  }
0x4f95   :  { %v5552_v38 = vpop.eup %5551 }
0x4f96   :  { %v4295_v16 = vmul.f32 %v5552_v38, %v4223_v33  ;;  %v3764_v33 = vadd.f32 %v6781_v27, %v6734_v10 }
0x4ffb   :  { %v4298_v39 = vpop.permute.xlu1 %4297 }
0x4ffc   :  { %v4300_v6 = vmul.f32 %v5552_v38, %v4298_v39  ;;  %v5091_v39 = vld [vmem:[%s6934_s6] sm:$0xff]  }
0x4ffe   :  { %4302 = vrot.lane.b32.xlu0 %v4300_v6, %s5632_s13  ;;  %v5092_v6 = vld [vmem:[%s6934_s6 + $0x8] sm:$0xff]  }
0x5070   :  { %v4303_v12 = vpop.permute.xlu0 %4302 }
0x5071   :  { %v4305_v3 = vadd.f32 %v4303_v12, %v4295_v16  ;;  %v5093_v16 = vld [vmem:[%s6934_s6 + $0x10] sm:$0xff]  }
0x5073   :  { %5553 = vtanh.f32 %v4305_v3 }
0x507d   :  { %v5554_v40 = vpop.eup %5553 }
0x507e   :  { %4308 = vrot.lane.b32.xlu1 %v5554_v40, %s5632_s13  ;;  %v5095_v40 = vld [vmem:[%s6934_s6 + $0x20] sm:$0xff]  }
0x50f0   :  { %v4309_v2 = vpop.permute.xlu1 %4308 }
0x50f1   :  { %v4311_v57 = vmul.f32 %v4309_v2, %v4294_v28  ;;  %v5089_v28 = vld [vmem:[%s6932_s4 + $0x10] sm:$0xff]   ;;  %v5096_v2 = vld [vmem:[%s6934_s6 + $0x28] sm:$0xff]  }
0x50f3   :  { %v4314_v8 = vpack.c.bf16 %v4311_v57, %v4311_v57 }
0x50f5   :  { %4892 = vmatmul.mubr.msk.bf16.vlgmr.msra.gmra.mrb[136].mxu0 %vm143_vm0, %v4314_v8 }
0x50f6   :  { %4928 = vmatpush3.bf16.msra.mxu0 %v5087_v36  ;;  %4935 = vmatprep.mubr.msk.bf16.mxu0 %vm5634_vm2, %v5633_v46 }
0x50f7   :  { %4929 = vmatprep.subr.bf16.mxu0 %v5633_v46 }
0x50fa   :  { %4930 = vmatpush3.bf16.msra.mxu0 %v5088_v43 }
0x50fb   :  { %4931 = vmatprep.subr.bf16.mxu0 %v5633_v46 }
0x50fe   :  { %4932 = vmatpush3.bf16.msra.mxu0 %v5089_v28 }
0x50ff   :  { %4933 = vmatprep.subr.bf16.mxu0 %v5633_v46 }
0x5102   :  { %4934 = vmatpush3.bf16.msra.mxu0 %v5090_v20 }
0x51c8   :  { %v4352_v32 = vpop.f32.mrb[136].mxu0 }
0x51c9   :  { %v4359_v15 = vadd.f32 %v4352_v32, %v3760_v29  ;;  %v4354_v61 = vpop.f32.mrb[137].mxu0  ;;  %v5098_v32 = vld [vmem:[%s6934_s6 + $0x38] sm:$0xff]  }
0x51ca   :  { %v4360_v58 = vadd.f32 %v4354_v61, %v3762_v60  ;;  %v4356_v63 = vpop.f32.mrb[138].mxu0  ;;  %v5097_v60 = vld [vmem:[%s6934_s6 + $0x30] sm:$0xff]  }
0x51cb   :  { %v4357_v34 = vpop.f32.mrb[139].mxu0  ;;  %v4893_v31 = vmul.f32 -1.442695, %v4359_v15  ;;  %v4898_v15 = vld [vmem:[%s6933_s5] ss:$0 sm:$0xff] }
0x51cc   :  { %v4894_v62 = vmul.f32 -1.442695, %v4360_v58 }
0x51ce   :  { %5555 = vpow2.f32 %v4894_v62 }
0x51cf   :  { %5557 = vtanh.f32 %v4360_v58 }
0x51d8   :  { %v5556_v30 = vpop.eup %5555 }
0x51d9   :  { %v4368_v7 = vadd.f32 1.0, %v5556_v30  ;;  %v5558_v47 = vpop.eup %5557 }
0x51db   :  { %5559 = vrcp.f32 %v4368_v7 }
0x51dc   :  { %5561 = vpow2.f32 %v4893_v31 }
0x51e5   :  { %v5560_v48 = vpop.eup %5559 }
0x51e6   :  { %v4376_v18 = vsel %vm62_vm1, %v5560_v48, %v5558_v47  ;;  %v5562_v22 = vpop.eup %5561  ;;  %v4904_v47 = vld [vmem:[%s6935_s7] ss:$0 sm:$0xff] }
0x51e7   :  { %4379 = vrot.lane.b32.xlu0 %v4376_v18, %s5632_s13  ;;  %v4367_v24 = vadd.f32 1.0, %v5562_v22 }
0x51e9   :  { %5563 = vrcp.f32 %v4367_v24 }
0x51f3   :  { %v5564_v45 = vpop.eup %5563 }
0x51f4   :  { %v4377_v49 = vmul.f32 %v5564_v45, %v4305_v3  ;;  %v5094_v3 = vld [vmem:[%s6934_s6 + $0x18] sm:$0xff]  }
0x5259   :  { %v4380_v23 = vpop.permute.xlu0 %4379 }
0x525a   :  { %v4382_v5 = vmul.f32 %v5564_v45, %v4380_v23 }
0x525c   :  { %4384 = vrot.lane.b32.xlu1 %v4382_v5, %s5632_s13 }
0x52ce   :  { %v4385_v13 = vpop.permute.xlu1 %4384 }
0x52cf   :  { %v4387_v19 = vadd.f32 %v4385_v13, %v4377_v49 }
0x52d1   :  { %5565 = vtanh.f32 %v4387_v19 }
0x52db   :  { %v5566_v17 = vpop.eup %5565 }
0x52dc   :  { %4390 = vrot.lane.b32.xlu0 %v5566_v17, %s5632_s13 }
0x534e   :  { %v4391_v21 = vpop.permute.xlu0 %4390 }
0x534f   :  { %v4393_v9 = vmul.f32 %v4391_v21, %v4376_v18 }
0x5351   :  { %v4396_v1 = vpack.c.bf16 %v4393_v9, %v4393_v9 }
0x5353   :  { %4895 = vmatmul.mubr.msk.bf16.vlgmr.msra.gmra.mrb[96].mxu1 %vm143_vm0, %v4396_v1 }
0x5354   :  { %4955 = vmatprep.mubr.msk.bf16.mxu1 %vm5634_vm2, %v5633_v46  ;;  %4940 = vmatpush3.bf16.msra.mxu1 %v5091_v39 }
0x5355   :  { %4941 = vmatprep.subr.bf16.mxu1 %v5633_v46 }
0x5358   :  { %4942 = vmatpush3.bf16.msra.mxu1 %v5092_v6 }
0x5359   :  { %4943 = vmatprep.subr.bf16.mxu1 %v5633_v46 }
0x535c   :  { %4944 = vmatpush3.bf16.msra.mxu1 %v5093_v16 }
0x535d   :  { %4945 = vmatprep.subr.bf16.mxu1 %v5633_v46 }
0x5360   :  { %4946 = vmatpush3.bf16.msra.mxu1 %v5094_v3 }
0x5361   :  { %4947 = vmatprep.subr.bf16.mxu1 %v5633_v46 }
0x5364   :  { %4948 = vmatpush3.bf16.msra.mxu1 %v5095_v40 }
0x5365   :  { %4949 = vmatprep.subr.bf16.mxu1 %v5633_v46 }
0x5368   :  { %4950 = vmatpush3.bf16.msra.mxu1 %v5096_v2 }
0x5369   :  { %4951 = vmatprep.subr.bf16.mxu1 %v5633_v46 }
0x536c   :  { %4952 = vmatpush3.bf16.msra.mxu1 %v5097_v60 }
0x536d   :  { %4953 = vmatprep.subr.bf16.mxu1 %v5633_v46 }
0x5370   :  { %4954 = vmatpush3.bf16.msra.mxu1 %v5098_v32 }
0x5426   :  { %v4434_v11 = vpop.f32.mrb[96].mxu1 }
0x5427   :  { %v4441_v51 = vadd.f32 %v4434_v11, %v3764_v33  ;;  %v4436_v54 = vpop.f32.mrb[97].mxu1 }
0x5428   :  { %v4442_v52 = vadd.f32 %v4436_v54, %v3766_v35  ;;  %v4438_v42 = vpop.f32.mrb[98].mxu1 }
0x5429   :  { %v4439_v26 = vpop.f32.mrb[99].mxu1  ;;  %v4896_v25 = vmul.f32 -1.442695, %v4441_v51 }
0x542a   :  { %v4897_v0 = vmul.f32 -1.442695, %v4442_v52 }
0x542c   :  { %5567 = vpow2.f32 %v4897_v0 }
0x542d   :  { %5569 = vtanh.f32 %v4442_v52 }
0x5436   :  { %v5568_v50 = vpop.eup %5567 }
0x5437   :  { %v4450_v4 = vadd.f32 1.0, %v5568_v50  ;;  %v5570_v37 = vpop.eup %5569 }
0x5439   :  { %5571 = vrcp.f32 %v4450_v4 }
0x543a   :  { %5573 = vpow2.f32 %v4896_v25 }
0x5443   :  { %v5572_v44 = vpop.eup %5571 }
0x5444   :  { %v4458_v10 = vsel %vm62_vm1, %v5572_v44, %v5570_v37  ;;  %v5574_v27 = vpop.eup %5573 }
0x5445   :  { %4461 = vrot.lane.b32.xlu1 %v4458_v10, %s5632_s13  ;;  %v4449_v56 = vadd.f32 1.0, %v5574_v27 }
0x5447   :  { %5575 = vrcp.f32 %v4449_v56 }
0x5451   :  { %v5576_v14 = vpop.eup %5575 }
0x5452   :  { %v4459_v41 = vmul.f32 %v5576_v14, %v4387_v19 }
0x54b7   :  { %v4462_v59 = vpop.permute.xlu1 %4461 }
0x54b8   :  { %v4464_v55 = vmul.f32 %v5576_v14, %v4462_v59 }
0x54ba   :  { %4466 = vrot.lane.b32.xlu0 %v4464_v55, %s5632_s13 }
0x552c   :  { %v4467_v53 = vpop.permute.xlu0 %4466 }
0x552d   :  { %v4469_v38 = vadd.f32 %v4467_v53, %v4459_v41 }
0x552f   :  { %5577 = vtanh.f32 %v4469_v38 }
0x5539   :  { %v5578_v12 = vpop.eup %5577 }
0x553a   :  { %4472 = vrot.lane.b32.xlu1 %v5578_v12, %s5632_s13 }
0x55ac   :  { %v4473_v57 = vpop.permute.xlu1 %4472 }
0x55ad   :  { %v4475_v8 = vmul.f32 %v4473_v57, %v4458_v10 }
0x55af   :  { %v4476_v29 = vpack.c.bf16 %v4475_v8, %v4475_v8 }
0x55b1   :  { %4936 = vmatmul.mubr.msk.bf16.vlgmr.msra.gmra.mrb[140].mxu0 %vm143_vm0, %v4476_v29 }
0x5684   :  { %v4553_v61 = vpop.f32.mrb[140].mxu0 }
0x5685   :  { %v4554_v58 = vadd.f32 %v4898_v15, %v4553_v61  ;;  %v4937_v63 = vpop.f32.mrb[141].mxu0 }
0x5686   :  { %v4556_v34 = vpop.f32.mrb[142].mxu0 }
0x5687   :  { %v4559_v62 = vmax.f32 %v4554_v58, 0.0  ;;  %v4938_v30 = vpop.f32.mrb[143].mxu0 }
0x5689   :  { %v4560_v7 = vpack.c.bf16 %v4559_v62, %v4559_v62 }
0x568b   :  { %4956 = vmatmul.mubr.bf16.vlgmr.msra.gmra.mrb[100].mxu1 %v4560_v7 }
0x575e   :  { %v4666_v48 = vpop.f32.mrb[100].mxu1 }
0x575f   :  { %v4667_v18 = vadd.f32 %v4904_v47, %v4666_v48  ;;  %v4957_v31 = vpop.f32.mrb[101].mxu1 }
0x5760   :  { %v4669_v22 = vpop.f32.mrb[102].mxu1 }
0x5761   :  { %4672 = vst [vmem:[%s6936_s8] sm:$0xff] %v4667_v18  ;;  %v4958_v24 = vpop.f32.mrb[103].mxu1 }
0x5762   :  { %4677 = vsyncpa [#allocation5], 1 }
0x5763   :  { %4678 = vsyncpa [#allocation7], 1 }

</bundles_post_ra>
